<compile_context>
chip_gen: v6e
topology: v6e:2x2x1
jax: 0.10.0
libtpu: 0.0.40
codegen_flags: <defaults>
</compile_context>

<pallas_src>
import functools

import jax
import jax.numpy as jnp
from jax.experimental import pallas as pl
from jax.experimental.pallas import tpu as pltpu


def transformer_block_kernel(x_ref,
                             wqkv_ref, bqkv_ref, wo_ref, bo_ref,
                             g1_ref, be1_ref, g2_ref, be2_ref,
                             w1_ref, b1_ref, w2_ref, b2_ref,
                             o_ref, *, nb, seq, heads):
    S, H = seq, heads
    E = wo_ref.shape[0]
    Dh = E // H
    R = nb * S                                     # rows in this block
    scale = 1.0 / (E ** 0.5)                       # matches torch: / embed_size**0.5

    x = x_ref[...].astype(jnp.float32)             # (R, E), already lane-dense

    # ---- fused QKV projection: one bf16 MXU matmul, f32 accumulation ---------
    qkv = jnp.dot(x.astype(jnp.bfloat16), wqkv_ref[...],
                  preferred_element_type=jnp.float32) + bqkv_ref[...]   # (R, 3E)

    # ---- single layout-aware reshape to per-head batched form ----------------
    # rows ordered (n, s); columns within each E ordered (h, d)  ->  (nb*H, S, Dh)
    def to_heads(m):
        return (m.reshape(nb, S, H, Dh)
                 .transpose(0, 2, 1, 3)
                 .reshape(nb * H, S, Dh))

    q = to_heads(qkv[:, :E]) * scale               # fold 1/sqrt(E) into Q
    k = to_heads(qkv[:, E:2 * E])
    v = to_heads(qkv[:, 2 * E:])

    # ---- batched attention over all (batch, head) pairs ----------------------
    e = jnp.einsum("bqd,bkd->bqk",
                   q.astype(jnp.bfloat16), k.astype(jnp.bfloat16),
                   preferred_element_type=jnp.float32)                  # (nb*H, S, S)
    e = e - jnp.max(e, axis=-1, keepdims=True)
    p = jnp.exp(e)
    attn = p * pl.reciprocal(jnp.sum(p, axis=-1, keepdims=True), approx=True)
    ctx = jnp.einsum("bqk,bkd->bqd",
                     attn.astype(jnp.bfloat16), v.astype(jnp.bfloat16),
                     preferred_element_type=jnp.float32)                # (nb*H, S, Dh)

    # inverse layout reshape: (nb*H, S, Dh) -> (R, E)
    att = (ctx.reshape(nb, H, S, Dh)
              .transpose(0, 2, 1, 3)
              .reshape(R, E))
    att = jnp.dot(att.astype(jnp.bfloat16), wo_ref[...],
                  preferred_element_type=jnp.float32) + bo_ref[...]     # fc_out

    def layernorm(vv, g, b, eps=1e-5):
        mu = jnp.mean(vv, axis=-1, keepdims=True)
        var = jnp.mean((vv - mu) ** 2, axis=-1, keepdims=True)
        return (vv - mu) * jax.lax.rsqrt(var + eps) * g + b

    x1 = layernorm(att + x, g1_ref[...], be1_ref[...])                  # norm1(attn + x)
    # dropout -> identity (eval mode)
    h1 = jnp.maximum(
        jnp.dot(x1.astype(jnp.bfloat16), w1_ref[...],
                preferred_element_type=jnp.float32) + b1_ref[...],
        0.0)                                                            # Linear + ReLU
    ff = jnp.dot(h1.astype(jnp.bfloat16), w2_ref[...],
                 preferred_element_type=jnp.float32) + b2_ref[...]      # Linear
    out = layernorm(ff + x1, g2_ref[...], be2_ref[...])                 # norm2(ff + x1)

    o_ref[...] = out.astype(o_ref.dtype)                                # (R, E) lane-dense


def transformer_block(x, params, heads, *, nb=1):
    """x: (N, S, E) float32; params: dict of pre-transposed weights."""
    N, S, E = x.shape
    hidden = params["w1"].shape[1]
    H = heads
    assert E % H == 0, "embed_size must be divisible by heads"
    assert N % nb == 0, "nb must divide batch"
    rows = nb * S
    assert rows % 8 == 0 or rows == N * S, "row block must be sublane aligned"

    # Fuse Q/K/V weights + biases in the wrapper; MXU weights stored as bf16.
    wqkv = jnp.concatenate([params["wq"], params["wk"], params["wv"]],
                           axis=1).astype(jnp.bfloat16)                 # (E, 3E)
    bqkv = jnp.concatenate([params["bq"], params["bk"], params["bv"]], axis=1)  # (1, 3E)
    wo = params["wo"].astype(jnp.bfloat16)
    w1 = params["w1"].astype(jnp.bfloat16)
    w2 = params["w2"].astype(jnp.bfloat16)

    # Lane-dense activation layout: (N*S, E), E a multiple of 128.
    x2d = x.reshape(N * S, E)

    grid = (pl.cdiv(N, nb),)                # >= 2 steps -> megacore-shardable

    full = lambda shp: pl.BlockSpec(shp, lambda i: (0, 0))
    weight_specs = [
        full((E, 3 * E)), full((1, 3 * E)),        # wqkv, bqkv
        full((E, E)), full((1, E)),                # wo, bo
        full((1, E)), full((1, E)),                # gamma1, beta1
        full((1, E)), full((1, E)),                # gamma2, beta2
        full((E, hidden)), full((1, hidden)),      # w1, b1
        full((hidden, E)), full((1, E)),           # w2, b2
    ]

    # Advisory cost estimate for the XLA scheduler.
    R = N * S
    Dh = E // H
    flops = (2 * R * E * 3 * E                     # qkv proj
             + 2 * N * H * S * S * Dh * 2          # qk^T and attn@v
             + 2 * R * E * E                       # out proj
             + 2 * R * E * hidden * 2)             # mlp
    weight_bytes = (wqkv.size + wo.size + w1.size + w2.size) * 2 \
        + (bqkv.size + 9 * E + hidden) * 4
    cost = pl.CostEstimate(flops=int(flops),
                           transcendentals=int(N * H * S * S),
                           bytes_accessed=int(2 * R * E * 4 + weight_bytes))

    kernel = functools.partial(transformer_block_kernel, nb=nb, seq=S, heads=H)
    fn = pl.pallas_call(
        kernel,
        out_shape=jax.ShapeDtypeStruct((N * S, E), x.dtype),
        grid_spec=pltpu.PrefetchScalarGridSpec(
            num_scalar_prefetch=0,
            grid=grid,
            in_specs=[pl.BlockSpec((rows, E), lambda i: (i, 0))] + weight_specs,
            out_specs=pl.BlockSpec((rows, E), lambda i: (i, 0)),
        ),
        compiler_params=pltpu.CompilerParams(
            dimension_semantics=("parallel",)),
        cost_estimate=cost,
    )
    out2d = fn(x2d, wqkv, bqkv, wo, params["bo"],
               params["gamma1"], params["beta1"],
               params["gamma2"], params["beta2"],
               w1, params["b1"], w2, params["b2"])
    return out2d.reshape(N, S, E)


def transformer_block_ref(x, params, heads):
    """Pure-JAX f32 reference mirroring the PyTorch module (eval mode)."""
    N, S, E = x.shape
    Dh = E // heads

    def lin(v, w, b):
        return v @ w + b[0]

    Q = lin(x, params["wq"], params["bq"]).reshape(N, S, heads, Dh).transpose(0, 2, 1, 3)
    K = lin(x, params["wk"], params["bk"]).reshape(N, S, heads, Dh).transpose(0, 2, 1, 3)
    V = lin(x, params["wv"], params["bv"]).reshape(N, S, heads, Dh).transpose(0, 2, 1, 3)
    energy = jnp.einsum("nhqd,nhkd->nhqk", Q, K) / (E ** 0.5)
    attn = jax.nn.softmax(energy, axis=-1)
    out = jnp.einsum("nhqk,nhkd->nhqd", attn, V).transpose(0, 2, 1, 3).reshape(N, S, E)
    att = lin(out, params["wo"], params["bo"])

    def ln(v, g, b, eps=1e-5):
        mu = jnp.mean(v, axis=-1, keepdims=True)
        var = jnp.mean((v - mu) ** 2, axis=-1, keepdims=True)
        return (v - mu) / jnp.sqrt(var + eps) * g[0] + b[0]

    x1 = ln(att + x, params["gamma1"], params["beta1"])
    ff = lin(jnp.maximum(lin(x1, params["w1"], params["b1"]), 0.0),
             params["w2"], params["b2"])
    return ln(ff + x1, params["gamma2"], params["beta2"])


def init_params(key, embed_size, forward_expansion):
    E = embed_size
    hidden = forward_expansion * E
    ks = jax.random.split(key, 12)
    s = 0.05
    return {
        "wq": jax.random.normal(ks[0], (E, E), jnp.float32) * s,
        "bq": jax.random.normal(ks[1], (1, E), jnp.float32) * s,
        "wk": jax.random.normal(ks[2], (E, E), jnp.float32) * s,
        "bk": jax.random.normal(ks[3], (1, E), jnp.float32) * s,
        "wv": jax.random.normal(ks[4], (E, E), jnp.float32) * s,
        "bv": jax.random.normal(ks[5], (1, E), jnp.float32) * s,
        "wo": jax.random.normal(ks[6], (E, E), jnp.float32) * s,
        "bo": jax.random.normal(ks[7], (1, E), jnp.float32) * s,
        "gamma1": jnp.ones((1, E), jnp.float32),
        "beta1": jnp.zeros((1, E), jnp.float32),
        "gamma2": jnp.ones((1, E), jnp.float32),
        "beta2": jnp.zeros((1, E), jnp.float32),
        "w1": jax.random.normal(ks[8], (E, hidden), jnp.float32) * s,
        "b1": jax.random.normal(ks[9], (1, hidden), jnp.float32) * s,
        "w2": jax.random.normal(ks[10], (hidden, E), jnp.float32) * s,
        "b2": jax.random.normal(ks[11], (1, E), jnp.float32) * s,
    }


if __name__ == "__main__":
    # Module-consistent small shapes: N=2, seq=8, embed=256, heads=8,
    # forward_expansion=4 -> hidden=1024, head_dim=32, E multiple of 128.
    N, S, E, heads, fexp = 2, 8, 256, 8, 4

    key = jax.random.PRNGKey(0)
    kx, kp = jax.random.split(key)
    x = jax.random.normal(kx, (N, S, E), jnp.float32)
    params = init_params(kp, E, fexp)

    out = transformer_block(x, params, heads, nb=1)
    out = jax.block_until_ready(out)

    ref = transformer_block_ref(x, params, heads)
    assert out.shape == (N, S, E)
    # Tolerance accounts for bf16 MXU operands and the approximate EUP reciprocal
    # in the softmax denominator; post-LayerNorm outputs are O(1).
    assert jnp.allclose(out, ref, rtol=5e-2, atol=5e-2), (
        f"max abs err {jnp.max(jnp.abs(out - ref))}")

    print("KERNEL_OK")
</pallas_src>

<mosaic_0001>
module attributes {stable_mosaic.version = 11 : i64} {
  func.func @transformer_block_kernel(%arg0: i32, %arg1: memref<8x256xf32, #tpu.memory_space<vmem>>, %arg2: memref<256x768xbf16, #tpu.memory_space<vmem>>, %arg3: memref<1x768xf32, #tpu.memory_space<vmem>>, %arg4: memref<256x256xbf16, #tpu.memory_space<vmem>>, %arg5: memref<1x256xf32, #tpu.memory_space<vmem>>, %arg6: memref<1x256xf32, #tpu.memory_space<vmem>>, %arg7: memref<1x256xf32, #tpu.memory_space<vmem>>, %arg8: memref<1x256xf32, #tpu.memory_space<vmem>>, %arg9: memref<1x256xf32, #tpu.memory_space<vmem>>, %arg10: memref<256x1024xbf16, #tpu.memory_space<vmem>>, %arg11: memref<1x1024xf32, #tpu.memory_space<vmem>>, %arg12: memref<1024x256xbf16, #tpu.memory_space<vmem>>, %arg13: memref<1x256xf32, #tpu.memory_space<vmem>>, %arg14: memref<8x256xf32, #tpu.memory_space<vmem>>) attributes {dimension_semantics = [#tpu.dimension_semantics<parallel>], iteration_bounds = array<i64: 2>, scalar_prefetch = 0 : i64, scratch_operands = 0 : i64, tpu.core_type = #tpu.core_type<tc>, window_params = [{transform_indices = @transform_0, window_bounds = array<i64: 8, 256>}, {pipeline_mode = #tpu.pipeline_mode<synchronous>, transform_indices = @transform_1, window_bounds = array<i64: 256, 768>}, {pipeline_mode = #tpu.pipeline_mode<synchronous>, transform_indices = @transform_2, window_bounds = array<i64: 1, 768>}, {pipeline_mode = #tpu.pipeline_mode<synchronous>, transform_indices = @transform_3, window_bounds = array<i64: 256, 256>}, {pipeline_mode = #tpu.pipeline_mode<synchronous>, transform_indices = @transform_4, window_bounds = array<i64: 1, 256>}, {pipeline_mode = #tpu.pipeline_mode<synchronous>, transform_indices = @transform_5, window_bounds = array<i64: 1, 256>}, {pipeline_mode = #tpu.pipeline_mode<synchronous>, transform_indices = @transform_6, window_bounds = array<i64: 1, 256>}, {pipeline_mode = #tpu.pipeline_mode<synchronous>, transform_indices = @transform_7, window_bounds = array<i64: 1, 256>}, {pipeline_mode = #tpu.pipeline_mode<synchronous>, transform_indices = @transform_8, window_bounds = array<i64: 1, 256>}, {pipeline_mode = #tpu.pipeline_mode<synchronous>, transform_indices = @transform_9, window_bounds = array<i64: 256, 1024>}, {pipeline_mode = #tpu.pipeline_mode<synchronous>, transform_indices = @transform_10, window_bounds = array<i64: 1, 1024>}, {pipeline_mode = #tpu.pipeline_mode<synchronous>, transform_indices = @transform_11, window_bounds = array<i64: 1024, 256>}, {pipeline_mode = #tpu.pipeline_mode<synchronous>, transform_indices = @transform_12, window_bounds = array<i64: 1, 256>}, {transform_indices = @transform_13, window_bounds = array<i64: 8, 256>}]} {
    %c0 = arith.constant 0 : index
    %c0_0 = arith.constant 0 : index
    %0 = vector.load %arg1[%c0, %c0_0] : memref<8x256xf32, #tpu.memory_space<vmem>>, vector<8x256xf32>
    %1 = arith.truncf %0 : vector<8x256xf32> to vector<8x256xbf16>
    %c0_1 = arith.constant 0 : index
    %c0_2 = arith.constant 0 : index
    %2 = vector.load %arg2[%c0_1, %c0_2] : memref<256x768xbf16, #tpu.memory_space<vmem>>, vector<256x768xbf16>
    %cst = arith.constant dense<0.000000e+00> : vector<8x768xf32>
    %3 = tpu.matmul %1, %2, %cst {dimension_numbers = #tpu.dot_dimension_numbers<[1], [0], [0], [1], [0, 0, 1, 1], [], []>} : vector<8x256xbf16>, vector<256x768xbf16>, vector<8x768xf32> -> vector<8x768xf32>
    %c0_3 = arith.constant 0 : index
    %c0_4 = arith.constant 0 : index
    %4 = vector.load %arg3[%c0_3, %c0_4] : memref<1x768xf32, #tpu.memory_space<vmem>>, vector<1x768xf32>
    %5 = vector.broadcast %4 : vector<1x768xf32> to vector<8x768xf32>
    %6 = arith.addf %3, %5 : vector<8x768xf32>
    %7 = vector.extract_strided_slice %6 {offsets = [0, 0], sizes = [8, 256], strides = [1, 1]} : vector<8x768xf32> to vector<8x256xf32>
    %8 = vector.shape_cast %7 : vector<8x256xf32> to vector<1x8x8x32xf32>
    %9 = tpu.transpose %8, [0, 2, 1, 3] : vector<1x8x8x32xf32> -> vector<1x8x8x32xf32>
    %10 = vector.shape_cast %9 : vector<1x8x8x32xf32> to vector<8x8x32xf32>
    %cst_5 = arith.constant 6.250000e-02 : f32
    %11 = vector.broadcast %cst_5 : f32 to vector<8x8x32xf32>
    %12 = arith.mulf %10, %11 : vector<8x8x32xf32>
    %13 = vector.extract_strided_slice %6 {offsets = [0, 256], sizes = [8, 256], strides = [1, 1]} : vector<8x768xf32> to vector<8x256xf32>
    %14 = vector.shape_cast %13 : vector<8x256xf32> to vector<1x8x8x32xf32>
    %15 = tpu.transpose %14, [0, 2, 1, 3] : vector<1x8x8x32xf32> -> vector<1x8x8x32xf32>
    %16 = vector.shape_cast %15 : vector<1x8x8x32xf32> to vector<8x8x32xf32>
    %17 = vector.extract_strided_slice %6 {offsets = [0, 512], sizes = [8, 256], strides = [1, 1]} : vector<8x768xf32> to vector<8x256xf32>
    %18 = vector.shape_cast %17 : vector<8x256xf32> to vector<1x8x8x32xf32>
    %19 = tpu.transpose %18, [0, 2, 1, 3] : vector<1x8x8x32xf32> -> vector<1x8x8x32xf32>
    %20 = vector.shape_cast %19 : vector<1x8x8x32xf32> to vector<8x8x32xf32>
    %21 = arith.truncf %12 : vector<8x8x32xf32> to vector<8x8x32xbf16>
    %22 = arith.truncf %16 : vector<8x8x32xf32> to vector<8x8x32xbf16>
    "tpu.trace_start"() <{level = 10 : i32, message = "bqd,bkd->bqk"}> : () -> ()
    %cst_6 = arith.constant dense<0.000000e+00> : vector<8x8x8xf32>
    %23 = tpu.matmul %21, %22, %cst_6 {dimension_numbers = #tpu.dot_dimension_numbers<[2], [2], [1], [1], [0, 0, 0, 1, 1, 1], [0], [0]>} : vector<8x8x32xbf16>, vector<8x8x32xbf16>, vector<8x8x8xf32> -> vector<8x8x8xf32>
    "tpu.trace_stop"() : () -> ()
    %cst_7 = arith.constant dense<0xFF800000> : vector<8x8xf32>
    %24 = vector.multi_reduction <maximumf>, %23, %cst_7 [2] : vector<8x8x8xf32> to vector<8x8xf32>
    %25 = vector.shape_cast %24 : vector<8x8xf32> to vector<8x8x1xf32>
    %26 = vector.broadcast %25 : vector<8x8x1xf32> to vector<8x8x8xf32>
    %27 = arith.subf %23, %26 : vector<8x8x8xf32>
    %28 = math.exp %27 : vector<8x8x8xf32>
    %cst_8 = arith.constant dense<0.000000e+00> : vector<8x8xf32>
    %29 = vector.multi_reduction <add>, %28, %cst_8 [2] : vector<8x8x8xf32> to vector<8x8xf32>
    %30 = vector.shape_cast %29 : vector<8x8xf32> to vector<8x8x1xf32>
    %31 = tpu.reciprocal %30 {approx = true} : vector<8x8x1xf32> -> vector<8x8x1xf32>
    %32 = vector.broadcast %31 : vector<8x8x1xf32> to vector<8x8x8xf32>
    %33 = arith.mulf %28, %32 : vector<8x8x8xf32>
    %34 = arith.truncf %33 : vector<8x8x8xf32> to vector<8x8x8xbf16>
    %35 = arith.truncf %20 : vector<8x8x32xf32> to vector<8x8x32xbf16>
    "tpu.trace_start"() <{level = 10 : i32, message = "bqk,bkd->bqd"}> : () -> ()
    %cst_9 = arith.constant dense<0.000000e+00> : vector<8x8x32xf32>
    %36 = tpu.matmul %34, %35, %cst_9 {dimension_numbers = #tpu.dot_dimension_numbers<[2], [1], [1], [2], [0, 0, 0, 1, 1, 2], [0], [0]>} : vector<8x8x8xbf16>, vector<8x8x32xbf16>, vector<8x8x32xf32> -> vector<8x8x32xf32>
    "tpu.trace_stop"() : () -> ()
    %37 = vector.shape_cast %36 : vector<8x8x32xf32> to vector<1x8x8x32xf32>
    %38 = tpu.transpose %37, [0, 2, 1, 3] : vector<1x8x8x32xf32> -> vector<1x8x8x32xf32>
    %39 = vector.shape_cast %38 : vector<1x8x8x32xf32> to vector<8x256xf32>
    %40 = arith.truncf %39 : vector<8x256xf32> to vector<8x256xbf16>
    %c0_10 = arith.constant 0 : index
    %c0_11 = arith.constant 0 : index
    %41 = vector.load %arg4[%c0_10, %c0_11] : memref<256x256xbf16, #tpu.memory_space<vmem>>, vector<256x256xbf16>
    %cst_12 = arith.constant dense<0.000000e+00> : vector<8x256xf32>
    %42 = tpu.matmul %40, %41, %cst_12 {dimension_numbers = #tpu.dot_dimension_numbers<[1], [0], [0], [1], [0, 0, 1, 1], [], []>} : vector<8x256xbf16>, vector<256x256xbf16>, vector<8x256xf32> -> vector<8x256xf32>
    %c0_13 = arith.constant 0 : index
    %c0_14 = arith.constant 0 : index
    %43 = vector.load %arg5[%c0_13, %c0_14] : memref<1x256xf32, #tpu.memory_space<vmem>>, vector<1x256xf32>
    %44 = vector.broadcast %43 : vector<1x256xf32> to vector<8x256xf32>
    %45 = arith.addf %42, %44 : vector<8x256xf32>
    %46 = arith.addf %45, %0 : vector<8x256xf32>
    %c0_15 = arith.constant 0 : index
    %c0_16 = arith.constant 0 : index
    %47 = vector.load %arg6[%c0_15, %c0_16] : memref<1x256xf32, #tpu.memory_space<vmem>>, vector<1x256xf32>
    %c0_17 = arith.constant 0 : index
    %c0_18 = arith.constant 0 : index
    %48 = vector.load %arg7[%c0_17, %c0_18] : memref<1x256xf32, #tpu.memory_space<vmem>>, vector<1x256xf32>
    %cst_19 = arith.constant dense<0.000000e+00> : vector<8xf32>
    %49 = vector.multi_reduction <add>, %46, %cst_19 [1] : vector<8x256xf32> to vector<8xf32>
    %50 = vector.shape_cast %49 : vector<8xf32> to vector<8x1xf32>
    %cst_20 = arith.constant 2.560000e+02 : f32
    %51 = vector.broadcast %cst_20 : f32 to vector<8x1xf32>
    %52 = arith.divf %50, %51 : vector<8x1xf32>
    %53 = vector.broadcast %52 : vector<8x1xf32> to vector<8x256xf32>
    %54 = arith.subf %46, %53 : vector<8x256xf32>
    %55 = arith.mulf %54, %54 : vector<8x256xf32>
    %cst_21 = arith.constant dense<0.000000e+00> : vector<8xf32>
    %56 = vector.multi_reduction <add>, %55, %cst_21 [1] : vector<8x256xf32> to vector<8xf32>
    %57 = vector.shape_cast %56 : vector<8xf32> to vector<8x1xf32>
    %cst_22 = arith.constant 2.560000e+02 : f32
    %58 = vector.broadcast %cst_22 : f32 to vector<8x1xf32>
    %59 = arith.divf %57, %58 : vector<8x1xf32>
    %60 = vector.broadcast %52 : vector<8x1xf32> to vector<8x256xf32>
    %61 = arith.subf %46, %60 : vector<8x256xf32>
    %cst_23 = arith.constant 9.99999974E-6 : f32
    %62 = vector.broadcast %cst_23 : f32 to vector<8x1xf32>
    %63 = arith.addf %59, %62 : vector<8x1xf32>
    %64 = math.rsqrt %63 : vector<8x1xf32>
    %65 = vector.broadcast %64 : vector<8x1xf32> to vector<8x256xf32>
    %66 = arith.mulf %61, %65 : vector<8x256xf32>
    %67 = vector.broadcast %47 : vector<1x256xf32> to vector<8x256xf32>
    %68 = arith.mulf %66, %67 : vector<8x256xf32>
    %69 = vector.broadcast %48 : vector<1x256xf32> to vector<8x256xf32>
    %70 = arith.addf %68, %69 : vector<8x256xf32>
    %71 = arith.truncf %70 : vector<8x256xf32> to vector<8x256xbf16>
    %c0_24 = arith.constant 0 : index
    %c0_25 = arith.constant 0 : index
    %72 = vector.load %arg10[%c0_24, %c0_25] : memref<256x1024xbf16, #tpu.memory_space<vmem>>, vector<256x1024xbf16>
    %cst_26 = arith.constant dense<0.000000e+00> : vector<8x1024xf32>
    %73 = tpu.matmul %71, %72, %cst_26 {dimension_numbers = #tpu.dot_dimension_numbers<[1], [0], [0], [1], [0, 0, 1, 1], [], []>} : vector<8x256xbf16>, vector<256x1024xbf16>, vector<8x1024xf32> -> vector<8x1024xf32>
    %c0_27 = arith.constant 0 : index
    %c0_28 = arith.constant 0 : index
    %74 = vector.load %arg11[%c0_27, %c0_28] : memref<1x1024xf32, #tpu.memory_space<vmem>>, vector<1x1024xf32>
    %75 = vector.broadcast %74 : vector<1x1024xf32> to vector<8x1024xf32>
    %76 = arith.addf %73, %75 : vector<8x1024xf32>
    %cst_29 = arith.constant 0.000000e+00 : f32
    %77 = vector.broadcast %cst_29 : f32 to vector<8x1024xf32>
    %78 = arith.maximumf %76, %77 : vector<8x1024xf32>
    %79 = arith.truncf %78 : vector<8x1024xf32> to vector<8x1024xbf16>
    %c0_30 = arith.constant 0 : index
    %c0_31 = arith.constant 0 : index
    %80 = vector.load %arg12[%c0_30, %c0_31] : memref<1024x256xbf16, #tpu.memory_space<vmem>>, vector<1024x256xbf16>
    %cst_32 = arith.constant dense<0.000000e+00> : vector<8x256xf32>
    %81 = tpu.matmul %79, %80, %cst_32 {dimension_numbers = #tpu.dot_dimension_numbers<[1], [0], [0], [1], [0, 0, 1, 1], [], []>} : vector<8x1024xbf16>, vector<1024x256xbf16>, vector<8x256xf32> -> vector<8x256xf32>
    %c0_33 = arith.constant 0 : index
    %c0_34 = arith.constant 0 : index
    %82 = vector.load %arg13[%c0_33, %c0_34] : memref<1x256xf32, #tpu.memory_space<vmem>>, vector<1x256xf32>
    %83 = vector.broadcast %82 : vector<1x256xf32> to vector<8x256xf32>
    %84 = arith.addf %81, %83 : vector<8x256xf32>
    %85 = arith.addf %84, %70 : vector<8x256xf32>
    %c0_35 = arith.constant 0 : index
    %c0_36 = arith.constant 0 : index
    %86 = vector.load %arg8[%c0_35, %c0_36] : memref<1x256xf32, #tpu.memory_space<vmem>>, vector<1x256xf32>
    %c0_37 = arith.constant 0 : index
    %c0_38 = arith.constant 0 : index
    %87 = vector.load %arg9[%c0_37, %c0_38] : memref<1x256xf32, #tpu.memory_space<vmem>>, vector<1x256xf32>
    %cst_39 = arith.constant dense<0.000000e+00> : vector<8xf32>
    %88 = vector.multi_reduction <add>, %85, %cst_39 [1] : vector<8x256xf32> to vector<8xf32>
    %89 = vector.shape_cast %88 : vector<8xf32> to vector<8x1xf32>
    %cst_40 = arith.constant 2.560000e+02 : f32
    %90 = vector.broadcast %cst_40 : f32 to vector<8x1xf32>
    %91 = arith.divf %89, %90 : vector<8x1xf32>
    %92 = vector.broadcast %91 : vector<8x1xf32> to vector<8x256xf32>
    %93 = arith.subf %85, %92 : vector<8x256xf32>
    %94 = arith.mulf %93, %93 : vector<8x256xf32>
    %cst_41 = arith.constant dense<0.000000e+00> : vector<8xf32>
    %95 = vector.multi_reduction <add>, %94, %cst_41 [1] : vector<8x256xf32> to vector<8xf32>
    %96 = vector.shape_cast %95 : vector<8xf32> to vector<8x1xf32>
    %cst_42 = arith.constant 2.560000e+02 : f32
    %97 = vector.broadcast %cst_42 : f32 to vector<8x1xf32>
    %98 = arith.divf %96, %97 : vector<8x1xf32>
    %99 = vector.broadcast %91 : vector<8x1xf32> to vector<8x256xf32>
    %100 = arith.subf %85, %99 : vector<8x256xf32>
    %cst_43 = arith.constant 9.99999974E-6 : f32
    %101 = vector.broadcast %cst_43 : f32 to vector<8x1xf32>
    %102 = arith.addf %98, %101 : vector<8x1xf32>
    %103 = math.rsqrt %102 : vector<8x1xf32>
    %104 = vector.broadcast %103 : vector<8x1xf32> to vector<8x256xf32>
    %105 = arith.mulf %100, %104 : vector<8x256xf32>
    %106 = vector.broadcast %86 : vector<1x256xf32> to vector<8x256xf32>
    %107 = arith.mulf %105, %106 : vector<8x256xf32>
    %108 = vector.broadcast %87 : vector<1x256xf32> to vector<8x256xf32>
    %109 = arith.addf %107, %108 : vector<8x256xf32>
    %c0_44 = arith.constant 0 : index
    %c0_45 = arith.constant 0 : index
    %110 = vector.load %arg14[%c0_44, %c0_45] : memref<8x256xf32, #tpu.memory_space<vmem>>, vector<8x256xf32>
    tpu.vector_store %arg14[%c0_44, %c0_45], %109 {strides = array<i32>} : memref<8x256xf32, #tpu.memory_space<vmem>>, vector<8x256xf32>,
    return
  }
  func.func @transform_0(%arg0: i32) -> (i32, i32) {
    %c0_i32 = arith.constant 0 : i32
    %c0_i32_0 = arith.constant 0 : i32
    return %arg0, %c0_i32 : i32, i32
  }
  func.func @transform_1(%arg0: i32) -> (i32, i32) {
    %c0_i32 = arith.constant 0 : i32
    %c0_i32_0 = arith.constant 0 : i32
    %c0_i32_1 = arith.constant 0 : i32
    return %c0_i32, %c0_i32_0 : i32, i32
  }
  func.func @transform_2(%arg0: i32) -> (i32, i32) {
    %c0_i32 = arith.constant 0 : i32
    %c0_i32_0 = arith.constant 0 : i32
    %c0_i32_1 = arith.constant 0 : i32
    return %c0_i32, %c0_i32_0 : i32, i32
  }
  func.func @transform_3(%arg0: i32) -> (i32, i32) {
    %c0_i32 = arith.constant 0 : i32
    %c0_i32_0 = arith.constant 0 : i32
    %c0_i32_1 = arith.constant 0 : i32
    return %c0_i32, %c0_i32_0 : i32, i32
  }
  func.func @transform_4(%arg0: i32) -> (i32, i32) {
    %c0_i32 = arith.constant 0 : i32
    %c0_i32_0 = arith.constant 0 : i32
    %c0_i32_1 = arith.constant 0 : i32
    return %c0_i32, %c0_i32_0 : i32, i32
  }
  func.func @transform_5(%arg0: i32) -> (i32, i32) {
    %c0_i32 = arith.constant 0 : i32
    %c0_i32_0 = arith.constant 0 : i32
    %c0_i32_1 = arith.constant 0 : i32
    return %c0_i32, %c0_i32_0 : i32, i32
  }
  func.func @transform_6(%arg0: i32) -> (i32, i32) {
    %c0_i32 = arith.constant 0 : i32
    %c0_i32_0 = arith.constant 0 : i32
    %c0_i32_1 = arith.constant 0 : i32
    return %c0_i32, %c0_i32_0 : i32, i32
  }
  func.func @transform_7(%arg0: i32) -> (i32, i32) {
    %c0_i32 = arith.constant 0 : i32
    %c0_i32_0 = arith.constant 0 : i32
    %c0_i32_1 = arith.constant 0 : i32
    return %c0_i32, %c0_i32_0 : i32, i32
  }
  func.func @transform_8(%arg0: i32) -> (i32, i32) {
    %c0_i32 = arith.constant 0 : i32
    %c0_i32_0 = arith.constant 0 : i32
    %c0_i32_1 = arith.constant 0 : i32
    return %c0_i32, %c0_i32_0 : i32, i32
  }
  func.func @transform_9(%arg0: i32) -> (i32, i32) {
    %c0_i32 = arith.constant 0 : i32
    %c0_i32_0 = arith.constant 0 : i32
    %c0_i32_1 = arith.constant 0 : i32
    return %c0_i32, %c0_i32_0 : i32, i32
  }
  func.func @transform_10(%arg0: i32) -> (i32, i32) {
    %c0_i32 = arith.constant 0 : i32
    %c0_i32_0 = arith.constant 0 : i32
    %c0_i32_1 = arith.constant 0 : i32
    return %c0_i32, %c0_i32_0 : i32, i32
  }
  func.func @transform_11(%arg0: i32) -> (i32, i32) {
    %c0_i32 = arith.constant 0 : i32
    %c0_i32_0 = arith.constant 0 : i32
    %c0_i32_1 = arith.constant 0 : i32
    return %c0_i32, %c0_i32_0 : i32, i32
  }
  func.func @transform_12(%arg0: i32) -> (i32, i32) {
    %c0_i32 = arith.constant 0 : i32
    %c0_i32_0 = arith.constant 0 : i32
    %c0_i32_1 = arith.constant 0 : i32
    return %c0_i32, %c0_i32_0 : i32, i32
  }
  func.func @transform_13(%arg0: i32) -> (i32, i32) {
    %c0_i32 = arith.constant 0 : i32
    %c0_i32_0 = arith.constant 0 : i32
    return %arg0, %c0_i32 : i32, i32
  }
}

</mosaic_0001>

<bundles_post_ra>
// kernel: tpu_custom_call.1
= control target key start
LH: loop header
LB: loop body
LE: loop exit
PB: predicated region body
PF: predicated region fallthrough
CT: control target
= control target key end

     0   :  { %s7977_s0 = inlined_call_operand.hbm [shape: f32[16,256], index: 0, kind: input, shape index: {}]   ;;  %s7978_s1 = inlined_call_operand.hbm [shape: bf16[256,768], index: 1, kind: input, shape index: {}]   ;;  %s7979_s2 = inlined_call_operand.hbm [shape: f32[1,768], index: 2, kind: input, shape index: {}]   ;;  %s7980_s3 = inlined_call_operand.hbm [shape: bf16[256,256], index: 3, kind: input, shape index: {}]   ;;  %s7981_s4 = inlined_call_operand.vmem [shape: f32[1,256], index: 4, kind: input, shape index: {}]   ;;  %s7982_s5 = inlined_call_operand.vmem [shape: f32[1,256], index: 5, kind: input, shape index: {}]   ;;  %s7983_s6 = inlined_call_operand.vmem [shape: f32[1,256], index: 6, kind: input, shape index: {}]   ;;  %s7984_s7 = inlined_call_operand.vmem [shape: f32[1,256], index: 7, kind: input, shape index: {}]   ;;  %s7985_s8 = inlined_call_operand.hbm [shape: f32[1,256], index: 8, kind: input, shape index: {}]   ;;  %s7986_s9 = inlined_call_operand.hbm [shape: bf16[256,1024], index: 9, kind: input, shape index: {}]   ;;  %s7987_s10 = inlined_call_operand.vmem [shape: f32[1,1024], index: 10, kind: input, shape index: {}]   ;;  %s7988_s11 = inlined_call_operand.hbm [shape: bf16[1024,256], index: 11, kind: input, shape index: {}]   ;;  %s7989_s12 = inlined_call_operand.vmem [shape: f32[1,256], index: 12, kind: input, shape index: {}]   ;;  %s7990_s13 = inlined_call_operand.hbm [shape: f32[16,256], index: 13, kind: output, shape index: {}]  }
   0x1   :  { %7998 = sst [smem:[#allocation21_spill]] %s7978_s1 }
   0x2   :  { %7999 = sst [smem:[#allocation22_spill]] %s7979_s2 }
   0x3   :  { %8000 = sst [smem:[#allocation23_spill]] %s7980_s3 }
   0x4   :  { %8001 = sst [smem:[#allocation24_spill]] %s7985_s8 }
   0x5   :  { %8002 = sst [smem:[#allocation25_spill]] %s7986_s9 }
   0x6   :  { %8003 = sst [smem:[#allocation26_spill]] %s7988_s11 }
   0x7   :  { %8004 = sst [smem:[#allocation27_spill]] %s7990_s13 }
   0x8   :  { %18 = vsyncpa [#allocation3], 0 }
   0x9   :  { %20 = vsyncpa [#allocation3 + $0x1], 0 }
   0xa   :  { %21 = vsyncpa [#allocation6], 0 }
   0xb   :  { %22 = vsyncpa [#allocation9], 0 }
   0xc   :  { %23 = vsyncpa [#allocation12], 0 }
   0xd   :  { %24 = vsyncpa [#allocation4], 0 }
   0xe   :  { %26 = vsyncpa [#allocation4 + $0x1], 0  ;;  %s7241_s25 = smov 0   ;;  %s7243_s26 = smov 0  }
   0xf   :  { %s7245_s27 = smov 0   ;;  %s7247_s28 = smov 0  }
  0x10 LB: > { %s7150_s29 = smov [#allocation5]   ;;  %s7262_s14 = sadd.s32 4294967295, %s7148_s28   ;;  %s7148_s28 = sphi %s7247_s28, %s8039_s28   ;;  %s7144_s27 = sphi %s7245_s27, %s8038_s27   ;;  %s7140_s26 = sphi %s7243_s26, %s8037_s26   ;;  %s7136_s25 = sphi %s7241_s25, %s8036_s25  }
  0x11   : > { %s353_s30 = sshll.u32 %s7150_s29, 4  ;;  %p5744_p0 = scmp.ge.s32.totalorder %s7148_s28, 1  ;;  %s354_s30 = int_to_ptr.vmem [resolvable:$true] %s353_s30 }
  0x12   : > { %p7994_p1 = scmp.eq.s32.totalorder %s7262_s14, 0  ;;  %p341_p2 = scmp.lt.s32.totalorder %s7148_s28, 3 }
  0x13   : > { %s7151_s16 = smov [#allocation8]   ;;  %s7152_s19 = smov [#allocation11]  }
  0x14   : > { %p7267_p3 = pnand %p5744_p0, %p341_p2  ;;  %s377_s17 = sshll.u32 %s7151_s16, 4  ;;  %s7280_s17 = int_to_ptr.vmem [resolvable:$true] %s377_s17 }
  0x15   : > { %s7282_s20 = sshll.u32 %s7152_s19, 4  ;;  %s6899_s22 = scalar_lea.vmem %s354_s30, 12288  ;;  %s414_s20 = int_to_ptr.vmem [resolvable:$true] %s7282_s20 }
  0x16   : > { %s8005_s15 = scalar_select %p7267_p3, 1, 0 }
  0x17   : > { %p6359_p5 = pneg %p7267_p3  ;;  %p6900_p8 = scmp.ne.s32.totalorder %s354_s30, %s6899_s22 }
  0x18   : > { %p6907_p11 = scmp.lt.s32.totalorder %s354_s30, %s354_s30  ;;  %p6908_p12 = scmp.lt.s32.totalorder %s6899_s22, %s6899_s22 }
  0x19   : > { %p7276_p6 = pnand %p6359_p5, %p7994_p1 }
  0x1a   : > { %p6909_p13 = por %p6908_p12, %p6907_p11 }
  0x1b   : > { %p7286_p7 = pneg %p7276_p6 }
  0x1d   : > { %p6902_p9 = pnand %p6900_p8, %p7286_p7 }
  0x1f   : > { %p6903_p10 = pneg %p6902_p9 }
  0x21   : > { %p6910_p0 = pnand %p6909_p13, %p6903_p10 }
  0x23   : > { %6913 = shalt.err (!%p6910_p0)
}
  0x24   : > { %s7153_s23 = smov 384   ;;  %s7154_s24 = smov 24  }
  0x25   : > { %s8008_s1 = sld [smem:[#allocation21_spill]]  ;;  %s6925_s19 = scalar_lea.vmem %s7280_s17, 4096 }
  0x26   : > { %p6926_p2 = scmp.ne.s32.totalorder %s7280_s17, %s6925_s19  ;;  %p6933_p9 = scmp.lt.s32.totalorder %s7280_s17, %s7280_s17 }
  0x27   : > { %p6934_p10 = scmp.lt.s32.totalorder %s6925_s19, %s6925_s19 }
  0x28   : > { %p6928_p5 = pnand %p6926_p2, %p7286_p7 }
  0x29   : > { %p6935_p11 = por %p6934_p10, %p6933_p9 }
  0x2a   : > { %p6929_p8 = pneg %p6928_p5 }
  0x2b   : > { %6362 = dma.hbm_to_vmem [thread:$0]  (!%p7276_p6), %s8008_s1, 12288, %s354_s30, [#allocation6], %s7153_s23, %s7153_s23, %s7154_s24  }
  0x2c   : > { %p6936_p12 = pnand %p6935_p11, %p6929_p8 }
  0x2e   : > { %6939 = shalt.err (!%p6936_p12)
}
  0x2f   : > { %s7992_s22 = smov 128   ;;  %s7993_s13 = smov 8  }
  0x30   : > { %s8009_s3 = sld [smem:[#allocation23_spill]]  ;;  %s6951_s24 = scalar_lea.vmem %s414_s20, 16384 }
  0x31   : > { %p6952_p13 = scmp.ne.s32.totalorder %s414_s20, %s6951_s24  ;;  %p6959_p5 = scmp.lt.s32.totalorder %s414_s20, %s414_s20 }
  0x32   : > { %p6960_p8 = scmp.lt.s32.totalorder %s6951_s24, %s6951_s24 }
  0x33   : > { %p6954_p0 = pnand %p6952_p13, %p7286_p7 }
  0x34   : > { %p6961_p9 = por %p6960_p8, %p6959_p5 }
  0x35   : > { %p6955_p2 = pneg %p6954_p0 }
  0x36   : > { %6368 = dma.hbm_to_vmem [thread:$0]  (!%p7276_p6), %s8009_s3, 4096, %s7280_s17, [#allocation9], %s7992_s22, %s7992_s22, %s7993_s13  }
  0x37   : > { %p6962_p10 = pnand %p6961_p9, %p6955_p2 }
  0x39   : > { %6965 = shalt.err (!%p6962_p10)
}
  0x3a   : > { %s7157_s29 = smov 512   ;;  %s7158_s16 = smov 32  }
  0x3b   : > { %s8010_s9 = sld [smem:[#allocation25_spill]]  ;;  %s7159_s17 = smov [#allocation7]  }
  0x3c   : > { %s367_s30 = sshll.u32 %s7159_s17, 4  ;;  %s7160_s23 = smov [#allocation10]   ;;  %s368_s30 = int_to_ptr.vmem [resolvable:$true] %s367_s30 }
  0x3d   : > { %s403_s22 = sshll.u32 %s7160_s23, 4  ;;  %s6977_s13 = scalar_lea.vmem %s368_s30, 96  ;;  %s404_s22 = int_to_ptr.vmem [resolvable:$true] %s403_s22 }
  0x3e   : > { %p6978_p11 = scmp.ne.s32.totalorder %s368_s30, %s6977_s13  ;;  %p6985_p0 = scmp.lt.s32.totalorder %s368_s30, %s368_s30 }
  0x3f   : > { %p6986_p2 = scmp.lt.s32.totalorder %s6977_s13, %s6977_s13 }
  0x40   : > { %p6980_p12 = pnand %p6978_p11, %p7286_p7 }
  0x41   : > { %6374 = dma.hbm_to_vmem [thread:$0]  (!%p7276_p6), %s8010_s9, 16384, %s414_s20, [#allocation12], %s7157_s29, %s7157_s29, %s7158_s16  }
  0x42   : > { %p6981_p13 = pneg %p6980_p12  ;;  %p6987_p5 = por %p6986_p2, %p6985_p0 }
  0x44   : > { %p6988_p8 = pnand %p6987_p5, %p6981_p13 }
  0x46   : > { %6991 = shalt.err (!%p6988_p8)
}
  0x47   : > { %s8011_s2 = sld [smem:[#allocation22_spill]]  ;;  %s7003_s20 = scalar_lea.vmem %s404_s22, 32 }
  0x48   : > { %p7004_p9 = scmp.ne.s32.totalorder %s404_s22, %s7003_s20  ;;  %p7011_p11 = scmp.lt.s32.totalorder %s404_s22, %s404_s22 }
  0x49   : > { %p7012_p12 = scmp.lt.s32.totalorder %s7003_s20, %s7003_s20 }
  0x4a   : > { %p7006_p10 = pnand %p7004_p9, %p7286_p7 }
  0x4b   : > { %p7013_p1 = por %p7012_p12, %p7011_p11 }
  0x4c   : > { %p7007_p4 = pneg %p7006_p10 }
  0x4d   : > { %6365 = dma.hbm_to_vmem [thread:$0]  (!%p7276_p6), %s8011_s2, 96, %s368_s30, [#allocation6]  }
  0x4e   : > { %p7014_p3 = pnand %p7013_p1, %p7007_p4 }
  0x50   : > { %7017 = shalt.err (!%p7014_p3)
}
  0x51   : > { %s8012_s8 = sld [smem:[#allocation24_spill]]  ;;  %s7161_s16 = smov [#allocation13]  }
  0x52   : > { %s429_s19 = sshll.u32 %s7161_s16, 4  ;;  %s430_s19 = int_to_ptr.vmem [resolvable:$true] %s429_s19 }
  0x53   : > { %s7029_s17 = scalar_lea.vmem %s430_s19, 16384  ;;  %p7037_p5 = scmp.lt.s32.totalorder %s430_s19, %s430_s19 }
  0x54   : > { %p7030_p13 = scmp.ne.s32.totalorder %s430_s19, %s7029_s17  ;;  %p7038_p8 = scmp.lt.s32.totalorder %s7029_s17, %s7029_s17 }
  0x56   : > { %p7032_p0 = pnand %p7030_p13, %p7286_p7  ;;  %p7039_p9 = por %p7038_p8, %p7037_p5 }
  0x57   : > { %6371 = dma.hbm_to_vmem [thread:$0]  (!%p7276_p6), %s8012_s8, 32, %s404_s22, [#allocation9]  }
  0x58   : > { %p7033_p2 = pneg %p7032_p0 }
  0x5a   : > { %p7040_p1 = pnand %p7039_p9, %p7033_p2 }
  0x5c   : > { %7043 = shalt.err (!%p7040_p1)
}
  0x5d   : > { %s8013_s30 = smov 8   ;;  %s8014_s23 = smov 128  }
  0x5e   : > { %s8015_s11 = sld [smem:[#allocation26_spill]]  ;;  %s5743_s18 = sadd.s32 4294967294, %s7148_s28  }
  0x5f   : > { %s7346_s21 = sadd.s32 1, %s7148_s28   ;;  %s39_s20 = sadd.s32 1, %s7144_s27 }
  0x60   : > { %s36_s1 = ssub.s32 %s7148_s28, %s7346_s21  ;;  %p46_p4 = scmp.ne.s32.totalorder %s7144_s27, %s7140_s26 }
  0x61   : > { %p37_p3 = scmp.eq.s32.totalorder %s36_s1, 0  ;;  %p47_p7 = scmp.eq.s32.totalorder %s7148_s28, 0 }
  0x62   : > { %p52_p10 = scmp.ne.s32.totalorder %s7140_s26, %s7136_s25  ;;  %p8018_p12 = scmp.eq.s32.totalorder %s7262_s14, 0 }
  0x63   : > { %s7357_s13 = scalar_select %p37_p3, %s7144_s27, %s39_s20  }
  0x64   : > { %6377 = dma.hbm_to_vmem [thread:$0]  (!%p7276_p6), %s8015_s11, 16384, %s430_s19, [#allocation12], %s8014_s23, %s8014_s23, %s8013_s30  }
  0x65   : > { %8016 = sst [smem:[#allocation20_spill]] %s7357_s13  ;;  %p7359_p11 = por %p47_p7, %p46_p4 }
  0x66   : > { %p7365_p6 = por %p8018_p12, %p52_p10  ;;  %p328_p13 = scmp.eq.s32.totalorder %s7262_s14, 1 }
  0x67   : > { %p334_p0 = scmp.eq.s32.totalorder %s5743_s18, 1  ;;  %p6392_p2 = scmp.lt.s32.totalorder %s7148_s28, 2 }
  0x68   : > { %s8019_s16 = scalar_select %p7365_p6, 1, 0 }
  0x69   : > { %s446_s19 = sand.u32 1, %s7144_s27   ;;  %p7372_p5 = por %p328_p13, %p46_p4 }
  0x6a   : > { %p7376_p8 = por %p334_p0, %p52_p10  ;;  %s5752_s23 = sshll.u32 %s446_s19, 4 }
  0x6b   : > { %s8020_s17 = scalar_select %p7372_p5, 1, 0 }
  0x6c   : > { %s8021_s30 = scalar_select %p7376_p8, 1, 0 }
  0x6d   : > { %s6201_s24 = sshll.u32 %s7148_s28, 8  ;;  %s450_s18 = scalar_lea.vmem [#allocation2], %s5752_s23 }
  0x6e   : > { %s7384_s20 = scalar_lea.hbm %s7977_s0, %s6201_s24  ;;  %s458_s2 = sshll.u32 %s450_s18, 4  ;;  %s459_s2 = int_to_ptr.vmem [resolvable:$true] %s458_s2 }
  0x6f   : > { %p7388_p9 = pnand %p6392_p2, %p7359_p11  ;;  %s447_s8 = scalar_lea.sflag [#allocation3], %s446_s19 }
  0x70   : > { %s7044_s9 = scalar_lea.hbm %s7384_s20, 256  ;;  %s7049_s1 = scalar_lea.hbm %s7977_s0, 512 }
  0x71   : > { %p7045_p1 = scmp.ne.s32.totalorder %s7384_s20, %s7044_s9  ;;  %p7046_p3 = pneg %p7388_p9 }
  0x72   : > { %p7050_p10 = scmp.lt.s32.totalorder %s7384_s20, %s7977_s0  ;;  %p7051_p11 = scmp.lt.s32.totalorder %s7049_s1, %s7044_s9 }
  0x73   : > { %p7047_p4 = pnand %p7046_p3, %p7045_p1 }
  0x74   : > { %p7052_p12 = por %p7051_p11, %p7050_p10 }
  0x75   : > { %p7048_p7 = pneg %p7047_p4 }
  0x77   : > { %p7053_p13 = pnand %p7052_p12, %p7048_p7 }
  0x79   : > { %7056 = shalt.err (!%p7053_p13)
}
  0x7a   : > { %s7057_s29 = scalar_lea.vmem %s459_s2, 256  ;;  %s7162_s19 = smov [#allocation2]  }
  0x7b   : > { %p7058_p0 = scmp.ne.s32.totalorder %s459_s2, %s7057_s29  ;;  %s7062_s11 = sshll.u32 %s7162_s19, 4  ;;  %s7063_s11 = int_to_ptr.vmem [resolvable:$false] %s7062_s11 }
  0x7c   : > { %s7064_s13 = scalar_lea.vmem %s7063_s11, 512  ;;  %p7065_p1 = scmp.lt.s32.totalorder %s459_s2, %s7063_s11 }
  0x7d   : > { %p7060_p2 = pnand %p7058_p0, %p7046_p3  ;;  %p7066_p4 = scmp.lt.s32.totalorder %s7064_s13, %s7057_s29 }
  0x7f   : > { %p7061_p8 = pneg %p7060_p2  ;;  %p7067_p5 = por %p7066_p4, %p7065_p1 }
  0x81   : > { %p7068_p6 = pnand %p7067_p5, %p7061_p8 }
  0x83   : > { %7071 = shalt.err (!%p7068_p6)
}
  0x84   : > { %6381 = dma.hbm_to_vmem [thread:$0]  (!%p7388_p9), %s7384_s20, 256, %s459_s2, %s447_s8  }
  0x85   : > { %p8023_p7 = scmp.ne.s32.totalorder %s8005_s15, 0 }
  0x86   : > { %s7409_s9 = sand.u32 (!%p8023_p7), 1, %s7140_s26   ;;  %p8024_p6 = scmp.ne.s32.totalorder (!%p8023_p7), %s8019_s16, 0 }
  0x87   : > { %467 = sbr.rel (%p8023_p7) target bundleno = 2801 (0xaf1), region = 72  ;;  %s5756_s24 = sshll.u32 (!%p8023_p7), %s7409_s9, 4 }
  0x88   : > { %s470_s11 = scalar_lea.sflag (!%p8023_p7), [#allocation3], %s7409_s9  ;;  %s7415_s13 = scalar_lea.vmem (!%p8023_p7), [#allocation2], %s5756_s24 }
  0x8c   : > { %7115 = dma.done.wait (%p8024_p6), %s470_s11, 256  }
  0x8d   : > { %7117 = vsyncadd (%p8024_p6), %s470_s11, 4294967040  ;;  %p8025_p5 = scmp.eq.s32.totalorder %s7262_s14, 0 }
  0x8f   : > { %7119 = dma.done.wait (%p8025_p5), [#allocation6], 12384   ;;  %p8026_p8 = pmov %p8025_p5 }
  0x90   : > { %p8027_p9 = pmov %p8025_p5 }
  0x91   : > { %7121 = vsyncadd (%p8026_p8), [#allocation6], 4294954912 }
  0x92   : > { %7123 = dma.done.wait (%p8027_p9), [#allocation9], 4128   ;;  %p8028_p3 = pmov %p8025_p5 }
  0x94   : > { %7125 = vsyncadd (%p8028_p3), [#allocation9], 4294963168  ;;  %p8029_p10 = pmov %p8028_p3 }
  0x95   : > { %p8030_p11 = pmov %p8028_p3 }
  0x96   : > { %7127 = dma.done.wait (%p8029_p10), [#allocation12], 32768  }
  0x97   : > { %7129 = vsyncadd (%p8030_p11), [#allocation12], 4294934528  ;;  %v6466_v0 = vld [vmem:[#allocation5 + $0x15c] ss:$24 sps:$4 sm:$0xff]   ;;  %v6470_v2 = vld [vmem:[#allocation5 + $0x158] ss:$24 sps:$4 sm:$0xff]  }
  0x98   : > { %v6468_v1 = vld [vmem:[#allocation5 + $0x154] ss:$24 sps:$4 sm:$0xff]   ;;  %1194 = vmatprep.subr.bf16.mxu1 %v6466_v0  ;;  %v6471_v3 = vld [vmem:[#allocation5 + $0x150] ss:$24 sps:$4 sm:$0xff]   ;;  %v6474_v5 = vld [vmem:[#allocation5 + $0x124] ss:$24 sps:$4 sm:$0xff]  }
  0x99   : > { %1153 = vmatprep.subr.bf16.mxu0 %v6468_v1  ;;  %v6472_v4 = vld [vmem:[#allocation5 + $0x12c] ss:$24 sps:$4 sm:$0xff]   ;;  %1195 = vmatpush1.bf16.msra.mxu1 %v6470_v2  ;;  %v6476_v6 = vld [vmem:[#allocation5 + $0x128] ss:$24 sps:$4 sm:$0xff]   ;;  %v6478_v8 = vld [vmem:[#allocation5 + $0xfc] ss:$24 sps:$4 sm:$0xff]  }
  0x9a   : > { %1154 = vmatpush1.bf16.msra.mxu0 %v6471_v3  ;;  %1196 = vmatprep.subr.bf16.mxu1 %v6472_v4  ;;  %v6477_v7 = vld [vmem:[#allocation5 + $0x120] ss:$24 sps:$4 sm:$0xff]   ;;  %v6480_v9 = vld [vmem:[#allocation5 + $0xf4] ss:$24 sps:$4 sm:$0xff]   ;;  %v6483_v11 = vld [vmem:[#allocation5 + $0xf0] ss:$24 sps:$4 sm:$0xff]   ;;  %v643_v4 = vlaneseq }
  0x9b   : > { %1155 = vmatprep.subr.bf16.mxu0 %v6474_v5  ;;  %v6482_v10 = vld [vmem:[#allocation5 + $0xf8] ss:$24 sps:$4 sm:$0xff]   ;;  %v6484_v12 = vld [vmem:[#allocation5 + $0xcc] ss:$24 sps:$4 sm:$0xff]   ;;  %v6488_v14 = vld [vmem:[#allocation5 + $0xc8] ss:$24 sps:$4 sm:$0xff]  }
  0x9c   : > { %v6486_v13 = vld [vmem:[#allocation5 + $0xc4] ss:$24 sps:$4 sm:$0xff]   ;;  %v6489_v15 = vld [vmem:[#allocation5 + $0xc0] ss:$24 sps:$4 sm:$0xff]   ;;  %v6492_v17 = vld [vmem:[#allocation5 + $0x94] ss:$24 sps:$4 sm:$0xff]  }
  0x9d   : > { %1197 = vmatpush1.bf16.msra.mxu1 %v6476_v6  ;;  %v6490_v16 = vld [vmem:[#allocation5 + $0x9c] ss:$24 sps:$4 sm:$0xff]   ;;  %v6494_v18 = vld [vmem:[#allocation5 + $0x98] ss:$24 sps:$4 sm:$0xff]   ;;  %v6496_v20 = vld [vmem:[#allocation5 + $0x6c] ss:$24 sps:$4 sm:$0xff]  }
  0x9e   : > { %1156 = vmatpush1.bf16.msra.mxu0 %v6477_v7  ;;  %1198 = vmatprep.subr.bf16.mxu1 %v6478_v8  ;;  %v6495_v19 = vld [vmem:[#allocation5 + $0x90] ss:$24 sps:$4 sm:$0xff]   ;;  %v6498_v21 = vld [vmem:[#allocation5 + $0x64] ss:$24 sps:$4 sm:$0xff]   ;;  %v6501_v23 = vld [vmem:[#allocation5 + $0x60] ss:$24 sps:$4 sm:$0xff]  }
  0x9f   : > { %1157 = vmatprep.subr.bf16.mxu0 %v6480_v9  ;;  %v6500_v22 = vld [vmem:[#allocation5 + $0x68] ss:$24 sps:$4 sm:$0xff]   ;;  %v6502_v24 = vld [vmem:[#allocation5 + $0x3c] ss:$24 sps:$4 sm:$0xff]   ;;  %v6506_v26 = vld [vmem:[#allocation5 + $0x38] ss:$24 sps:$4 sm:$0xff]  }
  0xa0   : > { %v6504_v25 = vld [vmem:[#allocation5 + $0x34] ss:$24 sps:$4 sm:$0xff]   ;;  %v6507_v27 = vld [vmem:[#allocation5 + $0x30] ss:$24 sps:$4 sm:$0xff]   ;;  %v6510_v29 = vld [vmem:[#allocation5 + $0x4] ss:$24 sps:$4 sm:$0xff]  }
  0xa1   : > { %1199 = vmatpush1.bf16.msra.mxu1 %v6482_v10  ;;  %v6508_v28 = vld [vmem:[#allocation5 + $0xc] ss:$24 sps:$4 sm:$0xff]   ;;  %v6512_v30 = vld [vmem:[#allocation5 + $0x8] ss:$24 sps:$4 sm:$0xff]   ;;  %v6514_v32 = vld [vmem:[#allocation5 + $0x2dc] ss:$24 sps:$4 sm:$0xff]  }
  0xa2   : > { %1158 = vmatpush1.bf16.msra.mxu0 %v6483_v11  ;;  %1200 = vmatprep.subr.bf16.mxu1 %v6484_v12  ;;  %v6513_v31 = vld [vmem:[#allocation5] ss:$24 sps:$4 sm:$0xff]   ;;  %v6516_v33 = vld [vmem:[#allocation5 + $0x2d4] ss:$24 sps:$4 sm:$0xff]   ;;  %v6519_v35 = vld [vmem:[#allocation5 + $0x2d0] ss:$24 sps:$4 sm:$0xff]  }
  0xa3   : > { %1159 = vmatprep.subr.bf16.mxu0 %v6486_v13  ;;  %v6518_v34 = vld [vmem:[#allocation5 + $0x2d8] ss:$24 sps:$4 sm:$0xff]   ;;  %v6520_v36 = vld [vmem:[#allocation5 + $0x2ac] ss:$24 sps:$4 sm:$0xff]   ;;  %v6524_v38 = vld [vmem:[#allocation5 + $0x2a8] ss:$24 sps:$4 sm:$0xff]  }
  0xa4   : > { %v6522_v37 = vld [vmem:[#allocation5 + $0x2a4] ss:$24 sps:$4 sm:$0xff]   ;;  %v6525_v39 = vld [vmem:[#allocation5 + $0x2a0] ss:$24 sps:$4 sm:$0xff]   ;;  %v6528_v41 = vld [vmem:[#allocation5 + $0x274] ss:$24 sps:$4 sm:$0xff]  }
  0xa5   : > { %1201 = vmatpush1.bf16.msra.mxu1 %v6488_v14  ;;  %v6526_v40 = vld [vmem:[#allocation5 + $0x27c] ss:$24 sps:$4 sm:$0xff]   ;;  %v6530_v42 = vld [vmem:[#allocation5 + $0x278] ss:$24 sps:$4 sm:$0xff]   ;;  %v6532_v44 = vld [vmem:[#allocation5 + $0x24c] ss:$24 sps:$4 sm:$0xff]  }
  0xa6   : > { %1160 = vmatpush1.bf16.msra.mxu0 %v6489_v15  ;;  %1202 = vmatprep.subr.bf16.mxu1 %v6490_v16  ;;  %v6531_v43 = vld [vmem:[#allocation5 + $0x270] ss:$24 sps:$4 sm:$0xff]   ;;  %v6534_v45 = vld [vmem:[#allocation5 + $0x244] ss:$24 sps:$4 sm:$0xff]   ;;  %v6537_v47 = vld [vmem:[#allocation5 + $0x240] ss:$24 sps:$4 sm:$0xff]  }
  0xa7   : > { %1161 = vmatprep.subr.bf16.mxu0 %v6492_v17  ;;  %v6536_v46 = vld [vmem:[#allocation5 + $0x248] ss:$24 sps:$4 sm:$0xff]   ;;  %v6538_v49 = vld [vmem:[#allocation5 + $0x21c] ss:$24 sps:$4 sm:$0xff]   ;;  %v6542_v52 = vld [vmem:[#allocation5 + $0x218] ss:$24 sps:$4 sm:$0xff]  }
  0xa8   : > { %v542_v48 = vld [vmem:[%s7415_s13 + $0x8] sm:$0xff]  ;;  %v541_v2 = vld [vmem:[%s7415_s13] sm:$0xff]  ;;  %v7439_v5 = vshrl.u32 %v643_v4, 7  ;;  %s7163_s2 = smov 32   ;;  %s7164_s3 = smov 96   ;;  %vm7167_vm0 = vmmov 0  }
  0xa9   : > { %1203 = vmatpush1.bf16.msra.mxu1 %v6494_v18  ;;  %v6540_v50 = vld [vmem:[#allocation5 + $0x214] ss:$24 sps:$4 sm:$0xff]   ;;  %v544_v51 = vpack.c.bf16 %v542_v48, %v542_v48  ;;  %v6543_v53 = vld [vmem:[#allocation5 + $0x210] ss:$24 sps:$4 sm:$0xff]   ;;  %v6546_v55 = vld [vmem:[#allocation5 + $0x1e4] ss:$24 sps:$4 sm:$0xff]   ;;  %v7435_v3 = vpack.c.bf16 %v541_v2, %v541_v2 }
  0xaa   : > { %1162 = vmatpush1.bf16.msra.mxu0 %v6495_v19  ;;  %1204 = vmatprep.subr.bf16.mxu1 %v6496_v20  ;;  %v6544_v54 = vld [vmem:[#allocation5 + $0x1ec] ss:$24 sps:$4 sm:$0xff]   ;;  %v6548_v56 = vld [vmem:[#allocation5 + $0x1e8] ss:$24 sps:$4 sm:$0xff]   ;;  %v6550_v58 = vld [vmem:[#allocation5 + $0x1bc] ss:$24 sps:$4 sm:$0xff]  }
  0xab   : > { %1163 = vmatprep.subr.bf16.mxu0 %v6498_v21  ;;  %1226 = vmatprep.mubr.bf16.mxu1 %v544_v51  ;;  %v6549_v57 = vld [vmem:[#allocation5 + $0x1e0] ss:$24 sps:$4 sm:$0xff]   ;;  %v6552_v59 = vld [vmem:[#allocation5 + $0x1b4] ss:$24 sps:$4 sm:$0xff]   ;;  %v6555_v61 = vld [vmem:[#allocation5 + $0x1b0] ss:$24 sps:$4 sm:$0xff]  }
  0xac   : > { %1185 = vmatprep.mubr.bf16.mxu0 %v544_v51  ;;  %v6554_v60 = vld [vmem:[#allocation5 + $0x1b8] ss:$24 sps:$4 sm:$0xff]   ;;  %v6556_v62 = vld [vmem:[#allocation5 + $0x18c] ss:$24 sps:$4 sm:$0xff]   ;;  %v6560_v0 = vld [vmem:[#allocation5 + $0x188] ss:$24 sps:$4 sm:$0xff]  }
  0xad   : > { %1205 = vmatpush1.bf16.msra.mxu1 %v6500_v22  ;;  %v6558_v63 = vld [vmem:[#allocation5 + $0x184] ss:$24 sps:$4 sm:$0xff]   ;;  %v6561_v1 = vld [vmem:[#allocation5 + $0x180] ss:$24 sps:$4 sm:$0xff]   ;;  %v653_v6 = vsub.s32 2, %v7439_v5  ;;  %v7445_v8 = vsub.s32 0, %v7439_v5 }
  0xae   : > { %1164 = vmatpush1.bf16.msra.mxu0 %v6501_v23  ;;  %1206 = vmatprep.subr.bf16.mxu1 %v6502_v24  ;;  %v7442_v7 = vld [vmem:[#allocation7] sm:$0x3f]  ;;  %v657_v19 = vsub.s32 3, %v7439_v5  ;;  %s7165_s8 = smov 64   ;;  %v7469_v23 = vsub.s32 1, %v7439_v5  ;;  %vm2176_vm1 = vcmask 261120  }
  0xaf   : > { %1165 = vmatprep.subr.bf16.mxu0 %v6504_v25  ;;  %v654_v9 = vrot.slane %v7442_v7, %v653_v6  ;;  %v646_v10 = vrot.slane %v7442_v7, %v7445_v8  ;;  %v6592_v48 = vld [vmem:[#allocation5 + $0x280] ss:$24 sps:$4 sm:$0xff]   ;;  %vm2545_vm2 = vcmask 64512   ;;  %vm2653_vm3 = vcmask 1043456   ;;  %s8031_s22 = sld [smem:[#allocation27_spill]]  ;;  %s5602_s23 = scalar_lea.sflag [#allocation4], %s7409_s9 }
  0xb0   : > { %v658_v22 = vrot.slane %v7442_v7, %v657_v19  ;;  %v650_v25 = vrot.slane %v7442_v7, %v7469_v23  ;;  %vm3316_vm4 = vcmask 523264   ;;  %vm3318_vm5 = vcmask 785408   ;;  %p8032_p13 = scmp.ne.s32.totalorder %s8020_s17, 0 }
  0xb1   : > { %1207 = vmatpush1.bf16.msra.mxu1 %v6506_v26 }
  0xb2   : > { %1166 = vmatpush1.bf16.msra.mxu0 %v6507_v27  ;;  %1208 = vmatprep.subr.bf16.mxu1 %v6508_v28  ;;  %v7166_v27 = vmov 0.0   ;;  %v6562_v28 = vld [vmem:[#allocation5 + $0x160] ss:$24 sps:$4 sm:$0xff]  }
  0xb3   : > { %1167 = vmatprep.subr.bf16.mxu0 %v6510_v29  ;;  %v6564_v29 = vld [vmem:[#allocation5 + $0x164] ss:$24 sps:$4 sm:$0xff]  }
  0xb5   : > { %1209 = vmatpush1.bf16.msra.mxu1 %v6512_v30  ;;  %v6567_v30 = vld [vmem:[#allocation5 + $0x134] ss:$24 sps:$4 sm:$0xff]  }
  0xb6   : > { %1168 = vmatpush1.bf16.msra.mxu0 %v6513_v31  ;;  %1210 = vmatprep.subr.bf16.mxu1 %v6514_v32  ;;  %v6565_v31 = vld [vmem:[#allocation5 + $0x130] ss:$24 sps:$4 sm:$0xff]   ;;  %v6568_v32 = vld [vmem:[#allocation5 + $0x100] ss:$24 sps:$4 sm:$0xff]  }
  0xb7   : > { %1169 = vmatprep.subr.bf16.mxu0 %v6516_v33  ;;  %v6570_v33 = vld [vmem:[#allocation5 + $0x104] ss:$24 sps:$4 sm:$0xff]  }
  0xb9   : > { %1211 = vmatpush2.bf16.msra.mxu1 %v6518_v34  ;;  %v6573_v34 = vld [vmem:[#allocation5 + $0xd4] ss:$24 sps:$4 sm:$0xff]  }
  0xba   : > { %1170 = vmatpush2.bf16.msra.mxu0 %v6519_v35  ;;  %1212 = vmatprep.subr.bf16.mxu1 %v6520_v36  ;;  %v6571_v35 = vld [vmem:[#allocation5 + $0xd0] ss:$24 sps:$4 sm:$0xff]   ;;  %v6574_v36 = vld [vmem:[#allocation5 + $0xa0] ss:$24 sps:$4 sm:$0xff]  }
  0xbb   : > { %1171 = vmatprep.subr.bf16.mxu0 %v6522_v37  ;;  %v6576_v37 = vld [vmem:[#allocation5 + $0xa4] ss:$24 sps:$4 sm:$0xff]  }
  0xbd   : > { %1213 = vmatpush2.bf16.msra.mxu1 %v6524_v38  ;;  %v6579_v38 = vld [vmem:[#allocation5 + $0x74] ss:$24 sps:$4 sm:$0xff]  }
  0xbe   : > { %1172 = vmatpush2.bf16.msra.mxu0 %v6525_v39  ;;  %1214 = vmatprep.subr.bf16.mxu1 %v6526_v40  ;;  %v6577_v39 = vld [vmem:[#allocation5 + $0x70] ss:$24 sps:$4 sm:$0xff]   ;;  %v6580_v40 = vld [vmem:[#allocation5 + $0x40] ss:$24 sps:$4 sm:$0xff]  }
  0xbf   : > { %1173 = vmatprep.subr.bf16.mxu0 %v6528_v41  ;;  %v6582_v41 = vld [vmem:[#allocation5 + $0x44] ss:$24 sps:$4 sm:$0xff]  }
  0xc1   : > { %1215 = vmatpush2.bf16.msra.mxu1 %v6530_v42  ;;  %v6585_v42 = vld [vmem:[#allocation5 + $0x14] ss:$24 sps:$4 sm:$0xff]  }
  0xc2   : > { %1174 = vmatpush2.bf16.msra.mxu0 %v6531_v43  ;;  %1216 = vmatprep.subr.bf16.mxu1 %v6532_v44  ;;  %v6583_v43 = vld [vmem:[#allocation5 + $0x10] ss:$24 sps:$4 sm:$0xff]   ;;  %v6586_v44 = vld [vmem:[#allocation5 + $0x2e0] ss:$24 sps:$4 sm:$0xff]  }
  0xc3   : > { %1175 = vmatprep.subr.bf16.mxu0 %v6534_v45  ;;  %v6588_v45 = vld [vmem:[#allocation5 + $0x2e4] ss:$24 sps:$4 sm:$0xff]  }
  0xc5   : > { %1217 = vmatpush2.bf16.msra.mxu1 %v6536_v46  ;;  %v6591_v46 = vld [vmem:[#allocation5 + $0x2b4] ss:$24 sps:$4 sm:$0xff]  }
  0xc6   : > { %1176 = vmatpush2.bf16.msra.mxu0 %v6537_v47  ;;  %1218 = vmatprep.subr.bf16.mxu1 %v6538_v49  ;;  %v6589_v47 = vld [vmem:[#allocation5 + $0x2b0] ss:$24 sps:$4 sm:$0xff]   ;;  %v6594_v49 = vld [vmem:[#allocation5 + $0x284] ss:$24 sps:$4 sm:$0xff]  }
  0xc7   : > { %1177 = vmatprep.subr.bf16.mxu0 %v6540_v50  ;;  %v6597_v50 = vld [vmem:[#allocation5 + $0x254] ss:$24 sps:$4 sm:$0xff]  }
  0xc9   : > { %1219 = vmatpush2.bf16.msra.mxu1 %v6542_v52  ;;  %v6598_v52 = vld [vmem:[#allocation5 + $0x220] ss:$24 sps:$4 sm:$0xff]  }
  0xca   : > { %1178 = vmatpush2.bf16.msra.mxu0 %v6543_v53  ;;  %1220 = vmatprep.subr.bf16.mxu1 %v6544_v54  ;;  %v6600_v53 = vld [vmem:[#allocation5 + $0x224] ss:$24 sps:$4 sm:$0xff]   ;;  %v6603_v54 = vld [vmem:[#allocation5 + $0x1f4] ss:$24 sps:$4 sm:$0xff]  }
  0xcb   : > { %1179 = vmatprep.subr.bf16.mxu0 %v6546_v55  ;;  %v6601_v55 = vld [vmem:[#allocation5 + $0x1f0] ss:$24 sps:$4 sm:$0xff]  }
  0xcd   : > { %1221 = vmatpush2.bf16.msra.mxu1 %v6548_v56  ;;  %v6606_v56 = vld [vmem:[#allocation5 + $0x1c4] ss:$24 sps:$4 sm:$0xff]  }
  0xce   : > { %1180 = vmatpush2.bf16.msra.mxu0 %v6549_v57  ;;  %1222 = vmatprep.subr.bf16.mxu1 %v6550_v58  ;;  %v6604_v57 = vld [vmem:[#allocation5 + $0x1c0] ss:$24 sps:$4 sm:$0xff]   ;;  %v6609_v58 = vld [vmem:[#allocation5 + $0x194] ss:$24 sps:$4 sm:$0xff]  }
  0xcf   : > { %1181 = vmatprep.subr.bf16.mxu0 %v6552_v59  ;;  %v6607_v59 = vld [vmem:[#allocation5 + $0x190] ss:$24 sps:$4 sm:$0xff]  }
  0xd1   : > { %1223 = vmatpush2.bf16.msra.mxu1 %v6554_v60  ;;  %v7168_v60 = vmov 1983009808  }
  0xd2   : > { %1182 = vmatpush2.bf16.msra.mxu0 %v6555_v61  ;;  %1224 = vmatprep.subr.bf16.mxu1 %v6556_v62  ;;  %v1299_v61 = vunpack.c.l.s4 %v7168_v60 }
  0xd3   : > { %1183 = vmatprep.subr.bf16.mxu0 %v6558_v63 }
  0xd5   : > { %1225 = vmatpush2.bf16.msra.mxu1 %v6560_v0  ;;  %v1300_v0 = vunpack.c.0.s8 %v1299_v61 }
  0xd6   : > { %1184 = vmatpush2.bf16.msra.mxu0 %v6561_v1  ;;  %6235 = vmatprep.subr.bf16.mxu1 %v7166_v27  ;;  %v7169_v1 = vmov 1934713408  }
  0xd7   : > { %1235 = vmatprep.subr.bf16.mxu0 %v6564_v29  ;;  %v1363_v2 = vunpack.c.l.s4 %v7169_v1 }
  0xd8   : > { %1227 = vmatmul.mubr.bf16.vlgmr.msra.gmra.mxu1 %v7435_v3 }
  0xd9   : > { %1186 = vmatmul.mubr.bf16.vlgmr.msra.gmra.mxu0 %v7435_v3  ;;  %6237 = vmatprep.mubr.msk.bf16.mxu1 %vm7167_vm0, %v7166_v27 }
  0xda   : > { %1267 = vmatprep.mubr.bf16.mxu0 %v544_v51  ;;  %1236 = vmatpush1.bf16.msra.mxu0 %v6562_v28  ;;  %v6595_v51 = vld [vmem:[#allocation5 + $0x250] ss:$24 sps:$4 sm:$0xff]  }
  0xdb   : > { %1237 = vmatprep.subr.bf16.mxu0 %v6567_v30 }
  0xde   : > { %1238 = vmatpush1.bf16.msra.mxu0 %v6565_v31 }
  0xdf   : > { %1239 = vmatprep.subr.bf16.mxu0 %v6570_v33 }
  0xe2   : > { %1240 = vmatpush1.bf16.msra.mxu0 %v6568_v32 }
  0xe3   : > { %1241 = vmatprep.subr.bf16.mxu0 %v6573_v34 }
  0xe6   : > { %1242 = vmatpush1.bf16.msra.mxu0 %v6571_v35 }
  0xe7   : > { %1243 = vmatprep.subr.bf16.mxu0 %v6576_v37 }
  0xea   : > { %1244 = vmatpush1.bf16.msra.mxu0 %v6574_v36 }
  0xeb   : > { %1245 = vmatprep.subr.bf16.mxu0 %v6579_v38 }
  0xee   : > { %1246 = vmatpush1.bf16.msra.mxu0 %v6577_v39 }
  0xef   : > { %1247 = vmatprep.subr.bf16.mxu0 %v6582_v41 }
  0xf2   : > { %1248 = vmatpush1.bf16.msra.mxu0 %v6580_v40 }
  0xf3   : > { %1249 = vmatprep.subr.bf16.mxu0 %v6585_v42 }
  0xf6   : > { %1250 = vmatpush1.bf16.msra.mxu0 %v6583_v43 }
  0xf7   : > { %1251 = vmatprep.subr.bf16.mxu0 %v6588_v45 }
  0xfa   : > { %1252 = vmatpush2.bf16.msra.mxu0 %v6586_v44 }
  0xfb   : > { %1253 = vmatprep.subr.bf16.mxu0 %v6591_v46 }
  0xfe   : > { %1254 = vmatpush2.bf16.msra.mxu0 %v6589_v47 }
  0xff   : > { %1255 = vmatprep.subr.bf16.mxu0 %v6594_v49 }
 0x102   : > { %1256 = vmatpush2.bf16.msra.mxu0 %v6592_v48 }
 0x103   : > { %1257 = vmatprep.subr.bf16.mxu0 %v6597_v50 }
 0x106   : > { %1258 = vmatpush2.bf16.msra.mxu0 %v6595_v51 }
 0x107   : > { %1259 = vmatprep.subr.bf16.mxu0 %v6600_v53 }
 0x10a   : > { %1260 = vmatpush2.bf16.msra.mxu0 %v6598_v52 }
 0x10b   : > { %1261 = vmatprep.subr.bf16.mxu0 %v6603_v54 }
 0x10e   : > { %1262 = vmatpush2.bf16.msra.mxu0 %v6601_v55 }
 0x10f   : > { %1263 = vmatprep.subr.bf16.mxu0 %v6606_v56 }
 0x112   : > { %1264 = vmatpush2.bf16.msra.mxu0 %v6604_v57 }
 0x113   : > { %1265 = vmatprep.subr.bf16.mxu0 %v6609_v58 }
 0x116   : > { %1266 = vmatpush2.bf16.msra.mxu0 %v6607_v59 }
 0x119   : > { %1268 = vmatmul.mubr.bf16.vlgmr.msra.gmra.mxu0 %v7435_v3 }
 0x198   : > { %v1228_v11 = vpop.f32.mrf.mxu1 }
 0x199   : > { %v1187_v12 = vpop.f32.mrf.mxu0  ;;  %v7452_v13 = vadd.f32 %v1228_v11, %v654_v9 }
 0x19a   : > { %v1230_v14 = vpop.f32.mrf.mxu1  ;;  %v7454_v16 = vadd.f32 %v1187_v12, %v646_v10  ;;  %v7500_v12 = vsub.s32 %v1300_v0, %v7439_v5 }
 0x19b   : > { %v1189_v15 = vpop.f32.mrf.mxu0  ;;  %1583 = vrot.lane.b32.xlu1 %v7452_v13, %s7163_s2  ;;  %1577 = vrot.lane.b32.xlu0 %v7452_v13, %s7164_s3  ;;  %v7475_v24 = vadd.f32 %v1230_v14, %v658_v22  ;;  %v1364_v14 = vunpack.c.0.s8 %v1363_v2 }
 0x19c   : > { %v1232_v17 = vpop.f32.mrf.mxu1  ;;  %v7483_v26 = vadd.f32 %v1189_v15, %v650_v25 }
 0x19d   : > { %v1191_v18 = vpop.f32.mrf.mxu0 }
 0x19e   : > { %v1233_v20 = vpop.f32.mrf.mxu1 }
 0x19f   : > { %v1192_v21 = vpop.f32.mrf.mxu0  ;;  %1580 = vrot.lane.b32.xlu0 %v7452_v13, %s7165_s8  ;;  %1277 = vrot.lane.b32.xlu1 %v7454_v16, %s7164_s3 }
 0x1a3   : > { %1280 = vrot.lane.b32.xlu0 %v7454_v16, %s7165_s8  ;;  %1283 = vrot.lane.b32.xlu1 %v7454_v16, %s7163_s2 }
 0x1a7   : > { %1587 = vrot.lane.b32.xlu0 %v7475_v24, %s7164_s3  ;;  %1590 = vrot.lane.b32.xlu1 %v7475_v24, %s7165_s8 }
 0x1ab   : > { %1593 = vrot.lane.b32.xlu0 %v7475_v24, %s7163_s2  ;;  %1287 = vrot.lane.b32.xlu1 %v7483_v26, %s7164_s3 }
 0x1af   : > { %1290 = vrot.lane.b32.xlu0 %v7483_v26, %s7165_s8  ;;  %1293 = vrot.lane.b32.xlu1 %v7483_v26, %s7163_s2 }
 0x20d   : > { %v1584_v62 = vpop.permute.xlu1 %1583  ;;  %v1578_v63 = vpop.permute.xlu0 %1577 }
 0x20e   : > { %v1612_v15 = vcombine.low %v1578_v63, %v1584_v62  ;;  %v1613_v17 = vcombine.high %v1578_v63, %v1584_v62 }
 0x210   : > { %v1620_v30 = vrot.slane %v1612_v15, %v7500_v12  ;;  %v1627_v31 = vrot.slane %v1613_v17, %v7500_v12 }
 0x211   : > { %v1581_v4 = vpop.permute.xlu0 %1580  ;;  %v1278_v9 = vpop.permute.xlu1 %1277 }
 0x212   : > { %v1596_v10 = vcombine.low %v7452_v13, %v1581_v4  ;;  %v1597_v11 = vcombine.high %v7452_v13, %v1581_v4  ;;  %v7507_v13 = vsub.s32 %v1364_v14, %v7439_v5 }
 0x214   : > { %v1604_v20 = vrot.slane %v1596_v10, %v7500_v12  ;;  %v1611_v21 = vrot.slane %v1597_v11, %v7500_v12 }
 0x215   : > { %v1281_v3 = vpop.permute.xlu0 %1280  ;;  %v1284_v18 = vpop.permute.xlu1 %1283 }
 0x216   : > { %v1296_v22 = vcombine.low %v7454_v16, %v1281_v3  ;;  %v1297_v25 = vcombine.high %v7454_v16, %v1281_v3  ;;  %v1312_v28 = vcombine.low %v1278_v9, %v1284_v18  ;;  %v1313_v29 = vcombine.high %v1278_v9, %v1284_v18 }
 0x217   : > { %v1660_v36 = vcombine.low %v1604_v20, %v1620_v30  ;;  %v1661_v37 = vcombine.high %v1604_v20, %v1620_v30  ;;  %v1676_v16 = vcombine.low %v1611_v21, %v1627_v31  ;;  %v1677_v38 = vcombine.high %v1611_v21, %v1627_v31 }
 0x218   : > { %v1304_v32 = vrot.slane %v1296_v22, %v7500_v12  ;;  %v1311_v33 = vrot.slane %v1297_v25, %v7500_v12  ;;  %v1320_v34 = vrot.slane %v1312_v28, %v7500_v12  ;;  %v1327_v35 = vrot.slane %v1313_v29, %v7500_v12 }
 0x219   : > { %v1668_v47 = vrot.slane %v1660_v36, %v7507_v13  ;;  %v1675_v48 = vrot.slane %v1661_v37, %v7507_v13  ;;  %v1684_v49 = vrot.slane %v1676_v16, %v7507_v13  ;;  %v1691_v50 = vrot.slane %v1677_v38, %v7507_v13  ;;  %v1588_v55 = vpop.permute.xlu0 %1587  ;;  %v1591_v56 = vpop.permute.xlu1 %1590 }
 0x21a   : > { %v1360_v39 = vcombine.low %v1304_v32, %v1320_v34  ;;  %v1361_v40 = vcombine.high %v1304_v32, %v1320_v34  ;;  %v1376_v41 = vcombine.low %v1311_v33, %v1327_v35  ;;  %v1377_v42 = vcombine.high %v1311_v33, %v1327_v35 }
 0x21b   : > { %v5868_v57 = vcombine.low %v1668_v47, %v1675_v48  ;;  %v5870_v58 = vcombine.high %v1668_v47, %v1675_v48  ;;  %v5872_v59 = vcombine.low %v1684_v49, %v1691_v50  ;;  %v5874_v60 = vcombine.high %v1684_v49, %v1691_v50 }
 0x21c   : > { %v1368_v43 = vrot.slane %v1360_v39, %v7507_v13  ;;  %v1375_v44 = vrot.slane %v1361_v40, %v7507_v13  ;;  %v1384_v45 = vrot.slane %v1376_v41, %v7507_v13  ;;  %v1391_v46 = vrot.slane %v1377_v42, %v7507_v13 }
 0x21d   : > { %v1740_v1 = vrot.slane %v5868_v57, %v7500_v12  ;;  %v1756_v2 = vrot.slane %v5870_v58, %v7500_v12  ;;  %v1772_v4 = vrot.slane %v5872_v59, %v7500_v12  ;;  %v1788_v9 = vrot.slane %v5874_v60, %v7500_v12  ;;  %v1594_v10 = vpop.permute.xlu0 %1593  ;;  %v1288_v11 = vpop.permute.xlu1 %1287 }
 0x21e   : > { %v5860_v51 = vcombine.low %v1368_v43, %v1375_v44  ;;  %v5862_v52 = vcombine.high %v1368_v43, %v1375_v44  ;;  %v5864_v53 = vcombine.low %v1384_v45, %v1391_v46  ;;  %v5866_v54 = vcombine.high %v1384_v45, %v1391_v46 }
 0x21f   : > { %v1644_v17 = vcombine.low %v1588_v55, %v1594_v10  ;;  %v1645_v3 = vcombine.high %v1588_v55, %v1594_v10  ;;  %v1628_v18 = vcombine.low %v7475_v24, %v1591_v56  ;;  %v1629_v20 = vcombine.high %v7475_v24, %v1591_v56 }
 0x220   : > { %v7524_v61 = vrot.slane %v5860_v51, %v7500_v12  ;;  %v7527_v62 = vrot.slane %v5862_v52, %v7500_v12  ;;  %v7530_v63 = vrot.slane %v5864_v53, %v7500_v12  ;;  %v7533_v0 = vrot.slane %v5866_v54, %v7500_v12 }
 0x221   : > { %v1796_v21 = vcombine.low %v1740_v1, %v1756_v2  ;;  %v1828_v22 = vcombine.low %v1772_v4, %v1788_v9  ;;  %v1291_v25 = vpop.permute.xlu0 %1290  ;;  %v1294_v28 = vpop.permute.xlu1 %1293  ;;  %v1652_v33 = vrot.slane %v1644_v17, %v7500_v12  ;;  %v1659_v34 = vrot.slane %v1645_v3, %v7500_v12 }
 0x222   : > { %v1496_v14 = vcombine.low %v7524_v61, %v7527_v62  ;;  %v1528_v15 = vcombine.low %v7530_v63, %v7533_v0  ;;  %v1636_v35 = vrot.slane %v1628_v18, %v7500_v12  ;;  %v1643_v24 = vrot.slane %v1629_v20, %v7500_v12 }
 0x223   : > { %v1804_v29 = vrot.slane %v1796_v21, %v7507_v13  ;;  %v1836_v30 = vrot.slane %v1828_v22, %v7507_v13  ;;  %v1328_v37 = vcombine.low %v7483_v26, %v1291_v25  ;;  %v1329_v16 = vcombine.high %v7483_v26, %v1291_v25 }
 0x224   : > { %v1504_v31 = vrot.slane %v1496_v14, %v7507_v13  ;;  %v1536_v32 = vrot.slane %v1528_v15, %v7507_v13  ;;  %v1344_v38 = vcombine.low %v1288_v11, %v1294_v28  ;;  %v1345_v39 = vcombine.high %v1288_v11, %v1294_v28 }
 0x225   : > { %v1860_v36 = vcombine.low %v1804_v29, %v1836_v30  ;;  %v1692_v42 = vcombine.low %v1636_v35, %v1652_v33  ;;  %v1693_v43 = vcombine.high %v1636_v35, %v1652_v33  ;;  %v1708_v44 = vcombine.low %v1643_v24, %v1659_v34 }
 0x226   : > { %v1560_v41 = vcombine.low %v1504_v31, %v1536_v32  ;;  %v1709_v45 = vcombine.high %v1643_v24, %v1659_v34  ;;  %v1861_v47 = vcombine.high %v1804_v29, %v1836_v30  ;;  %v1797_v48 = vcombine.high %v1740_v1, %v1756_v2 }
 0x227   : > { %v2168_v40 = vpack.c.bf16 %v1860_v36, %v1860_v36  ;;  %v1829_v49 = vcombine.high %v1772_v4, %v1788_v9  ;;  %v1336_v50 = vrot.slane %v1328_v37, %v7500_v12  ;;  %v1343_v51 = vrot.slane %v1329_v16, %v7500_v12 }
 0x228   : > { %v1352_v52 = vrot.slane %v1344_v38, %v7500_v12  ;;  %v1359_v26 = vrot.slane %v1345_v39, %v7500_v12  ;;  %v1568_v53 = vmul.f32 0.0625, %v1560_v41  ;;  %v1700_v54 = vrot.slane %v1692_v42, %v7507_v13 }
 0x229   : > { %v2181_v46 = vsel %vm2176_vm1, %v2168_v40, 0  ;;  %v1707_v55 = vrot.slane %v1693_v43, %v7507_v13  ;;  %v1716_v56 = vrot.slane %v1708_v44, %v7507_v13  ;;  %v1723_v57 = vrot.slane %v1709_v45, %v7507_v13 }
 0x22a   : > { %6236 = vmatpush3.bf16.xpose.msra.mxu1 %v2181_v46  ;;  %v2169_v58 = vpack.c.bf16 %v1861_v47, %v1861_v47  ;;  %v1811_v59 = vrot.slane %v1797_v48, %v7507_v13  ;;  %v1843_v60 = vrot.slane %v1829_v49, %v7507_v13  ;;  %v1497_v1 = vcombine.high %v7524_v61, %v7527_v62 }
 0x22b   : > { %6241 = vmatprep.subr.bf16.mxu1 %v7166_v27  ;;  %v1392_v2 = vcombine.low %v1336_v50, %v1352_v52  ;;  %v1393_v4 = vcombine.high %v1336_v50, %v1352_v52  ;;  %v1408_v9 = vcombine.low %v1343_v51, %v1359_v26  ;;  %v1529_v10 = vcombine.high %v7530_v63, %v7533_v0 }
 0x22c   : > { %v1409_v11 = vcombine.high %v1343_v51, %v1359_v26  ;;  %v2160_v14 = vpack.c.bf16 %v1568_v53, %v1568_v53  ;;  %v1561_v15 = vcombine.high %v1504_v31, %v1536_v32  ;;  %v5869_v17 = vcombine.low %v1700_v54, %v1707_v55 }
 0x22d   : > { %v5871_v3 = vcombine.high %v1700_v54, %v1707_v55  ;;  %v5873_v18 = vcombine.low %v1716_v56, %v1723_v57  ;;  %v5875_v20 = vcombine.high %v1716_v56, %v1723_v57  ;;  %v2227_v21 = vsel %vm2176_vm1, %v2169_v58, 0 }
 0x22e   : > { %v1862_v22 = vcombine.low %v1811_v59, %v1843_v60  ;;  %v1400_v61 = vrot.slane %v1392_v2, %v7507_v13  ;;  %v1407_v62 = vrot.slane %v1393_v4, %v7507_v13  ;;  %v1416_v25 = vrot.slane %v1408_v9, %v7507_v13 }
 0x22f   : > { %v1423_v63 = vrot.slane %v1409_v11, %v7507_v13  ;;  %v1569_v0 = vmul.f32 0.0625, %v1561_v15  ;;  %v1511_v28 = vrot.slane %v1497_v1, %v7507_v13  ;;  %v1543_v29 = vrot.slane %v1529_v10, %v7507_v13 }
 0x230   : > { %v1747_v30 = vrot.slane %v5869_v17, %v7500_v12  ;;  %v1763_v31 = vrot.slane %v5871_v3, %v7500_v12  ;;  %v1779_v32 = vrot.slane %v5873_v18, %v7500_v12  ;;  %v1795_v33 = vrot.slane %v5875_v20, %v7500_v12 }
 0x231   : > { %6238 = vmatmul.mubr.msk.bf16.vlgmr.msra.gmra.mxu1 %vm2176_vm1, %v2160_v14  ;;  %v2170_v34 = vpack.c.bf16 %v1862_v22, %v1862_v22  ;;  %v5861_v35 = vcombine.low %v1400_v61, %v1407_v62  ;;  %v5863_v24 = vcombine.high %v1400_v61, %v1407_v62  ;;  %v5865_v36 = vcombine.low %v1416_v25, %v1423_v63 }
 0x232   : > { %6242 = vmatpush3.bf16.xpose.msra.mxu1 %v2227_v21  ;;  %6243 = vmatprep.mubr.msk.bf16.mxu1 %vm7167_vm0, %v7166_v27  ;;  %v5867_v37 = vcombine.high %v1416_v25, %v1423_v63  ;;  %v2161_v16 = vpack.c.bf16 %v1569_v0, %v1569_v0  ;;  %v1562_v38 = vcombine.low %v1511_v28, %v1543_v29 }
 0x233   : > { %6247 = vmatprep.subr.bf16.mxu1 %v7166_v27  ;;  %v2273_v39 = vsel %vm2176_vm1, %v2170_v34, 0  ;;  %v1863_v40 = vcombine.high %v1811_v59, %v1843_v60  ;;  %v1812_v41 = vcombine.low %v1747_v30, %v1763_v31  ;;  %v1844_v42 = vcombine.low %v1779_v32, %v1795_v33 }
 0x234   : > { %v1447_v43 = vrot.slane %v5861_v35, %v7500_v12  ;;  %v1463_v44 = vrot.slane %v5863_v24, %v7500_v12  ;;  %v1479_v45 = vrot.slane %v5865_v36, %v7500_v12  ;;  %v1495_v46 = vrot.slane %v5867_v37, %v7500_v12 }
 0x235   : > { %v1570_v47 = vmul.f32 0.0625, %v1562_v38  ;;  %v2171_v48 = vpack.c.bf16 %v1863_v40, %v1863_v40  ;;  %v1820_v49 = vrot.slane %v1812_v41, %v7507_v13  ;;  %v1852_v50 = vrot.slane %v1844_v42, %v7507_v13 }
 0x236   : > { %v1512_v51 = vcombine.low %v1447_v43, %v1463_v44  ;;  %v1544_v52 = vcombine.low %v1479_v45, %v1495_v46  ;;  %v1563_v53 = vcombine.high %v1511_v28, %v1543_v29  ;;  %v1813_v9 = vcombine.high %v1747_v30, %v1763_v31 }
 0x237   : > { %v2162_v26 = vpack.c.bf16 %v1570_v47, %v1570_v47  ;;  %v2319_v54 = vsel %vm2176_vm1, %v2171_v48, 0  ;;  %v1864_v55 = vcombine.low %v1820_v49, %v1852_v50  ;;  %v1865_v4 = vcombine.high %v1820_v49, %v1852_v50 }
 0x238   : > { %v1571_v56 = vmul.f32 0.0625, %v1563_v53  ;;  %v1520_v57 = vrot.slane %v1512_v51, %v7507_v13  ;;  %v1552_v58 = vrot.slane %v1544_v52, %v7507_v13  ;;  %v1845_v10 = vcombine.high %v1779_v32, %v1795_v33 }
 0x239   : > { %6244 = vmatmul.mubr.msk.bf16.vlgmr.msra.gmra.mxu1 %vm2176_vm1, %v2161_v16  ;;  %v2172_v59 = vpack.c.bf16 %v1864_v55, %v1864_v55  ;;  %v2173_v14 = vpack.c.bf16 %v1865_v4, %v1865_v4  ;;  %v1827_v15 = vrot.slane %v1813_v9, %v7507_v13  ;;  %v1513_v3 = vcombine.high %v1447_v43, %v1463_v44  ;;  %v1269_v16 = vpop.f32.mrf.mxu0 }
 0x23a   : > { %6248 = vmatpush3.bf16.xpose.msra.mxu1 %v2273_v39  ;;  %6249 = vmatprep.mubr.msk.bf16.mxu1 %vm7167_vm0, %v7166_v27  ;;  %v2163_v60 = vpack.c.bf16 %v1571_v56, %v1571_v56  ;;  %v1564_v1 = vcombine.low %v1520_v57, %v1552_v58  ;;  %v1859_v17 = vrot.slane %v1845_v10, %v7507_v13 }
 0x23b   : > { %6253 = vmatprep.subr.bf16.mxu1 %v7166_v27  ;;  %v2365_v2 = vsel %vm2176_vm1, %v2172_v59, 0  ;;  %v1545_v18 = vcombine.high %v1479_v45, %v1495_v46  ;;  %v1565_v21 = vcombine.high %v1520_v57, %v1552_v58  ;;  %v2411_v22 = vsel %vm2176_vm1, %v2173_v14, 0  ;;  %v1271_v38 = vpop.f32.mrf.mxu0 }
 0x23c   : > { %v1572_v11 = vmul.f32 0.0625, %v1564_v1  ;;  %v1866_v61 = vcombine.low %v1827_v15, %v1859_v17  ;;  %v1527_v25 = vrot.slane %v1513_v3, %v7507_v13  ;;  %v1867_v31 = vcombine.high %v1827_v15, %v1859_v17 }
 0x23d   : > { %v1573_v62 = vmul.f32 0.0625, %v1565_v21  ;;  %v1559_v63 = vrot.slane %v1545_v18, %v7507_v13  ;;  %v1273_v39 = vpop.f32.mrf.mxu0 }
 0x23e   : > { %v2164_v20 = vpack.c.bf16 %v1572_v11, %v1572_v11  ;;  %v2174_v0 = vpack.c.bf16 %v1866_v61, %v1866_v61  ;;  %v2175_v33 = vpack.c.bf16 %v1867_v31, %v1867_v31  ;;  %v661_v61 = vsub.s32 4, %v7439_v5 }
 0x23f   : > { %v2165_v28 = vpack.c.bf16 %v1573_v62, %v1573_v62  ;;  %v1566_v29 = vcombine.low %v1527_v25, %v1559_v63  ;;  %v1567_v35 = vcombine.high %v1527_v25, %v1559_v63  ;;  %v1274_v40 = vpop.f32.mrf.mxu0  ;;  %v665_v31 = vsub.s32 5, %v7439_v5 }
 0x240   : > { %v2457_v30 = vsel %vm2176_vm1, %v2174_v0, 0  ;;  %v2503_v24 = vsel %vm2176_vm1, %v2175_v33, 0  ;;  %v662_v0 = vrot.slane %v7442_v7, %v661_v61 }
 0x241   : > { %6250 = vmatmul.mubr.msk.bf16.vlgmr.msra.gmra.mxu1 %vm2176_vm1, %v2162_v26  ;;  %v1574_v32 = vmul.f32 0.0625, %v1566_v29  ;;  %v1575_v36 = vmul.f32 0.0625, %v1567_v35 }
 0x242   : > { %6254 = vmatpush3.bf16.xpose.msra.mxu1 %v2319_v54  ;;  %6255 = vmatprep.mubr.msk.bf16.mxu1 %vm7167_vm0, %v7166_v27 }
 0x243   : > { %6259 = vmatprep.subr.bf16.mxu1 %v7166_v27  ;;  %v2166_v34 = vpack.c.bf16 %v1574_v32, %v1574_v32  ;;  %v2167_v37 = vpack.c.bf16 %v1575_v36, %v1575_v36  ;;  %v666_v32 = vrot.slane %v7442_v7, %v665_v31 }
 0x245   : > { %v7658_v33 = vadd.f32 %v1271_v38, %v666_v32 }
 0x249   : > { %6256 = vmatmul.mubr.msk.bf16.vlgmr.msra.gmra.mxu1 %vm2176_vm1, %v2163_v60 }
 0x24a   : > { %6260 = vmatpush3.bf16.xpose.msra.mxu1 %v2365_v2  ;;  %6261 = vmatprep.mubr.msk.bf16.mxu1 %vm7167_vm0, %v7166_v27 }
 0x24b   : > { %6265 = vmatprep.subr.bf16.mxu1 %v7166_v27 }
 0x251   : > { %6262 = vmatmul.mubr.msk.bf16.vlgmr.msra.gmra.mxu1 %vm2176_vm1, %v2164_v20 }
 0x252   : > { %6266 = vmatpush3.bf16.xpose.msra.mxu1 %v2411_v22  ;;  %6267 = vmatprep.mubr.msk.bf16.mxu1 %vm7167_vm0, %v7166_v27 }
 0x253   : > { %6271 = vmatprep.subr.bf16.mxu1 %v7166_v27 }
 0x259   : > { %6268 = vmatmul.mubr.msk.bf16.vlgmr.msra.gmra.mxu1 %vm2176_vm1, %v2165_v28 }
 0x25a   : > { %6272 = vmatpush3.bf16.xpose.msra.mxu1 %v2457_v30  ;;  %6273 = vmatprep.mubr.msk.bf16.mxu1 %vm7167_vm0, %v7166_v27  ;;  %v1270_v30 = vadd.f32 %v1269_v16, %v662_v0 }
 0x25b   : > { %6277 = vmatprep.subr.bf16.mxu1 %v7166_v27 }
 0x261   : > { %6274 = vmatmul.mubr.msk.bf16.vlgmr.msra.gmra.mxu1 %vm2176_vm1, %v2166_v34 }
 0x262   : > { %6278 = vmatpush3.bf16.xpose.msra.mxu1 %v2503_v24  ;;  %6279 = vmatprep.mubr.msk.bf16.mxu1 %vm7167_vm0, %v7166_v27 }
 0x263   : > { %6283 = vmatprep.subr.bf16.mxu1 %v7166_v27 }
 0x269   : > { %6280 = vmatmul.mubr.msk.bf16.vlgmr.msra.gmra.mxu1 %vm2176_vm1, %v2167_v37 }
 0x26a   : > { %6285 = vmatprep.mubr.msk.bf16.mxu1 %vm7167_vm0, %v7166_v27 }
 0x2f1   : > { %v2217_v41 = vpop.f32.mrf.mxu1 }
 0x2f2   : > { %v2546_v42 = vsel %vm2545_vm2, %v2217_v41, -inf }
 0x2f3   : > { %2547 = vmax.xlane.f32.xlu0 %v2546_v42  ;;  %v6239_v43 = vpop.f32.mrf.mxu1 }
 0x2f5   : > { %v2220_v44 = vpop.f32.mrf.mxu1 }
 0x2f7   : > { %v6240_v45 = vpop.f32.mrf.mxu1 }
 0x2f9   : > { %v2263_v46 = vpop.f32.mrf.mxu1 }
 0x2fa   : > { %v2549_v47 = vsel %vm2545_vm2, %v2263_v46, -inf }
 0x2fb   : > { %2550 = vmax.xlane.f32.xlu1 %v2549_v47  ;;  %v6245_v48 = vpop.f32.mrf.mxu1 }
 0x2fd   : > { %v2266_v49 = vpop.f32.mrf.mxu1 }
 0x2ff   : > { %v6246_v50 = vpop.f32.mrf.mxu1 }
 0x301   : > { %v2309_v51 = vpop.f32.mrf.mxu1 }
 0x302   : > { %v2552_v52 = vsel %vm2545_vm2, %v2309_v51, -inf }
 0x303   : > { %2553 = vmax.xlane.f32.xlu0 %v2552_v52  ;;  %v6251_v26 = vpop.f32.mrf.mxu1 }
 0x305   : > { %v2312_v53 = vpop.f32.mrf.mxu1 }
 0x307   : > { %v6252_v54 = vpop.f32.mrf.mxu1 }
 0x309   : > { %v2355_v55 = vpop.f32.mrf.mxu1 }
 0x30a   : > { %v2555_v56 = vsel %vm2545_vm2, %v2355_v55, -inf }
 0x30b   : > { %2556 = vmax.xlane.f32.xlu0 %v2555_v56  ;;  %v6257_v57 = vpop.f32.mrf.mxu1 }
 0x30d   : > { %v2358_v58 = vpop.f32.mrf.mxu1 }
 0x30f   : > { %v6258_v59 = vpop.f32.mrf.mxu1 }
 0x311   : > { %v2401_v60 = vpop.f32.mrf.mxu1 }
 0x312   : > { %v2558_v1 = vsel %vm2545_vm2, %v2401_v60, -inf }
 0x313   : > { %2559 = vmax.xlane.f32.xlu1 %v2558_v1  ;;  %v6263_v2 = vpop.f32.mrf.mxu1 }
 0x315   : > { %v2404_v4 = vpop.f32.mrf.mxu1 }
 0x317   : > { %v6264_v9 = vpop.f32.mrf.mxu1 }
 0x319   : > { %v7636_v10 = vpop.f32.mrf.mxu1 }
 0x31a   : > { %v2561_v11 = vsel %vm2545_vm2, %v7636_v10, -inf }
 0x31b   : > { %2562 = vmax.xlane.f32.xlu0 %v2561_v11  ;;  %v6269_v14 = vpop.f32.mrf.mxu1 }
 0x31d   : > { %v2450_v15 = vpop.f32.mrf.mxu1 }
 0x31f   : > { %v6270_v17 = vpop.f32.mrf.mxu1 }
 0x321   : > { %v7640_v3 = vpop.f32.mrf.mxu1 }
 0x322   : > { %v2564_v18 = vsel %vm2545_vm2, %v7640_v3, -inf }
 0x323   : > { %2565 = vmax.xlane.f32.xlu1 %v2564_v18  ;;  %v6275_v20 = vpop.f32.mrf.mxu1 }
 0x325   : > { %v2496_v21 = vpop.f32.mrf.mxu1 }
 0x327   : > { %v6276_v22 = vpop.f32.mrf.mxu1 }
 0x329   : > { %v7645_v62 = vpop.f32.mrf.mxu1 }
 0x32a   : > { %v2567_v25 = vsel %vm2545_vm2, %v7645_v62, -inf }
 0x32b   : > { %2568 = vmax.xlane.f32.xlu0 %v2567_v25  ;;  %v6281_v63 = vpop.f32.mrf.mxu1 }
 0x32d   : > { %v2542_v28 = vpop.f32.mrf.mxu1 }
 0x32f   : > { %v6282_v29 = vpop.f32.mrf.mxu1 }
 0x334   : > { %1872 = vrot.lane.b32.xlu1 %v1270_v30, %s7165_s8 }
 0x338   : > { %1875 = vrot.lane.b32.xlu1 %v1270_v30, %s7163_s2 }
 0x33c   : > { %1879 = vrot.lane.b32.xlu1 %v7658_v33, %s7164_s3 }
 0x341   : > { %1869 = vrot.lane.b32.xlu0 %v1270_v30, %s7164_s3 }
 0x37c   : > { %v2548_v34 = vpop.xlane.xlu0 %2547 }
 0x37d   : > { %v2570_v35 = vsub.f32 %v2217_v41, %v2548_v34 }
 0x37f   : > { %v2578_v24 = vmul.f32 1.442695, %v2570_v35 }
 0x381   : > { %6850 = vpow2.f32 %v2578_v24 }
 0x384   : > { %v2551_v36 = vpop.xlane.xlu1 %2550 }
 0x385   : > { %v2571_v37 = vsub.f32 %v2263_v46, %v2551_v36 }
 0x387   : > { %v2580_v16 = vmul.f32 1.442695, %v2571_v37 }
 0x389   : > { %6852 = vpow2.f32 %v2580_v16 }
 0x38c   : > { %v2554_v39 = vpop.xlane.xlu0 %2553 }
 0x38d   : > { %v2572_v40 = vsub.f32 %v2309_v51, %v2554_v39 }
 0x38e   : > { %v7663_v7 = vpop.eup %6850 }
 0x38f   : > { %v2582_v42 = vmul.f32 1.442695, %v2572_v40  ;;  %v2594_v38 = vsel %vm2545_vm2, %v7663_v7, 0.0 }
 0x390   : > { %2595 = vadd.xlane.f32.xlu1 %v2594_v38 }
 0x391   : > { %6854 = vpow2.f32 %v2582_v42 }
 0x394   : > { %v2557_v43 = vpop.xlane.xlu0 %2556 }
 0x395   : > { %v2573_v44 = vsub.f32 %v2355_v55, %v2557_v43 }
 0x396   : > { %v7667_v45 = vpop.eup %6852 }
 0x397   : > { %v2584_v41 = vmul.f32 1.442695, %v2573_v44  ;;  %v2597_v46 = vsel %vm2545_vm2, %v7667_v45, 0.0 }
 0x398   : > { %2598 = vadd.xlane.f32.xlu0 %v2597_v46 }
 0x399   : > { %6856 = vpow2.f32 %v2584_v41 }
 0x39c   : > { %v2560_v47 = vpop.xlane.xlu1 %2559 }
 0x39d   : > { %v2574_v48 = vsub.f32 %v2401_v60, %v2560_v47 }
 0x39e   : > { %v7671_v49 = vpop.eup %6854 }
 0x39f   : > { %v2586_v50 = vmul.f32 1.442695, %v2574_v48  ;;  %v2600_v51 = vsel %vm2545_vm2, %v7671_v49, 0.0 }
 0x3a0   : > { %2601 = vadd.xlane.f32.xlu1 %v2600_v51 }
 0x3a1   : > { %6858 = vpow2.f32 %v2586_v50 }
 0x3a4   : > { %v2563_v56 = vpop.xlane.xlu0 %2562 }
 0x3a5   : > { %v2575_v18 = vsub.f32 %v7636_v10, %v2563_v56 }
 0x3a6   : > { %v7675_v52 = vpop.eup %6856 }
 0x3a7   : > { %v2603_v26 = vsel %vm2545_vm2, %v7675_v52, 0.0 }
 0x3a8   : > { %2604 = vadd.xlane.f32.xlu0 %v2603_v26 }
 0x3ac   : > { %v2566_v53 = vpop.xlane.xlu1 %2565 }
 0x3ae   : > { %v7679_v54 = vpop.eup %6858 }
 0x3af   : > { %v2606_v55 = vsel %vm2545_vm2, %v7679_v54, 0.0 }
 0x3b0   : > { %2607 = vadd.xlane.f32.xlu0 %v2606_v55  ;;  %v1873_v57 = vpop.permute.xlu1 %1872  ;;  %v2576_v55 = vsub.f32 %v7640_v3, %v2566_v53 }
 0x3b1   : > { %1885 = vrot.lane.b32.xlu1 %v7658_v33, %s7163_s2  ;;  %v1888_v60 = vcombine.low %v1270_v30, %v1873_v57  ;;  %v1889_v1 = vcombine.high %v1270_v30, %v1873_v57  ;;  %v2588_v30 = vmul.f32 1.442695, %v2575_v18 }
 0x3b2   : > { %v2590_v57 = vmul.f32 1.442695, %v2576_v55 }
 0x3b3   : > { %v1896_v11 = vrot.slane %v1888_v60, %v7500_v12  ;;  %v1903_v14 = vrot.slane %v1889_v1, %v7500_v12  ;;  %6860 = vpow2.f32 %v2588_v30 }
 0x3b4   : > { %v2569_v58 = vpop.xlane.xlu0 %2568  ;;  %v1876_v59 = vpop.permute.xlu1 %1875  ;;  %6862 = vpow2.f32 %v2590_v57 }
 0x3b8   : > { %v1870_v2 = vpop.permute.xlu0 %1869 }
 0x3b9   : > { %v1904_v4 = vcombine.low %v1870_v2, %v1876_v59  ;;  %v1905_v9 = vcombine.high %v1870_v2, %v1876_v59  ;;  %v2577_v59 = vsub.f32 %v7645_v62, %v2569_v58  ;;  %v1880_v58 = vpop.permute.xlu1 %1879 }
 0x3bb   : > { %v1912_v15 = vrot.slane %v1904_v4, %v7500_v12  ;;  %v1919_v17 = vrot.slane %v1905_v9, %v7500_v12  ;;  %v2592_v1 = vmul.f32 1.442695, %v2577_v59 }
 0x3bd   : > { %v1952_v20 = vcombine.low %v1896_v11, %v1912_v15  ;;  %v1953_v21 = vcombine.high %v1896_v11, %v1912_v15  ;;  %v1968_v22 = vcombine.low %v1903_v14, %v1919_v17  ;;  %v1969_v25 = vcombine.high %v1903_v14, %v1919_v17 }
 0x3be   : > { %6864 = vpow2.f32 %v2592_v1 }
 0x3bf   : > { %v1960_v63 = vrot.slane %v1952_v20, %v7507_v13  ;;  %v1967_v0 = vrot.slane %v1953_v21, %v7507_v13  ;;  %v1976_v28 = vrot.slane %v1968_v22, %v7507_v13  ;;  %v1983_v29 = vrot.slane %v1969_v25, %v7507_v13 }
 0x3c0   : > { %v7708_v60 = vpop.eup %6860 }
 0x3c1   : > { %v5876_v32 = vcombine.low %v1960_v63, %v1967_v0  ;;  %v5878_v34 = vcombine.high %v1960_v63, %v1967_v0  ;;  %v5880_v35 = vcombine.low %v1976_v28, %v1983_v29  ;;  %v5882_v24 = vcombine.high %v1976_v28, %v1983_v29  ;;  %v7712_v4 = vpop.eup %6862 }
 0x3c2   : > { %v2609_v2 = vsel %vm2545_vm2, %v7708_v60, 0.0  ;;  %v2612_v3 = vsel %vm2545_vm2, %v7712_v4, 0.0 }
 0x3c3   : > { %v2032_v36 = vrot.slane %v5876_v32, %v7500_v12  ;;  %v2048_v10 = vrot.slane %v5878_v34, %v7500_v12  ;;  %v2064_v37 = vrot.slane %v5880_v35, %v7500_v12  ;;  %v2080_v16 = vrot.slane %v5882_v24, %v7500_v12 }
 0x3c5   : > { %v2088_v39 = vcombine.low %v2032_v36, %v2048_v10  ;;  %v2120_v40 = vcombine.low %v2064_v37, %v2080_v16  ;;  %v2089_v42 = vcombine.high %v2032_v36, %v2048_v10  ;;  %v2121_v38 = vcombine.high %v2064_v37, %v2080_v16 }
 0x3c6   : > { %1882 = vrot.lane.b32.xlu0 %v7658_v33, %s7165_s8 }
 0x3c7   : > { %v2096_v43 = vrot.slane %v2088_v39, %v7507_v13  ;;  %v2128_v44 = vrot.slane %v2120_v40, %v7507_v13  ;;  %v2103_v41 = vrot.slane %v2089_v42, %v7507_v13  ;;  %v2135_v46 = vrot.slane %v2121_v38, %v7507_v13 }
 0x3c9   : > { %v2152_v47 = vcombine.low %v2096_v43, %v2128_v44  ;;  %v2153_v48 = vcombine.high %v2096_v43, %v2128_v44  ;;  %v2154_v50 = vcombine.low %v2103_v41, %v2135_v46  ;;  %v2155_v51 = vcombine.high %v2103_v41, %v2135_v46 }
 0x3cb   : > { %v2642_v26 = vpack.c.bf16 %v2152_v47, %v2152_v47  ;;  %v7716_v53 = vpop.eup %6864  ;;  %v2643_v17 = vpack.c.bf16 %v2153_v48, %v2153_v48  ;;  %v2644_v63 = vpack.c.bf16 %v2154_v50, %v2154_v50  ;;  %v2645_v34 = vpack.c.bf16 %v2155_v51, %v2155_v51 }
 0x3cc   : > { %v2615_v62 = vsel %vm2545_vm2, %v7716_v53, 0.0 }
 0x3cd   : > { %v2655_v56 = vsel %vm2653_vm3, %v2642_v26, 0  ;;  %v2701_v21 = vsel %vm2653_vm3, %v2643_v17, 0  ;;  %v2747_v28 = vsel %vm2653_vm3, %v2644_v63, 0  ;;  %v2793_v10 = vsel %vm2653_vm3, %v2645_v34, 0 }
 0x3ce   : > { %6284 = vmatpush3.bf16.msra.mxu1 %v2655_v56 }
 0x3cf   : > { %6289 = vmatprep.subr.bf16.mxu1 %v7166_v27 }
 0x3d5   : > { %2610 = vadd.xlane.f32.xlu1 %v2609_v2 }
 0x3e5   : > { %2613 = vadd.xlane.f32.xlu0 %v2612_v3 }
 0x3e9   : > { %2616 = vadd.xlane.f32.xlu0 %v2615_v62 }
 0x419   : > { %v2596_v9 = vpop.xlane.xlu1 %2595 }
 0x41a   : > { %6866 = vrcp.f32 %v2596_v9 }
 0x421   : > { %v2599_v11 = vpop.xlane.xlu0 %2598 }
 0x422   : > { %6868 = vrcp.f32 %v2599_v11 }
 0x427   : > { %v6867_v14 = vpop.eup %6866 }
 0x428   : > { %v2626_v15 = vmul.f32 %v6867_v14, %v7663_v7 }
 0x429   : > { %v2602_v18 = vpop.xlane.xlu1 %2601 }
 0x42a   : > { %6870 = vrcp.f32 %v2602_v18  ;;  %v2634_v20 = vpack.c.bf16 %v2626_v15, %v2626_v15 }
 0x42c   : > { %6286 = vmatmul.mubr.msk.bf16.vlgmr.msra.gmra.mxu1 %vm2545_vm2, %v2634_v20 }
 0x42d   : > { %6290 = vmatpush3.bf16.msra.mxu1 %v2701_v21  ;;  %6291 = vmatprep.mubr.msk.bf16.mxu1 %vm7167_vm0, %v7166_v27  ;;  %v1886_v30 = vpop.permute.xlu1 %1885 }
 0x42e   : > { %6295 = vmatprep.subr.bf16.mxu1 %v7166_v27  ;;  %v1936_v24 = vcombine.low %v1880_v58, %v1886_v30  ;;  %v1937_v36 = vcombine.high %v1880_v58, %v1886_v30 }
 0x42f   : > { %v6869_v22 = vpop.eup %6868 }
 0x430   : > { %v2627_v25 = vmul.f32 %v6869_v22, %v7667_v45  ;;  %v1944_v40 = vrot.slane %v1936_v24, %v7500_v12  ;;  %v1951_v42 = vrot.slane %v1937_v36, %v7500_v12 }
 0x431   : > { %v2605_v0 = vpop.xlane.xlu0 %2604 }
 0x432   : > { %6872 = vrcp.f32 %v2605_v0  ;;  %v2635_v7 = vpack.c.bf16 %v2627_v25, %v2627_v25 }
 0x434   : > { %6292 = vmatmul.mubr.msk.bf16.vlgmr.msra.gmra.mxu1 %vm2545_vm2, %v2635_v7 }
 0x435   : > { %6296 = vmatpush3.bf16.msra.mxu1 %v2747_v28  ;;  %6297 = vmatprep.mubr.msk.bf16.mxu1 %vm7167_vm0, %v7166_v27 }
 0x436   : > { %6301 = vmatprep.subr.bf16.mxu1 %v7166_v27 }
 0x437   : > { %v6871_v29 = vpop.eup %6870 }
 0x438   : > { %v2628_v32 = vmul.f32 %v6871_v29, %v7671_v49 }
 0x439   : > { %v2608_v45 = vpop.xlane.xlu0 %2607 }
 0x43a   : > { %v2636_v35 = vpack.c.bf16 %v2628_v32, %v2628_v32  ;;  %6874 = vrcp.f32 %v2608_v45 }
 0x43c   : > { %6298 = vmatmul.mubr.msk.bf16.vlgmr.msra.gmra.mxu1 %vm2545_vm2, %v2636_v35 }
 0x43d   : > { %6302 = vmatpush3.bf16.msra.mxu1 %v2793_v10  ;;  %v1883_v37 = vpop.permute.xlu0 %1882  ;;  %6303 = vmatprep.mubr.msk.bf16.mxu1 %vm7167_vm0, %v7166_v27 }
 0x43e   : > { %v1920_v16 = vcombine.low %v7658_v33, %v1883_v37  ;;  %v1921_v39 = vcombine.high %v7658_v33, %v1883_v37  ;;  %6307 = vmatprep.subr.bf16.mxu1 %v7166_v27 }
 0x43f   : > { %v6873_v49 = vpop.eup %6872 }
 0x440   : > { %v1928_v38 = vrot.slane %v1920_v16, %v7500_v12  ;;  %v1935_v43 = vrot.slane %v1921_v39, %v7500_v12  ;;  %v2629_v44 = vmul.f32 %v6873_v49, %v7675_v52 }
 0x442   : > { %v1984_v41 = vcombine.low %v1928_v38, %v1944_v40  ;;  %v1985_v46 = vcombine.high %v1928_v38, %v1944_v40  ;;  %v2000_v47 = vcombine.low %v1935_v43, %v1951_v42  ;;  %v2001_v48 = vcombine.high %v1935_v43, %v1951_v42 }
 0x443   : > { %v2637_v50 = vpack.c.bf16 %v2629_v44, %v2629_v44 }
 0x444   : > { %v1992_v33 = vrot.slane %v1984_v41, %v7507_v13  ;;  %v1999_v51 = vrot.slane %v1985_v46, %v7507_v13  ;;  %v2008_v26 = vrot.slane %v2000_v47, %v7507_v13  ;;  %v2015_v55 = vrot.slane %v2001_v48, %v7507_v13  ;;  %v6610_v41 = vld [vmem:[#allocation8 + $0x70] ss:$8 sps:$4 sm:$0xff]   ;;  %v6612_v46 = vld [vmem:[#allocation8 + $0x74] ss:$8 sps:$4 sm:$0xff]   ;;  %v6615_v47 = vld [vmem:[#allocation8 + $0x64] ss:$8 sps:$4 sm:$0xff]  }
 0x445   : > { %6304 = vmatmul.mubr.msk.bf16.vlgmr.msra.gmra.mxu1 %vm2545_vm2, %v2637_v50  ;;  %3529 = vmatprep.subr.bf16.mxu0 %v6612_v46  ;;  %v6618_v48 = vld [vmem:[#allocation8 + $0x54] ss:$8 sps:$4 sm:$0xff]   ;;  %v6616_v50 = vld [vmem:[#allocation8 + $0x50] ss:$8 sps:$4 sm:$0xff]  }
 0x446   : > { %v5877_v56 = vcombine.low %v1992_v33, %v1999_v51  ;;  %v5879_v57 = vcombine.high %v1992_v33, %v1999_v51  ;;  %v5881_v59 = vcombine.low %v2008_v26, %v2015_v55  ;;  %v5883_v1 = vcombine.high %v2008_v26, %v2015_v55  ;;  %6309 = vmatprep.mubr.msk.bf16.mxu1 %vm7167_vm0, %v7166_v27  ;;  %v6621_v33 = vld [vmem:[#allocation8 + $0x44] ss:$8 sps:$4 sm:$0xff]  }
 0x447   : > { %v6875_v15 = vpop.eup %6874  ;;  %3530 = vmatpush1.bf16.msra.mxu0 %v6610_v41  ;;  %v6643_v41 = vld [vmem:[#allocation8 + $0xc0] ss:$8 sps:$4 sm:$0xff]  }
 0x448   : > { %v2039_v52 = vrot.slane %v5877_v56, %v7500_v12  ;;  %v2055_v2 = vrot.slane %v5879_v57, %v7500_v12  ;;  %v2071_v3 = vrot.slane %v5881_v59, %v7500_v12  ;;  %v2087_v62 = vrot.slane %v5883_v1, %v7500_v12  ;;  %3531 = vmatprep.subr.bf16.mxu0 %v6615_v47  ;;  %v6622_v56 = vld [vmem:[#allocation8 + $0x30] ss:$8 sps:$4 sm:$0xff]   ;;  %v6627_v59 = vld [vmem:[#allocation8 + $0x24] ss:$8 sps:$4 sm:$0xff]  }
 0x449   : > { %v2630_v21 = vmul.f32 %v6875_v15, %v7679_v54 }
 0x44a   : > { %v2104_v58 = vcombine.low %v2039_v52, %v2055_v2  ;;  %v2136_v9 = vcombine.low %v2071_v3, %v2087_v62  ;;  %v2105_v54 = vcombine.high %v2039_v52, %v2055_v2  ;;  %v2137_v28 = vcombine.high %v2071_v3, %v2087_v62  ;;  %v6625_v52 = vld [vmem:[#allocation8 + $0x20] ss:$8 sps:$4 sm:$0xff]   ;;  %v6630_v3 = vld [vmem:[#allocation8 + $0x14] ss:$8 sps:$4 sm:$0xff]  }
 0x44b   : > { %v2638_v63 = vpack.c.bf16 %v2630_v21, %v2630_v21  ;;  %v6636_v21 = vld [vmem:[#allocation8 + $0xf4] ss:$8 sps:$4 sm:$0xff]  }
 0x44c   : > { %v2112_v11 = vrot.slane %v2104_v58, %v7507_v13  ;;  %v2144_v14 = vrot.slane %v2136_v9, %v7507_v13  ;;  %v2119_v29 = vrot.slane %v2105_v54, %v7507_v13  ;;  %v2151_v30 = vrot.slane %v2137_v28, %v7507_v13  ;;  %v6628_v58 = vld [vmem:[#allocation8 + $0x10] ss:$8 sps:$4 sm:$0xff]   ;;  %v6637_v54 = vld [vmem:[#allocation8 + $0xe0] ss:$8 sps:$4 sm:$0xff]  }
 0x44e   : > { %v2156_v17 = vcombine.low %v2112_v11, %v2144_v14  ;;  %v2157_v18 = vcombine.high %v2112_v11, %v2144_v14  ;;  %v2158_v32 = vcombine.low %v2119_v29, %v2151_v30  ;;  %v2159_v16 = vcombine.high %v2119_v29, %v2151_v30  ;;  %v6633_v11 = vld [vmem:[#allocation8 + $0x4] ss:$8 sps:$4 sm:$0xff]   ;;  %v6642_v30 = vld [vmem:[#allocation8 + $0xd4] ss:$8 sps:$4 sm:$0xff]  }
 0x450   : > { %v2646_v20 = vpack.c.bf16 %v2156_v17, %v2156_v17  ;;  %v2647_v25 = vpack.c.bf16 %v2157_v18, %v2157_v18  ;;  %v2648_v35 = vpack.c.bf16 %v2158_v32, %v2158_v32  ;;  %v2649_v49 = vpack.c.bf16 %v2159_v16, %v2159_v16  ;;  %v6631_v18 = vld [vmem:[#allocation8] ss:$8 sps:$4 sm:$0xff]  }
 0x452   : > { %v2839_v22 = vsel %vm2653_vm3, %v2646_v20, 0  ;;  %v2885_v0 = vsel %vm2653_vm3, %v2647_v25, 0  ;;  %v2931_v10 = vsel %vm2653_vm3, %v2648_v35, 0  ;;  %v2977_v38 = vsel %vm2653_vm3, %v2649_v49, 0  ;;  %v6634_v25 = vld [vmem:[#allocation8 + $0xf0] ss:$8 sps:$4 sm:$0xff]  }
 0x453   : > { %6308 = vmatpush3.bf16.msra.mxu1 %v2839_v22  ;;  %v6645_v49 = vld [vmem:[#allocation8 + $0xc4] ss:$8 sps:$4 sm:$0xff]  }
 0x454   : > { %6313 = vmatprep.subr.bf16.mxu1 %v7166_v27 }
 0x456   : > { %6310 = vmatmul.mubr.msk.bf16.vlgmr.msra.gmra.mxu1 %vm2545_vm2, %v2638_v63 }
 0x457   : > { %6314 = vmatpush3.bf16.msra.mxu1 %v2885_v0  ;;  %6315 = vmatprep.mubr.msk.bf16.mxu1 %vm7167_vm0, %v7166_v27  ;;  %v6639_v0 = vld [vmem:[#allocation8 + $0xe4] ss:$8 sps:$4 sm:$0xff]  }
 0x458   : > { %6319 = vmatprep.subr.bf16.mxu1 %v7166_v27 }
 0x45e   : > { %v2611_v7 = vpop.xlane.xlu1 %2610 }
 0x45f   : > { %6876 = vrcp.f32 %v2611_v7 }
 0x46c   : > { %v6877_v34 = vpop.eup %6876 }
 0x46d   : > { %v2631_v45 = vmul.f32 %v6877_v34, %v7708_v60 }
 0x46e   : > { %v2614_v24 = vpop.xlane.xlu0 %2613 }
 0x46f   : > { %6878 = vrcp.f32 %v2614_v24  ;;  %v2639_v36 = vpack.c.bf16 %v2631_v45, %v2631_v45 }
 0x471   : > { %6316 = vmatmul.mubr.msk.bf16.vlgmr.msra.gmra.mxu1 %vm2545_vm2, %v2639_v36 }
 0x472   : > { %6320 = vmatpush3.bf16.msra.mxu1 %v2931_v10  ;;  %v2617_v37 = vpop.xlane.xlu0 %2616  ;;  %6321 = vmatprep.mubr.msk.bf16.mxu1 %vm7167_vm0, %v7166_v27  ;;  %v6640_v10 = vld [vmem:[#allocation8 + $0xd0] ss:$8 sps:$4 sm:$0xff]  }
 0x473   : > { %6880 = vrcp.f32 %v2617_v37  ;;  %6325 = vmatprep.subr.bf16.mxu1 %v7166_v27 }
 0x47c   : > { %v6879_v39 = vpop.eup %6878 }
 0x47d   : > { %v2632_v60 = vmul.f32 %v6879_v39, %v7712_v4  ;;  %v6613_v4 = vld [vmem:[#allocation8 + $0x60] ss:$8 sps:$4 sm:$0xff]  }
 0x47e   : > { %3532 = vmatpush1.bf16.msra.mxu0 %v6613_v4 }
 0x47f   : > { %v2640_v40 = vpack.c.bf16 %v2632_v60, %v2632_v60  ;;  %3533 = vmatprep.subr.bf16.mxu0 %v6618_v48 }
 0x480   : > { %v6881_v42 = vpop.eup %6880 }
 0x481   : > { %6322 = vmatmul.mubr.msk.bf16.vlgmr.msra.gmra.mxu1 %vm2545_vm2, %v2640_v40  ;;  %v2633_v43 = vmul.f32 %v6881_v42, %v7716_v53  ;;  %v6624_v53 = vld [vmem:[#allocation8 + $0x34] ss:$8 sps:$4 sm:$0xff]  }
 0x482   : > { %6326 = vmatpush3.bf16.msra.mxu1 %v2977_v38  ;;  %6327 = vmatprep.mubr.msk.bf16.mxu1 %vm7167_vm0, %v7166_v27  ;;  %v6619_v27 = vld [vmem:[#allocation8 + $0x40] ss:$8 sps:$4 sm:$0xff]  }
 0x483   : > { %v2641_v44 = vpack.c.bf16 %v2633_v43, %v2633_v43  ;;  %3534 = vmatpush1.bf16.msra.mxu0 %v6616_v50  ;;  %v6648_v50 = vld [vmem:[#allocation8 + $0xb4] ss:$8 sps:$4 sm:$0xff]  }
 0x484   : > { %3535 = vmatprep.subr.bf16.mxu0 %v6621_v33 }
 0x487   : > { %3536 = vmatpush1.bf16.msra.mxu0 %v6619_v27 }
 0x488   : > { %3537 = vmatprep.subr.bf16.mxu0 %v6624_v53  ;;  %v6646_v53 = vld [vmem:[#allocation8 + $0xb0] ss:$8 sps:$4 sm:$0xff]  }
 0x489   : > { %6328 = vmatmul.mubr.msk.bf16.vlgmr.msra.gmra.mxu1 %vm2545_vm2, %v2641_v44 }
 0x48b   : > { %3538 = vmatpush1.bf16.msra.mxu0 %v6622_v56 }
 0x48c   : > { %3539 = vmatprep.subr.bf16.mxu0 %v6627_v59 }
 0x48f   : > { %3540 = vmatpush1.bf16.msra.mxu0 %v6625_v52 }
 0x490   : > { %3541 = vmatprep.subr.bf16.mxu0 %v6630_v3 }
 0x493   : > { %3542 = vmatpush1.bf16.msra.mxu0 %v6628_v58  ;;  %v6649_v58 = vld [vmem:[#allocation8 + $0xa0] ss:$8 sps:$4 sm:$0xff]  }
 0x494   : > { %3543 = vmatprep.subr.bf16.mxu0 %v6633_v11 }
 0x497   : > { %3544 = vmatpush1.bf16.msra.mxu0 %v6631_v18 }
 0x498   : > { %3545 = vmatprep.subr.bf16.mxu0 %v6636_v21 }
 0x49b   : > { %3546 = vmatpush2.bf16.msra.mxu0 %v6634_v25 }
 0x49c   : > { %3547 = vmatprep.subr.bf16.mxu0 %v6639_v0 }
 0x49f   : > { %3548 = vmatpush2.bf16.msra.mxu0 %v6637_v54 }
 0x4a0   : > { %3549 = vmatprep.subr.bf16.mxu0 %v6642_v30 }
 0x4a3   : > { %3550 = vmatpush2.bf16.msra.mxu0 %v6640_v10 }
 0x4a4   : > { %3551 = vmatprep.subr.bf16.mxu0 %v6645_v49 }
 0x4a7   : > { %3552 = vmatpush2.bf16.msra.mxu0 %v6643_v41 }
 0x4a8   : > { %3553 = vmatprep.subr.bf16.mxu0 %v6648_v50 }
 0x4ab   : > { %3554 = vmatpush2.bf16.msra.mxu0 %v6646_v53 }
 0x4ec   : > { %v2691_v51 = vpop.f32.mrf.mxu1 }
 0x4ee   : > { %v6287_v26 = vpop.f32.mrf.mxu1 }
 0x4f0   : > { %v2694_v55 = vpop.f32.mrf.mxu1 }
 0x4f2   : > { %v6288_v57 = vpop.f32.mrf.mxu1 }
 0x4f4   : > { %v2737_v1 = vpop.f32.mrf.mxu1 }
 0x4f6   : > { %v6293_v2 = vpop.f32.mrf.mxu1 }
 0x4f8   : > { %v2740_v62 = vpop.f32.mrf.mxu1 }
 0x4fa   : > { %v6294_v9 = vpop.f32.mrf.mxu1 }
 0x4fc   : > { %v2783_v14 = vpop.f32.mrf.mxu1 }
 0x4fd   : > { %v3019_v15 = vcombine.low %v2691_v51, %v2783_v14  ;;  %v3020_v17 = vcombine.high %v2691_v51, %v2783_v14 }
 0x4fe   : > { %v6299_v20 = vpop.f32.mrf.mxu1 }
 0x4ff   : > { %v3027_v34 = vrot.slane %v3019_v15, %v7500_v12  ;;  %v3034_v45 = vrot.slane %v3020_v17, %v7500_v12 }
 0x500   : > { %v2786_v22 = vpop.f32.mrf.mxu1 }
 0x502   : > { %v6300_v63 = vpop.f32.mrf.mxu1 }
 0x505   : > { %v2829_v7 = vpop.f32.mrf.mxu1 }
 0x506   : > { %v3035_v28 = vcombine.low %v2737_v1, %v2829_v7  ;;  %v3036_v29 = vcombine.high %v2737_v1, %v2829_v7  ;;  %v6651_v1 = vld [vmem:[#allocation8 + $0xa4] ss:$8 sps:$4 sm:$0xff]  }
 0x507   : > { %v6305_v32 = vpop.f32.mrf.mxu1  ;;  %3555 = vmatprep.subr.bf16.mxu0 %v6651_v1 }
 0x508   : > { %v3043_v35 = vrot.slane %v3035_v28, %v7500_v12  ;;  %v3050_v24 = vrot.slane %v3036_v29, %v7500_v12  ;;  %3556 = vmatpush2.bf16.msra.mxu0 %v6649_v58 }
 0x509   : > { %v2832_v36 = vpop.f32.mrf.mxu1 }
 0x50a   : > { %v3083_v37 = vcombine.low %v3027_v34, %v3043_v35  ;;  %v3084_v16 = vcombine.high %v3027_v34, %v3043_v35  ;;  %v3099_v39 = vcombine.low %v3034_v45, %v3050_v24  ;;  %v3100_v60 = vcombine.high %v3034_v45, %v3050_v24 }
 0x50b   : > { %v6306_v40 = vpop.f32.mrf.mxu1 }
 0x50c   : > { %v3091_v42 = vrot.slane %v3083_v37, %v7507_v13  ;;  %v3098_v38 = vrot.slane %v3084_v16, %v7507_v13  ;;  %v3107_v43 = vrot.slane %v3099_v39, %v7507_v13  ;;  %v3114_v44 = vrot.slane %v3100_v60, %v7507_v13 }
 0x50e   : > { %v5900_v46 = vcombine.low %v3091_v42, %v3098_v38  ;;  %v5902_v47 = vcombine.high %v3091_v42, %v3098_v38  ;;  %v5904_v4 = vcombine.low %v3107_v43, %v3114_v44  ;;  %v5906_v48 = vcombine.high %v3107_v43, %v3114_v44 }
 0x510   : > { %v3163_v33 = vrot.slane %v5900_v46, %v7500_v12  ;;  %v3179_v51 = vrot.slane %v5902_v47, %v7500_v12  ;;  %v3195_v27 = vrot.slane %v5904_v4, %v7500_v12  ;;  %v3211_v26 = vrot.slane %v5906_v48, %v7500_v12 }
 0x512   : > { %v3220_v55 = vcombine.high %v3163_v33, %v3179_v51  ;;  %v3252_v56 = vcombine.high %v3195_v27, %v3211_v26  ;;  %v3219_v57 = vcombine.low %v3163_v33, %v3179_v51  ;;  %v3251_v59 = vcombine.low %v3195_v27, %v3211_v26  ;;  %v6652_v33 = vld [vmem:[#allocation8 + $0x90] ss:$8 sps:$4 sm:$0xff]   ;;  %v6654_v51 = vld [vmem:[#allocation8 + $0x94] ss:$8 sps:$4 sm:$0xff]  }
 0x513   : > { %3557 = vmatprep.subr.bf16.mxu0 %v6654_v51 }
 0x514   : > { %v7794_v52 = vrot.slane %v3220_v55, %v7507_v13  ;;  %v7797_v2 = vrot.slane %v3252_v56, %v7507_v13  ;;  %v7800_v3 = vrot.slane %v3219_v57, %v7507_v13  ;;  %v7803_v62 = vrot.slane %v3251_v59, %v7507_v13  ;;  %3558 = vmatpush2.bf16.msra.mxu0 %v6652_v33 }
 0x516   : > { %v2875_v9 = vpop.f32.mrf.mxu1  ;;  %v3285_v11 = vcombine.low %v7794_v52, %v7797_v2  ;;  %v3283_v14 = vcombine.low %v7800_v3, %v7803_v62  ;;  %v3284_v15 = vcombine.high %v7800_v3, %v7803_v62  ;;  %v3286_v17 = vcombine.high %v7794_v52, %v7797_v2  ;;  %v3357_v3 = vld [vmem:[%s7981_s4] sm:$0x3] }
 0x517   : > { %v3362_v62 = vrot.slane %v3357_v3, %v7445_v8 }
 0x518   : > { %v6311_v18 = vpop.f32.mrf.mxu1 }
 0x51a   : > { %v2878_v20 = vpop.f32.mrf.mxu1 }
 0x51c   : > { %v6312_v21 = vpop.f32.mrf.mxu1 }
 0x51d   : > { %v6655_v21 = vld [vmem:[#allocation8 + $0x80] ss:$8 sps:$4 sm:$0xff]  }
 0x531   : > { %v2921_v22 = vpop.f32.mrf.mxu1 }
 0x533   : > { %v6317_v25 = vpop.f32.mrf.mxu1 }
 0x535   : > { %v2924_v63 = vpop.f32.mrf.mxu1 }
 0x537   : > { %v6318_v0 = vpop.f32.mrf.mxu1 }
 0x541   : > { %v2967_v7 = vpop.f32.mrf.mxu1 }
 0x542   : > { %v3051_v30 = vcombine.low %v2875_v9, %v2967_v7  ;;  %v3052_v32 = vcombine.high %v2875_v9, %v2967_v7 }
 0x543   : > { %v6323_v54 = vpop.f32.mrf.mxu1 }
 0x544   : > { %v3059_v36 = vrot.slane %v3051_v30, %v7500_v12  ;;  %v3066_v10 = vrot.slane %v3052_v32, %v7500_v12 }
 0x545   : > { %v2970_v28 = vpop.f32.mrf.mxu1 }
 0x547   : > { %v6324_v29 = vpop.f32.mrf.mxu1 }
 0x549   : > { %v3013_v34 = vpop.f32.mrf.mxu1 }
 0x54a   : > { %v3067_v45 = vcombine.low %v2921_v22, %v3013_v34  ;;  %v3068_v35 = vcombine.high %v2921_v22, %v3013_v34  ;;  %v6657_v22 = vld [vmem:[#allocation8 + $0x84] ss:$8 sps:$4 sm:$0xff]  }
 0x54b   : > { %v6329_v24 = vpop.f32.mrf.mxu1  ;;  %3559 = vmatprep.subr.bf16.mxu0 %v6657_v22 }
 0x54c   : > { %v3075_v37 = vrot.slane %v3067_v45, %v7500_v12  ;;  %v3082_v16 = vrot.slane %v3068_v35, %v7500_v12  ;;  %3560 = vmatpush2.bf16.msra.mxu0 %v6655_v21  ;;  %v3664_v21 = vld [vmem:[#allocation11 + $0x168] sm:$0xff] }
 0x54d   : > { %v3016_v39 = vpop.f32.mrf.mxu1 }
 0x54e   : > { %v3115_v60 = vcombine.low %v3059_v36, %v3075_v37  ;;  %v3116_v49 = vcombine.high %v3059_v36, %v3075_v37  ;;  %v3131_v40 = vcombine.low %v3066_v10, %v3082_v16  ;;  %v3132_v42 = vcombine.high %v3066_v10, %v3082_v16 }
 0x54f   : > { %v6330_v38 = vpop.f32.mrf.mxu1 }
 0x550   : > { %v3123_v43 = vrot.slane %v3115_v60, %v7507_v13  ;;  %v3130_v44 = vrot.slane %v3116_v49, %v7507_v13  ;;  %v3139_v41 = vrot.slane %v3131_v40, %v7507_v13  ;;  %v3146_v46 = vrot.slane %v3132_v42, %v7507_v13  ;;  %v6886_v38 = vld [vmem:[%s7415_s13] sm:$0xff] }
 0x552   : > { %v5901_v47 = vcombine.low %v3123_v43, %v3130_v44  ;;  %v5903_v4 = vcombine.high %v3123_v43, %v3130_v44  ;;  %v5905_v48 = vcombine.low %v3139_v41, %v3146_v46  ;;  %v5907_v50 = vcombine.high %v3139_v41, %v3146_v46  ;;  %v6887_v44 = vld [vmem:[%s7415_s13 + $0x8] sm:$0xff] }
 0x554   : > { %v3170_v27 = vrot.slane %v5901_v47, %v7500_v12  ;;  %v3186_v26 = vrot.slane %v5903_v4, %v7500_v12  ;;  %v3202_v53 = vrot.slane %v5905_v48, %v7500_v12  ;;  %v3218_v55 = vrot.slane %v5907_v50, %v7500_v12  ;;  %v3675_v4 = vld [vmem:[#allocation11 + $0x1c0] sm:$0xff]  ;;  %v3676_v50 = vld [vmem:[#allocation11 + $0x1c8] sm:$0xff] }
 0x555   : > { %v3679_v48 = vld [vmem:[#allocation11 + $0x1e0] sm:$0xff] }
 0x556   : > { %v3236_v56 = vcombine.high %v3170_v27, %v3186_v26  ;;  %v3268_v57 = vcombine.high %v3202_v53, %v3218_v55  ;;  %v3235_v59 = vcombine.low %v3170_v27, %v3186_v26  ;;  %v3267_v1 = vcombine.low %v3202_v53, %v3218_v55  ;;  %v3680_v27 = vld [vmem:[#allocation11 + $0x1e8] sm:$0xff]  ;;  %v3667_v26 = vld [vmem:[#allocation11 + $0x180] sm:$0xff] }
 0x557   : > { %v5996_v33 = vcombine.low %v3675_v4, %v3679_v48  ;;  %v5997_v51 = vcombine.high %v3675_v4, %v3679_v48  ;;  %v3671_v53 = vld [vmem:[#allocation11 + $0x1a0] sm:$0xff]  ;;  %v5998_v55 = vcombine.low %v3676_v50, %v3680_v27  ;;  %v3620_v48 = vld [vmem:[#allocation11 + $0x8] sm:$0xff] }
 0x558   : > { %v3250_v58 = vrot.slane %v3236_v56, %v7507_v13  ;;  %v3282_v9 = vrot.slane %v3268_v57, %v7507_v13  ;;  %v3243_v18 = vrot.slane %v3235_v59, %v7507_v13  ;;  %v3275_v20 = vrot.slane %v3267_v1, %v7507_v13  ;;  %v3668_v59 = vld [vmem:[#allocation11 + $0x188] sm:$0xff]  ;;  %v3623_v4 = vld [vmem:[#allocation11 + $0x20] sm:$0xff] }
 0x559   : > { %v5999_v56 = vcombine.high %v3676_v50, %v3680_v27  ;;  %v5989_v57 = vcombine.high %v3667_v26, %v3671_v53  ;;  %v3672_v1 = vld [vmem:[#allocation11 + $0x1a8] sm:$0xff]  ;;  %4429 = vmatprep.subr.bf16.mxu1 %v5997_v51  ;;  %v5988_v22 = vcombine.low %v3667_v26, %v3671_v53  ;;  %v3739_v53 = vld [vmem:[#allocation11 + $0x3c0] sm:$0xff] }
 0x55a   : > { %v3289_v25 = vcombine.low %v3250_v58, %v3282_v9  ;;  %v3288_v63 = vcombine.high %v3243_v18, %v3275_v20  ;;  %v3287_v0 = vcombine.low %v3243_v18, %v3275_v20  ;;  %v3290_v54 = vcombine.high %v3250_v58, %v3282_v9  ;;  %v3659_v58 = vld [vmem:[#allocation11 + $0x140] sm:$0xff]  ;;  %v3660_v20 = vld [vmem:[#allocation11 + $0x148] sm:$0xff]  ;;  %4430 = vmatpush1.bf16.msra.mxu1 %v5996_v33 }
 0x55b   : > { %v5991_v9 = vcombine.high %v3668_v59, %v3672_v1  ;;  %v3663_v18 = vld [vmem:[#allocation11 + $0x160] sm:$0xff]  ;;  %4470 = vmatprep.subr.bf16.mxu0 %v5999_v56  ;;  %4431 = vmatprep.subr.bf16.mxu1 %v5989_v57  ;;  %v3624_v50 = vld [vmem:[#allocation11 + $0x28] sm:$0xff] }
 0x55c   : > { %v6456_v12 = vpack.i.bf16 %v3285_v11, %v3289_v25  ;;  %v6451_v7 = vpack.i.bf16 %v3284_v15, %v3288_v63  ;;  %v6461_v13 = vpack.i.bf16 %v3286_v17, %v3290_v54  ;;  %v5990_v25 = vcombine.low %v3668_v59, %v3672_v1  ;;  %v3652_v54 = vld [vmem:[#allocation11 + $0x108] sm:$0xff] }
 0x55d   : > { %v5981_v63 = vcombine.high %v3659_v58, %v3663_v18  ;;  %v5943_v26 = vcombine.high %v3620_v48, %v3624_v50  ;;  %v3740_v56 = vld [vmem:[#allocation11 + $0x3c8] sm:$0xff]  ;;  %v5942_v1 = vcombine.low %v3620_v48, %v3624_v50 }
 0x55e   : > { %6457 = vrot.lane.b32.xlu0 %v6456_v12, %s7165_s8  ;;  %6452 = vrot.lane.b32.xlu1 %v6451_v7, %s7163_s2  ;;  %v3651_v12 = vld [vmem:[#allocation11 + $0x100] sm:$0xff]  ;;  %v3744_v57 = vld [vmem:[#allocation11 + $0x3e8] sm:$0xff]  ;;  %s539_s8 = scalar_lea.vmem [#allocation14], %s5756_s24 }
 0x55f   : > { %v3655_v7 = vld [vmem:[#allocation11 + $0x120] sm:$0xff]  ;;  %4432 = vmatpush1.bf16.msra.mxu1 %v5988_v22  ;;  %v3736_v22 = vld [vmem:[#allocation11 + $0x3a8] sm:$0xff]  ;;  %s5616_s15 = sshll.u32 %s539_s8, 4  ;;  %s5617_s15 = int_to_ptr.vmem [resolvable:$true] %s5616_s15 }
 0x560   : > { %4433 = vmatprep.subr.bf16.mxu1 %v5981_v63  ;;  %v6062_v63 = vcombine.low %v3740_v56, %v3744_v57  ;;  %s7072_s18 = scalar_lea.vmem %s5617_s15, 256 }
 0x561   : > { %p7073_p12 = scmp.ne.s32.totalorder %s5617_s15, %s7072_s18 }
 0x562   : > { %6462 = vrot.lane.b32.xlu1 %v6461_v13, %s7164_s3  ;;  %v3656_v13 = vld [vmem:[#allocation11 + $0x128] sm:$0xff]  ;;  %s6202_s3 = sshll.u32 %s7262_s14, 8  ;;  %s7170_s14 = smov [#allocation14]  }
 0x563   : > { %s7940_s1 = scalar_lea.hbm %s8031_s22, %s6202_s3  ;;  %p7074_p0 = pnand %p7073_p12, %p8032_p13 }
 0x564   : > { %s7076_s24 = sshll.u32 %s7170_s14, 4  ;;  %s7077_s24 = int_to_ptr.vmem [resolvable:$false] %s7076_s24 }
 0x565   : > { %p7075_p2 = pneg %p7074_p0  ;;  %s7078_s29 = scalar_lea.vmem %s7077_s24, 512 }
 0x566   : > { %p7079_p1 = scmp.lt.s32.totalorder %s5617_s15, %s7077_s24  ;;  %p7080_p4 = scmp.lt.s32.totalorder %s7078_s29, %s7072_s18 }
 0x568   : > { %p7081_p7 = por %p7080_p4, %p7079_p1 }
 0x56a   : > { %p7082_p6 = pnand %p7081_p7, %p7075_p2 }
 0x5d0   : > { %v6458_v28 = vpop.permute.xlu0 %6457  ;;  %v6453_v29 = vpop.permute.xlu1 %6452 }
 0x5d1   : > { %v6455_v30 = vunpack.i.h.bf16 %v6453_v29  ;;  %v6454_v32 = vunpack.i.l.bf16 %v6453_v29  ;;  %v6460_v11 = vunpack.i.h.bf16 %v6458_v28  ;;  %v6459_v34 = vunpack.i.l.bf16 %v6458_v28 }
 0x5d2   : > { %v5980_v28 = vcombine.low %v3659_v58, %v3663_v18  ;;  %v5982_v29 = vcombine.low %v3660_v20, %v3664_v21  ;;  %v3731_v18 = vld [vmem:[#allocation11 + $0x380] sm:$0xff] }
 0x5d3   : > { %v3315_v15 = vsel %vm2176_vm1, %v3283_v14, %v6455_v30  ;;  %v3320_v45 = vsel %vm2176_vm1, %v3287_v0, %v6454_v32  ;;  %v3366_v14 = vrot.slane %v3357_v3, %v7469_v23  ;;  %v5983_v0 = vcombine.high %v3660_v20, %v3664_v21  ;;  %v3735_v20 = vld [vmem:[#allocation11 + $0x3a0] sm:$0xff]  ;;  %v3732_v21 = vld [vmem:[#allocation11 + $0x388] sm:$0xff] }
 0x5d4   : > { %v6463_v35 = vpop.permute.xlu1 %6462  ;;  %v3317_v17 = vsel %vm3316_vm4, %v3315_v15, %v6460_v11  ;;  %v3321_v24 = vsel %vm3316_vm4, %v3320_v45, %v6459_v34  ;;  %v5973_v30 = vcombine.high %v3651_v12, %v3655_v7  ;;  %v5975_v32 = vcombine.high %v3652_v54, %v3656_v13  ;;  %v3643_v11 = vld [vmem:[#allocation11 + $0xc0] sm:$0xff]  ;;  %v3644_v15 = vld [vmem:[#allocation11 + $0xc8] sm:$0xff]  ;;  %4434 = vmatpush1.bf16.msra.mxu1 %v5980_v28 }
 0x5d5   : > { %v6465_v52 = vunpack.i.h.bf16 %v6463_v35  ;;  %v6464_v2 = vunpack.i.l.bf16 %v6463_v35  ;;  %v3647_v34 = vld [vmem:[#allocation11 + $0xe0] sm:$0xff]  ;;  %v3648_v45 = vld [vmem:[#allocation11 + $0xe8] sm:$0xff]  ;;  %v5972_v35 = vcombine.low %v3651_v12, %v3655_v7  ;;  %v6055_v12 = vcombine.high %v3732_v21, %v3736_v22 }
 0x5d6   : > { %4435 = vmatprep.subr.bf16.mxu1 %v5973_v30  ;;  %v5966_v3 = vcombine.low %v3644_v15, %v3648_v45  ;;  %v6052_v7 = vcombine.low %v3731_v18, %v3735_v20 }
 0x5d7   : > { %v3319_v36 = vsel %vm3318_vm5, %v3317_v17, %v6465_v52  ;;  %v3322_v10 = vsel %vm3318_vm5, %v3321_v24, %v6464_v2  ;;  %v5974_v52 = vcombine.low %v3652_v54, %v3656_v13  ;;  %v5965_v2 = vcombine.high %v3643_v11, %v3647_v34  ;;  %v3635_v24 = vld [vmem:[#allocation11 + $0x80] sm:$0xff] }
 0x5d8   : > { %v3323_v37 = vpack.c.bf16 %v3319_v36, %v3319_v36  ;;  %v3324_v16 = vpack.c.bf16 %v3322_v10, %v3322_v10  ;;  %v5967_v17 = vcombine.high %v3644_v15, %v3648_v45  ;;  %v3639_v36 = vld [vmem:[#allocation11 + $0xa0] sm:$0xff]  ;;  %v3636_v10 = vld [vmem:[#allocation11 + $0x88] sm:$0xff]  ;;  %4436 = vmatpush1.bf16.msra.mxu1 %v5972_v35  ;;  %v6054_v54 = vcombine.low %v3732_v21, %v3736_v22 }
 0x5d9   : > { %4437 = vmatprep.subr.bf16.mxu1 %v5965_v2  ;;  %v3723_v15 = vld [vmem:[#allocation11 + $0x340] sm:$0xff]  ;;  %v3724_v35 = vld [vmem:[#allocation11 + $0x348] sm:$0xff] }
 0x5da   : > { %3561 = vmatprep.mubr.bf16.mxu0 %v3324_v16  ;;  %v5964_v16 = vcombine.low %v3643_v11, %v3647_v34  ;;  %v3727_v45 = vld [vmem:[#allocation11 + $0x360] sm:$0xff] }
 0x5db   : > { %3562 = vmatmul.mubr.bf16.vlgmr.msra.gmra.mxu0 %v3323_v37  ;;  %v3640_v37 = vld [vmem:[#allocation11 + $0xa8] sm:$0xff]  ;;  %v6045_v2 = vcombine.high %v3723_v15, %v3727_v45 }
 0x5dc   : > { %4471 = vmatpush1.bf16.msra.mxu0 %v5998_v55  ;;  %4438 = vmatpush1.bf16.msra.mxu1 %v5964_v16  ;;  %v3743_v55 = vld [vmem:[#allocation11 + $0x3e0] sm:$0xff]  ;;  %v3720_v16 = vld [vmem:[#allocation11 + $0x328] sm:$0xff] }
 0x5dd   : > { %4472 = vmatprep.subr.bf16.mxu0 %v5991_v9  ;;  %v6061_v58 = vcombine.high %v3739_v53, %v3743_v55  ;;  %v6063_v9 = vcombine.high %v3740_v56, %v3744_v57 }
 0x5e0   : > { %4473 = vmatpush1.bf16.msra.mxu0 %v5990_v25  ;;  %v6060_v25 = vcombine.low %v3739_v53, %v3743_v55  ;;  %v3692_v53 = vld [vmem:[#allocation11 + $0x248] sm:$0xff] }
 0x5e1   : > { %4474 = vmatprep.subr.bf16.mxu0 %v5983_v0  ;;  %v6053_v0 = vcombine.high %v3731_v18, %v3735_v20  ;;  %v3696_v55 = vld [vmem:[#allocation11 + $0x268] sm:$0xff] }
 0x5e2   : > { %v3684_v18 = vld [vmem:[#allocation11 + $0x208] sm:$0xff]  ;;  %v6014_v22 = vcombine.low %v3692_v53, %v3696_v55 }
 0x5e3   : > { %v3688_v20 = vld [vmem:[#allocation11 + $0x228] sm:$0xff] }
 0x5e4   : > { %4475 = vmatpush1.bf16.msra.mxu0 %v5982_v29 }
 0x5e5   : > { %4476 = vmatprep.subr.bf16.mxu0 %v5975_v32 }
 0x5e8   : > { %4477 = vmatpush1.bf16.msra.mxu0 %v5974_v52  ;;  %v6044_v52 = vcombine.low %v3723_v15, %v3727_v45 }
 0x5e9   : > { %4478 = vmatprep.subr.bf16.mxu0 %v5967_v17  ;;  %v3728_v17 = vld [vmem:[#allocation11 + $0x368] sm:$0xff] }
 0x5ec   : > { %4479 = vmatpush1.bf16.msra.mxu0 %v5966_v3  ;;  %v3707_v3 = vld [vmem:[#allocation11 + $0x2c0] sm:$0xff] }
 0x69b   : > { %v3563_v39 = vpop.f32.mrf.mxu0 }
 0x69c   : > { %v3564_v60 = vadd.f32 %v3563_v39, %v3362_v62  ;;  %v5957_v62 = vcombine.high %v3635_v24, %v3639_v36  ;;  %v3627_v39 = vld [vmem:[#allocation11 + $0x40] sm:$0xff] }
 0x69d   : > { %v3565_v49 = vpop.f32.mrf.mxu0 }
 0x69e   : > { %v3566_v40 = vadd.f32 %v3565_v49, %v3366_v14  ;;  %v7852_v43 = vadd.f32 %v6886_v38, %v3564_v60  ;;  %v5959_v14 = vcombine.high %v3636_v10, %v3640_v37  ;;  %v3631_v60 = vld [vmem:[#allocation11 + $0x60] sm:$0xff]  ;;  %v3628_v49 = vld [vmem:[#allocation11 + $0x48] sm:$0xff]  ;;  %4439 = vmatprep.subr.bf16.mxu1 %v5957_v62  ;;  %v5958_v38 = vcombine.low %v3636_v10, %v3640_v37 }
 0x69f   : > { %v3567_v42 = vpop.f32.mrf.mxu0  ;;  %v5948_v33 = vcombine.low %v3627_v39, %v3631_v60  ;;  %v6047_v10 = vcombine.high %v3724_v35, %v3728_v17  ;;  %v3716_v37 = vld [vmem:[#allocation11 + $0x308] sm:$0xff] }
 0x6a0   : > { %v7855_v41 = vadd.f32 %v6887_v44, %v3566_v40  ;;  %v3632_v40 = vld [vmem:[#allocation11 + $0x68] sm:$0xff]  ;;  %v5956_v42 = vcombine.low %v3635_v24, %v3639_v36  ;;  %v5949_v44 = vcombine.high %v3627_v39, %v3631_v60  ;;  %4480 = vmatprep.subr.bf16.mxu0 %v5959_v14  ;;  %v3715_v24 = vld [vmem:[#allocation11 + $0x300] sm:$0xff]  ;;  %v6046_v36 = vcombine.low %v3724_v35, %v3728_v17  ;;  %v3573_v17 = vld [vmem:[%s7983_s6] sm:$0x3] }
 0x6a1   : > { %v3568_v46 = vpop.f32.mrf.mxu0  ;;  %4481 = vmatpush1.bf16.msra.mxu0 %v5958_v38  ;;  %v5950_v51 = vcombine.low %v3628_v49, %v3632_v40  ;;  %v6039_v62 = vcombine.high %v3716_v37, %v3720_v16  ;;  %v3711_v14 = vld [vmem:[#allocation11 + $0x2e0] sm:$0xff]  ;;  %v3708_v39 = vld [vmem:[#allocation11 + $0x2c8] sm:$0xff] }
 0x6a2   : > { %v3574_v47 = vadd.f32 %v7855_v41, %v7852_v43  ;;  %v5951_v46 = vcombine.high %v3628_v49, %v3632_v40  ;;  %4440 = vmatpush1.bf16.msra.mxu1 %v5956_v42  ;;  %v3712_v60 = vld [vmem:[#allocation11 + $0x2e8] sm:$0xff]  ;;  %v6038_v40 = vcombine.low %v3716_v37, %v3720_v16  ;;  %v6029_v42 = vcombine.high %v3707_v3, %v3711_v14 }
 0x6a3   : > { %4441 = vmatprep.subr.bf16.mxu1 %v5949_v44  ;;  %v6031_v38 = vcombine.high %v3708_v39, %v3712_v60  ;;  %v3699_v44 = vld [vmem:[#allocation11 + $0x280] sm:$0xff]  ;;  %v6028_v48 = vcombine.low %v3707_v3, %v3711_v14  ;;  %v6030_v50 = vcombine.low %v3708_v39, %v3712_v60  ;;  %v3608_v16 = vrot.slane %v3573_v17, %v7445_v8  ;;  %v3669_v60 = vld [vmem:[#allocation11 + $0x190] sm:$0xff] }
 0x6a4   : > { %3575 = vadd.xlane.f32.xlu1 %v3574_v47  ;;  %v3619_v47 = vld [vmem:[#allocation11] sm:$0xff]  ;;  %4482 = vmatprep.subr.bf16.mxu0 %v5951_v46 }
 0x6a5   : > { %v5941_v27 = vcombine.high %v3619_v47, %v3623_v4  ;;  %v5940_v59 = vcombine.low %v3619_v47, %v3623_v4  ;;  %4483 = vmatpush1.bf16.msra.mxu0 %v5950_v51  ;;  %v3703_v46 = vld [vmem:[#allocation11 + $0x2a0] sm:$0xff]  ;;  %v3700_v47 = vld [vmem:[#allocation11 + $0x288] sm:$0xff] }
 0x6a6   : > { %4442 = vmatpush1.bf16.msra.mxu1 %v5948_v33  ;;  %4484 = vmatprep.subr.bf16.mxu0 %v5943_v26  ;;  %v3704_v4 = vld [vmem:[#allocation11 + $0x2a8] sm:$0xff]  ;;  %v6021_v33 = vcombine.high %v3699_v44, %v3703_v46  ;;  %v3695_v26 = vld [vmem:[#allocation11 + $0x260] sm:$0xff]  ;;  %v6020_v56 = vcombine.low %v3699_v44, %v3703_v46 }
 0x6a7   : > { %4443 = vmatprep.subr.bf16.mxu1 %v5941_v27  ;;  %v6023_v51 = vcombine.high %v3700_v47, %v3704_v4  ;;  %v3691_v27 = vld [vmem:[#allocation11 + $0x240] sm:$0xff]  ;;  %v6022_v57 = vcombine.low %v3700_v47, %v3704_v4  ;;  %v3665_v47 = vld [vmem:[#allocation11 + $0x170] sm:$0xff]  ;;  %v3662_v4 = vld [vmem:[#allocation11 + $0x158] sm:$0xff] }
 0x6a8   : > { %v6012_v21 = vcombine.low %v3691_v27, %v3695_v26 }
 0x6a9   : > { %4485 = vmatpush1.bf16.msra.mxu0 %v5942_v1  ;;  %v6015_v1 = vcombine.high %v3692_v53, %v3696_v55  ;;  %v3657_v53 = vld [vmem:[#allocation11 + $0x130] sm:$0xff]  ;;  %v3654_v55 = vld [vmem:[#allocation11 + $0x118] sm:$0xff] }
 0x6aa   : > { %4444 = vmatpush1.bf16.msra.mxu1 %v5940_v59  ;;  %4486 = vmatprep.subr.bf16.mxu0 %v6063_v9  ;;  %v6013_v59 = vcombine.high %v3691_v27, %v3695_v26  ;;  %v3687_v9 = vld [vmem:[#allocation11 + $0x220] sm:$0xff]  ;;  %v3653_v26 = vld [vmem:[#allocation11 + $0x110] sm:$0xff] }
 0x6ab   : > { %4445 = vmatprep.subr.bf16.mxu1 %v6061_v58  ;;  %v3683_v58 = vld [vmem:[#allocation11 + $0x200] sm:$0xff] }
 0x6ad   : > { %4487 = vmatpush2.bf16.msra.mxu0 %v6062_v63  ;;  %v6007_v63 = vcombine.high %v3684_v18, %v3688_v20 }
 0x6ae   : > { %4446 = vmatpush2.bf16.msra.mxu1 %v6060_v25  ;;  %4488 = vmatprep.subr.bf16.mxu0 %v6055_v12  ;;  %v6005_v25 = vcombine.high %v3683_v58, %v3687_v9  ;;  %v6006_v12 = vcombine.low %v3684_v18, %v3688_v20  ;;  %v3649_v18 = vld [vmem:[#allocation11 + $0xf0] sm:$0xff]  ;;  %v3646_v20 = vld [vmem:[#allocation11 + $0xd8] sm:$0xff] }
 0x6af   : > { %4447 = vmatprep.subr.bf16.mxu1 %v6053_v0  ;;  %v6004_v0 = vcombine.low %v3683_v58, %v3687_v9  ;;  %v3645_v9 = vld [vmem:[#allocation11 + $0xd0] sm:$0xff] }
 0x6b1   : > { %4489 = vmatpush2.bf16.msra.mxu0 %v6054_v54  ;;  %v3681_v54 = vld [vmem:[#allocation11 + $0x1f0] sm:$0xff] }
 0x6b2   : > { %4448 = vmatpush2.bf16.msra.mxu1 %v6052_v7  ;;  %4490 = vmatprep.subr.bf16.mxu0 %v6047_v10  ;;  %v3677_v7 = vld [vmem:[#allocation11 + $0x1d0] sm:$0xff] }
 0x6b3   : > { %4449 = vmatprep.subr.bf16.mxu1 %v6045_v2  ;;  %v3572_v2 = vld [vmem:[%s7982_s5] sm:$0x3] }
 0x6b5   : > { %4491 = vmatpush2.bf16.msra.mxu0 %v6046_v36 }
 0x6b6   : > { %4450 = vmatpush2.bf16.msra.mxu1 %v6044_v52  ;;  %4492 = vmatprep.subr.bf16.mxu0 %v6039_v62 }
 0x6b9   : > { %4493 = vmatpush2.bf16.msra.mxu0 %v6038_v40  ;;  %v3670_v40 = vld [vmem:[#allocation11 + $0x198] sm:$0xff] }
 0x6ba   : > { %4494 = vmatprep.subr.bf16.mxu0 %v6031_v38 }
 0x6bd   : > { %4495 = vmatpush2.bf16.msra.mxu0 %v6030_v50 }
 0x6be   : > { %4496 = vmatprep.subr.bf16.mxu0 %v6023_v51 }
 0x6c1   : > { %4497 = vmatpush2.bf16.msra.mxu0 %v6022_v57 }
 0x6c2   : > { %4498 = vmatprep.subr.bf16.mxu0 %v6015_v1  ;;  %v5977_v1 = vcombine.high %v3653_v26, %v3657_v53 }
 0x6c5   : > { %4499 = vmatpush2.bf16.msra.mxu0 %v6014_v22  ;;  %v5976_v22 = vcombine.low %v3653_v26, %v3657_v53 }
 0x6c6   : > { %4500 = vmatprep.subr.bf16.mxu0 %v6007_v63  ;;  %v5969_v63 = vcombine.high %v3645_v9, %v3649_v18 }
 0x6c9   : > { %4501 = vmatpush2.bf16.msra.mxu0 %v6006_v12  ;;  %v3637_v12 = vld [vmem:[#allocation11 + $0x90] sm:$0xff] }
 0x72d   : > { %v3576_v13 = vpop.xlane.xlu1 %3575 }
 0x72e   : > { %v3578_v28 = vmul.f32 0.00390625, %v3576_v13  ;;  %v3678_v13 = vld [vmem:[#allocation11 + $0x1d8] sm:$0xff] }
 0x730   : > { %v7860_v29 = vsub.f32 %v7852_v43, %v3578_v28  ;;  %v7863_v30 = vsub.f32 %v7855_v41, %v3578_v28  ;;  %v3719_v43 = vld [vmem:[#allocation11 + $0x320] sm:$0xff]  ;;  %v6000_v28 = vcombine.low %v3677_v7, %v3681_v54 }
 0x731   : > { %v6037_v41 = vcombine.high %v3715_v24, %v3719_v43  ;;  %v6036_v49 = vcombine.low %v3715_v24, %v3719_v43  ;;  %v3599_v24 = vrot.slane %v3572_v2, %v7469_v23  ;;  %v3595_v43 = vrot.slane %v3572_v2, %v7445_v8 }
 0x732   : > { %v3581_v32 = vmul.f32 %v7860_v29, %v7860_v29  ;;  %v3582_v11 = vmul.f32 %v7863_v30, %v7863_v30 }
 0x733   : > { %4451 = vmatprep.subr.bf16.mxu1 %v6037_v41  ;;  %v3612_v41 = vrot.slane %v3573_v17, %v7469_v23 }
 0x734   : > { %v3583_v34 = vadd.f32 %v3582_v11, %v3581_v32  ;;  %4452 = vmatpush2.bf16.msra.mxu1 %v6036_v49  ;;  %v6001_v32 = vcombine.high %v3677_v7, %v3681_v54  ;;  %v3682_v11 = vld [vmem:[#allocation11 + $0x1f8] sm:$0xff]  ;;  %v3673_v49 = vld [vmem:[#allocation11 + $0x1b0] sm:$0xff] }
 0x735   : > { %4453 = vmatprep.subr.bf16.mxu1 %v6029_v42  ;;  %v6003_v15 = vcombine.high %v3678_v13, %v3682_v11  ;;  %v3674_v42 = vld [vmem:[#allocation11 + $0x1b8] sm:$0xff]  ;;  %v5993_v44 = vcombine.high %v3669_v60, %v3673_v49  ;;  %v5992_v50 = vcombine.low %v3669_v60, %v3673_v49  ;;  %v3641_v7 = vld [vmem:[#allocation11 + $0xb0] sm:$0xff] }
 0x736   : > { %3584 = vadd.xlane.f32.xlu0 %v3583_v34  ;;  %v6002_v34 = vcombine.low %v3678_v13, %v3682_v11  ;;  %v5995_v46 = vcombine.high %v3670_v40, %v3674_v42  ;;  %v3638_v54 = vld [vmem:[#allocation11 + $0x98] sm:$0xff]  ;;  %v5961_v11 = vcombine.high %v3637_v12, %v3641_v7  ;;  %v5960_v2 = vcombine.low %v3637_v12, %v3641_v7  ;;  %v3741_v49 = vld [vmem:[#allocation11 + $0x3d0] sm:$0xff] }
 0x737   : > { %4552 = vmatprep.subr.bf16.mxu0 %v6003_v15  ;;  %v3642_v13 = vld [vmem:[#allocation11 + $0xb8] sm:$0xff]  ;;  %v3629_v15 = vld [vmem:[#allocation11 + $0x50] sm:$0xff] }
 0x738   : > { %4454 = vmatpush2.bf16.msra.mxu1 %v6028_v48  ;;  %v3666_v48 = vld [vmem:[#allocation11 + $0x178] sm:$0xff]  ;;  %v5962_v17 = vcombine.low %v3638_v54, %v3642_v13 }
 0x739   : > { %4455 = vmatprep.subr.bf16.mxu1 %v6021_v33  ;;  %v5994_v33 = vcombine.low %v3670_v40, %v3674_v42  ;;  %v5987_v27 = vcombine.high %v3662_v4, %v3666_v48  ;;  %v3745_v40 = vld [vmem:[#allocation11 + $0x3f0] sm:$0xff]  ;;  %v3742_v42 = vld [vmem:[#allocation11 + $0x3d8] sm:$0xff] }
 0x73c   : > { %4456 = vmatpush2.bf16.msra.mxu1 %v6020_v56  ;;  %v3658_v56 = vld [vmem:[#allocation11 + $0x138] sm:$0xff] }
 0x73d   : > { %4457 = vmatprep.subr.bf16.mxu1 %v6013_v59  ;;  %v5986_v59 = vcombine.low %v3662_v4, %v3666_v48  ;;  %v5979_v58 = vcombine.high %v3654_v55, %v3658_v56  ;;  %v3733_v4 = vld [vmem:[#allocation11 + $0x390] sm:$0xff] }
 0x73e   : > { %v3737_v48 = vld [vmem:[#allocation11 + $0x3b0] sm:$0xff] }
 0x73f   : > { %v6057_v26 = vcombine.high %v3733_v4, %v3737_v48 }
 0x740   : > { %4458 = vmatpush2.bf16.msra.mxu1 %v6012_v21  ;;  %v3650_v21 = vld [vmem:[#allocation11 + $0xf8] sm:$0xff] }
 0x741   : > { %4459 = vmatprep.subr.bf16.mxu1 %v6005_v25  ;;  %v5978_v25 = vcombine.low %v3654_v55, %v3658_v56  ;;  %v3725_v55 = vld [vmem:[#allocation11 + $0x350] sm:$0xff] }
 0x742   : > { %v3729_v56 = vld [vmem:[#allocation11 + $0x370] sm:$0xff] }
 0x744   : > { %4460 = vmatpush2.bf16.msra.mxu1 %v6004_v0  ;;  %v5971_v0 = vcombine.high %v3646_v20, %v3650_v21 }
 0x745   : > { %4511 = vmatprep.subr.bf16.mxu1 %v6001_v32  ;;  %v5970_v32 = vcombine.low %v3646_v20, %v3650_v21  ;;  %v3717_v20 = vld [vmem:[#allocation11 + $0x310] sm:$0xff] }
 0x746   : > { %v3721_v21 = vld [vmem:[#allocation11 + $0x330] sm:$0xff] }
 0x747   : > { %v6041_v12 = vcombine.high %v3717_v20, %v3721_v21 }
 0x7bf   : > { %v3585_v45 = vpop.xlane.xlu0 %3584 }
 0x7c0   : > { %v3586_v35 = vmul.f32 0.00390625, %v3585_v45  ;;  %v3633_v45 = vld [vmem:[#allocation11 + $0x70] sm:$0xff] }
 0x7c2   : > { %v3587_v52 = vadd.f32 1e-05, %v3586_v35  ;;  %v3630_v35 = vld [vmem:[#allocation11 + $0x58] sm:$0xff] }
 0x7c4   : > { %6882 = vrsqrt.f32 %v3587_v52  ;;  %v3634_v52 = vld [vmem:[#allocation11 + $0x78] sm:$0xff] }
 0x7d1   : > { %v6883_v36 = vpop.eup %6882 }
 0x7d2   : > { %v3590_v10 = vmul.f32 %v6883_v36, %v7863_v30  ;;  %v3589_v37 = vmul.f32 %v6883_v36, %v7860_v29  ;;  %v3661_v29 = vld [vmem:[#allocation11 + $0x150] sm:$0xff] }
 0x7d3   : > { %v5985_v51 = vcombine.high %v3661_v29, %v3665_v47  ;;  %v5984_v57 = vcombine.low %v3661_v29, %v3665_v47  ;;  %v3621_v36 = vld [vmem:[#allocation11 + $0x10] sm:$0xff] }
 0x7d4   : > { %v3603_v3 = vmul.f32 %v3599_v24, %v3590_v10  ;;  %v3602_v62 = vmul.f32 %v3595_v43, %v3589_v37  ;;  %v5953_v24 = vcombine.high %v3629_v15, %v3633_v45  ;;  %v5955_v43 = vcombine.high %v3630_v35, %v3634_v52  ;;  %v3625_v10 = vld [vmem:[#allocation11 + $0x30] sm:$0xff]  ;;  %v3626_v37 = vld [vmem:[#allocation11 + $0x38] sm:$0xff] }
 0x7d5   : > { %v5944_v29 = vcombine.low %v3621_v36, %v3625_v10 }
 0x7d6   : > { %v7881_v14 = vadd.f32 %v3612_v41, %v3603_v3  ;;  %v7883_v39 = vadd.f32 %v3608_v16, %v3602_v62  ;;  %v3622_v41 = vld [vmem:[#allocation11 + $0x18] sm:$0xff]  ;;  %v5952_v16 = vcombine.low %v3629_v15, %v3633_v45  ;;  %v5954_v3 = vcombine.low %v3630_v35, %v3634_v52  ;;  %v3701_v35 = vld [vmem:[#allocation11 + $0x290] sm:$0xff] }
 0x7d7   : > { %v5945_v62 = vcombine.high %v3621_v36, %v3625_v10  ;;  %v5947_v60 = vcombine.high %v3622_v41, %v3626_v37  ;;  %v3705_v52 = vld [vmem:[#allocation11 + $0x2b0] sm:$0xff] }
 0x7d8   : > { %v3618_v38 = vpack.c.bf16 %v7881_v14, %v7881_v14  ;;  %v7889_v30 = vpack.c.bf16 %v7883_v39, %v7883_v39  ;;  %v6025_v36 = vcombine.high %v3701_v35, %v3705_v52 }
 0x7da   : > { %4461 = vmatprep.mubr.bf16.mxu1 %v3618_v38  ;;  %4502 = vmatprep.mubr.bf16.mxu0 %v3618_v38 }
 0x7db   : > { %4462 = vmatmul.mubr.bf16.vlgmr.msra.gmra.mxu1 %v7889_v30  ;;  %4503 = vmatmul.mubr.bf16.vlgmr.msra.gmra.mxu0 %v7889_v30 }
 0x7dc   : > { %4512 = vmatpush1.bf16.msra.mxu1 %v6000_v28  ;;  %4553 = vmatpush1.bf16.msra.mxu0 %v6002_v34  ;;  %v5968_v28 = vcombine.low %v3645_v9, %v3649_v18  ;;  %v5963_v34 = vcombine.high %v3638_v54, %v3642_v13  ;;  %v6049_v9 = vcombine.high %v3725_v55, %v3729_v56  ;;  %v3709_v54 = vld [vmem:[#allocation11 + $0x2d0] sm:$0xff] }
 0x7dd   : > { %4543 = vmatprep.mubr.bf16.mxu1 %v3618_v38  ;;  %4584 = vmatprep.mubr.bf16.mxu0 %v3618_v38  ;;  %v3746_v38 = vld [vmem:[#allocation11 + $0x3f8] sm:$0xff]  ;;  %v3713_v13 = vld [vmem:[#allocation11 + $0x2f0] sm:$0xff] }
 0x7de   : > { %4513 = vmatprep.subr.bf16.mxu1 %v5993_v44  ;;  %4554 = vmatprep.subr.bf16.mxu0 %v5995_v46  ;;  %v5946_v44 = vcombine.low %v3622_v41, %v3626_v37  ;;  %v6065_v46 = vcombine.high %v3741_v49, %v3745_v40  ;;  %v6067_v47 = vcombine.high %v3742_v42, %v3746_v38  ;;  %v3693_v41 = vld [vmem:[#allocation11 + $0x250] sm:$0xff] }
 0x7df   : > { %v6033_v15 = vcombine.high %v3709_v54, %v3713_v13  ;;  %v3697_v37 = vld [vmem:[#allocation11 + $0x270] sm:$0xff] }
 0x7e0   : > { %4514 = vmatpush1.bf16.msra.mxu1 %v5992_v50  ;;  %4555 = vmatpush1.bf16.msra.mxu0 %v5994_v33  ;;  %v3734_v50 = vld [vmem:[#allocation11 + $0x398] sm:$0xff] }
 0x7e1   : > { %4515 = vmatprep.subr.bf16.mxu1 %v5985_v51  ;;  %4556 = vmatprep.subr.bf16.mxu0 %v5987_v27  ;;  %v3738_v33 = vld [vmem:[#allocation11 + $0x3b8] sm:$0xff]  ;;  %v6064_v51 = vcombine.low %v3741_v49, %v3745_v40  ;;  %v6066_v27 = vcombine.low %v3742_v42, %v3746_v38  ;;  %v6017_v49 = vcombine.high %v3693_v41, %v3697_v37  ;;  %v3685_v42 = vld [vmem:[#allocation11 + $0x210] sm:$0xff] }
 0x7e2   : > { %v6059_v53 = vcombine.high %v3734_v50, %v3738_v33  ;;  %v3689_v38 = vld [vmem:[#allocation11 + $0x230] sm:$0xff] }
 0x7e4   : > { %4516 = vmatpush1.bf16.msra.mxu1 %v5984_v57  ;;  %4557 = vmatpush1.bf16.msra.mxu0 %v5986_v59  ;;  %v3726_v57 = vld [vmem:[#allocation11 + $0x358] sm:$0xff] }
 0x7e5   : > { %4517 = vmatprep.subr.bf16.mxu1 %v5977_v1  ;;  %4558 = vmatprep.subr.bf16.mxu0 %v5979_v58  ;;  %v3730_v59 = vld [vmem:[#allocation11 + $0x378] sm:$0xff]  ;;  %v6056_v1 = vcombine.low %v3733_v4, %v3737_v48  ;;  %v6058_v58 = vcombine.low %v3734_v50, %v3738_v33  ;;  %v6009_v4 = vcombine.high %v3685_v42, %v3689_v38 }
 0x7e6   : > { %v6051_v18 = vcombine.high %v3726_v57, %v3730_v59  ;;  %v6008_v50 = vcombine.low %v3685_v42, %v3689_v38  ;;  %v6729_v42 = vld [vmem:[#allocation13 + $0x1c4] ss:$8 sps:$4 sm:$0xff]   ;;  %v6724_v38 = vld [vmem:[#allocation13 + $0xc0] ss:$8 sps:$4 sm:$0xff]  }
 0x7e8   : > { %4518 = vmatpush1.bf16.msra.mxu1 %v5976_v22  ;;  %4559 = vmatpush1.bf16.msra.mxu0 %v5978_v25  ;;  %v3718_v22 = vld [vmem:[#allocation11 + $0x318] sm:$0xff] }
 0x7e9   : > { %4519 = vmatprep.subr.bf16.mxu1 %v5969_v63  ;;  %4560 = vmatprep.subr.bf16.mxu0 %v5971_v0  ;;  %v3722_v25 = vld [vmem:[#allocation11 + $0x338] sm:$0xff]  ;;  %v6048_v63 = vcombine.low %v3725_v55, %v3729_v56  ;;  %v6050_v0 = vcombine.low %v3726_v57, %v3730_v59  ;;  %v6666_v55 = vld [vmem:[#allocation13 + $0x64] ss:$8 sps:$4 sm:$0xff]   ;;  %v6664_v57 = vld [vmem:[#allocation13 + $0x60] ss:$8 sps:$4 sm:$0xff]  }
 0x7ea   : > { %v6043_v7 = vcombine.high %v3718_v22, %v3722_v25  ;;  %v6669_v56 = vld [vmem:[#allocation13 + $0x164] ss:$8 sps:$4 sm:$0xff]   ;;  %v6667_v59 = vld [vmem:[#allocation13 + $0x160] ss:$8 sps:$4 sm:$0xff]  }
 0x7ec   : > { %4520 = vmatpush1.bf16.msra.mxu1 %v5968_v28  ;;  %4561 = vmatpush1.bf16.msra.mxu0 %v5970_v32  ;;  %v3710_v28 = vld [vmem:[#allocation11 + $0x2d8] sm:$0xff] }
 0x7ed   : > { %4521 = vmatprep.subr.bf16.mxu1 %v5961_v11  ;;  %4562 = vmatprep.subr.bf16.mxu0 %v5963_v34  ;;  %v3714_v32 = vld [vmem:[#allocation11 + $0x2f8] sm:$0xff]  ;;  %v6040_v11 = vcombine.low %v3717_v20, %v3721_v21  ;;  %v6042_v34 = vcombine.low %v3718_v22, %v3722_v25  ;;  %v6678_v20 = vld [vmem:[#allocation13 + $0x44] ss:$8 sps:$4 sm:$0xff]   ;;  %v6676_v22 = vld [vmem:[#allocation13 + $0x40] ss:$8 sps:$4 sm:$0xff]  }
 0x7ee   : > { %v6035_v45 = vcombine.high %v3710_v28, %v3714_v32  ;;  %v6681_v21 = vld [vmem:[#allocation13 + $0x144] ss:$8 sps:$4 sm:$0xff]   ;;  %v6684_v25 = vld [vmem:[#allocation13 + $0x34] ss:$8 sps:$4 sm:$0xff]  }
 0x7f0   : > { %4522 = vmatpush1.bf16.msra.mxu1 %v5960_v2  ;;  %4563 = vmatpush1.bf16.msra.mxu0 %v5962_v17  ;;  %v3702_v2 = vld [vmem:[#allocation11 + $0x298] sm:$0xff] }
 0x7f1   : > { %4523 = vmatprep.subr.bf16.mxu1 %v5953_v24  ;;  %4564 = vmatprep.subr.bf16.mxu0 %v5955_v43  ;;  %v3706_v17 = vld [vmem:[#allocation11 + $0x2b8] sm:$0xff]  ;;  %v6032_v24 = vcombine.low %v3709_v54, %v3713_v13  ;;  %v6034_v43 = vcombine.low %v3710_v28, %v3714_v32  ;;  %v6693_v54 = vld [vmem:[#allocation13 + $0x124] ss:$8 sps:$4 sm:$0xff]   ;;  %v6688_v13 = vld [vmem:[#allocation13 + $0x20] ss:$8 sps:$4 sm:$0xff]  }
 0x7f2   : > { %v6027_v10 = vcombine.high %v3702_v2, %v3706_v17  ;;  %v6691_v28 = vld [vmem:[#allocation13 + $0x120] ss:$8 sps:$4 sm:$0xff]   ;;  %v6696_v32 = vld [vmem:[#allocation13 + $0x14] ss:$8 sps:$4 sm:$0xff]  }
 0x7f4   : > { %4524 = vmatpush1.bf16.msra.mxu1 %v5952_v16  ;;  %4565 = vmatpush1.bf16.msra.mxu0 %v5954_v3  ;;  %v3694_v16 = vld [vmem:[#allocation11 + $0x258] sm:$0xff] }
 0x7f5   : > { %4525 = vmatprep.subr.bf16.mxu1 %v5945_v62  ;;  %4566 = vmatprep.subr.bf16.mxu0 %v5947_v60  ;;  %v3698_v3 = vld [vmem:[#allocation11 + $0x278] sm:$0xff]  ;;  %v6024_v62 = vcombine.low %v3701_v35, %v3705_v52  ;;  %v6026_v60 = vcombine.low %v3702_v2, %v3706_v17  ;;  %v6705_v35 = vld [vmem:[#allocation13 + $0x104] ss:$8 sps:$4 sm:$0xff]   ;;  %v6700_v52 = vld [vmem:[#allocation13] ss:$8 sps:$4 sm:$0xff]  }
 0x7f6   : > { %v6019_v40 = vcombine.high %v3694_v16, %v3698_v3  ;;  %v6703_v2 = vld [vmem:[#allocation13 + $0x100] ss:$8 sps:$4 sm:$0xff]   ;;  %v6708_v17 = vld [vmem:[#allocation13 + $0xf4] ss:$8 sps:$4 sm:$0xff]  }
 0x7f8   : > { %4526 = vmatpush1.bf16.msra.mxu1 %v5944_v29  ;;  %4567 = vmatpush1.bf16.msra.mxu0 %v5946_v44  ;;  %v3686_v29 = vld [vmem:[#allocation11 + $0x218] sm:$0xff] }
 0x7f9   : > { %4527 = vmatprep.subr.bf16.mxu1 %v6065_v46  ;;  %4568 = vmatprep.subr.bf16.mxu0 %v6067_v47  ;;  %v3690_v44 = vld [vmem:[#allocation11 + $0x238] sm:$0xff]  ;;  %v6016_v46 = vcombine.low %v3693_v41, %v3697_v37  ;;  %v6018_v47 = vcombine.low %v3694_v16, %v3698_v3  ;;  %v6717_v41 = vld [vmem:[#allocation13 + $0x1e4] ss:$8 sps:$4 sm:$0xff]   ;;  %v6712_v37 = vld [vmem:[#allocation13 + $0xe0] ss:$8 sps:$4 sm:$0xff]  }
 0x7fa   : > { %v6011_v48 = vcombine.high %v3686_v29, %v3690_v44  ;;  %v6010_v33 = vcombine.low %v3686_v29, %v3690_v44  ;;  %v6715_v16 = vld [vmem:[#allocation13 + $0x1e0] ss:$8 sps:$4 sm:$0xff]   ;;  %v6720_v3 = vld [vmem:[#allocation13 + $0xd4] ss:$8 sps:$4 sm:$0xff]  }
 0x7fb   : > { %v6727_v29 = vld [vmem:[#allocation13 + $0x1c0] ss:$8 sps:$4 sm:$0xff]   ;;  %v6732_v44 = vld [vmem:[#allocation13 + $0xb4] ss:$8 sps:$4 sm:$0xff]  }
 0x7fc   : > { %4528 = vmatpush2.bf16.msra.mxu1 %v6064_v51  ;;  %4569 = vmatpush2.bf16.msra.mxu0 %v6066_v27  ;;  %v6660_v51 = vld [vmem:[#allocation13 + $0x74] ss:$8 sps:$4 sm:$0xff]  }
 0x7fd   : > { %4529 = vmatprep.subr.bf16.mxu1 %v6057_v26  ;;  %4570 = vmatprep.subr.bf16.mxu0 %v6059_v53  ;;  %v6663_v27 = vld [vmem:[#allocation13 + $0x174] ss:$8 sps:$4 sm:$0xff]   ;;  %v6658_v26 = vld [vmem:[#allocation13 + $0x70] ss:$8 sps:$4 sm:$0xff]  }
 0x7fe   : > { %v6661_v53 = vld [vmem:[#allocation13 + $0x170] ss:$8 sps:$4 sm:$0xff]  }
 0x800   : > { %4530 = vmatpush2.bf16.msra.mxu1 %v6056_v1  ;;  %4571 = vmatpush2.bf16.msra.mxu0 %v6058_v58  ;;  %v6672_v1 = vld [vmem:[#allocation13 + $0x54] ss:$8 sps:$4 sm:$0xff]  }
 0x801   : > { %4531 = vmatprep.subr.bf16.mxu1 %v6049_v9  ;;  %4572 = vmatprep.subr.bf16.mxu0 %v6051_v18  ;;  %v6675_v58 = vld [vmem:[#allocation13 + $0x154] ss:$8 sps:$4 sm:$0xff]   ;;  %v6670_v9 = vld [vmem:[#allocation13 + $0x50] ss:$8 sps:$4 sm:$0xff]  }
 0x802   : > { %v6673_v18 = vld [vmem:[#allocation13 + $0x150] ss:$8 sps:$4 sm:$0xff]  }
 0x804   : > { %4532 = vmatpush2.bf16.msra.mxu1 %v6048_v63  ;;  %4573 = vmatpush2.bf16.msra.mxu0 %v6050_v0  ;;  %v6687_v63 = vld [vmem:[#allocation13 + $0x134] ss:$8 sps:$4 sm:$0xff]   ;;  %v6682_v0 = vld [vmem:[#allocation13 + $0x30] ss:$8 sps:$4 sm:$0xff]  }
 0x805   : > { %4533 = vmatprep.subr.bf16.mxu1 %v6041_v12  ;;  %4574 = vmatprep.subr.bf16.mxu0 %v6043_v7  ;;  %v6685_v12 = vld [vmem:[#allocation13 + $0x130] ss:$8 sps:$4 sm:$0xff]   ;;  %v6690_v7 = vld [vmem:[#allocation13 + $0x24] ss:$8 sps:$4 sm:$0xff]  }
 0x808   : > { %4534 = vmatpush2.bf16.msra.mxu1 %v6040_v11  ;;  %4575 = vmatpush2.bf16.msra.mxu0 %v6042_v34  ;;  %v6699_v11 = vld [vmem:[#allocation13 + $0x114] ss:$8 sps:$4 sm:$0xff]   ;;  %v6694_v34 = vld [vmem:[#allocation13 + $0x10] ss:$8 sps:$4 sm:$0xff]  }
 0x809   : > { %4535 = vmatprep.subr.bf16.mxu1 %v6033_v15  ;;  %4576 = vmatprep.subr.bf16.mxu0 %v6035_v45  ;;  %v6697_v15 = vld [vmem:[#allocation13 + $0x110] ss:$8 sps:$4 sm:$0xff]   ;;  %v6702_v45 = vld [vmem:[#allocation13 + $0x4] ss:$8 sps:$4 sm:$0xff]  }
 0x80c   : > { %4536 = vmatpush2.bf16.msra.mxu1 %v6032_v24  ;;  %4577 = vmatpush2.bf16.msra.mxu0 %v6034_v43  ;;  %v6711_v24 = vld [vmem:[#allocation13 + $0x1f4] ss:$8 sps:$4 sm:$0xff]   ;;  %v6706_v43 = vld [vmem:[#allocation13 + $0xf0] ss:$8 sps:$4 sm:$0xff]  }
 0x80d   : > { %4537 = vmatprep.subr.bf16.mxu1 %v6025_v36  ;;  %4578 = vmatprep.subr.bf16.mxu0 %v6027_v10  ;;  %v6709_v36 = vld [vmem:[#allocation13 + $0x1f0] ss:$8 sps:$4 sm:$0xff]   ;;  %v6714_v10 = vld [vmem:[#allocation13 + $0xe4] ss:$8 sps:$4 sm:$0xff]  }
 0x810   : > { %4538 = vmatpush2.bf16.msra.mxu1 %v6024_v62  ;;  %4579 = vmatpush2.bf16.msra.mxu0 %v6026_v60  ;;  %v6723_v62 = vld [vmem:[#allocation13 + $0x1d4] ss:$8 sps:$4 sm:$0xff]   ;;  %v6718_v60 = vld [vmem:[#allocation13 + $0xd0] ss:$8 sps:$4 sm:$0xff]  }
 0x811   : > { %4539 = vmatprep.subr.bf16.mxu1 %v6017_v49  ;;  %4580 = vmatprep.subr.bf16.mxu0 %v6019_v40  ;;  %v6721_v49 = vld [vmem:[#allocation13 + $0x1d0] ss:$8 sps:$4 sm:$0xff]   ;;  %v6726_v40 = vld [vmem:[#allocation13 + $0xc4] ss:$8 sps:$4 sm:$0xff]  }
 0x814   : > { %4540 = vmatpush2.bf16.msra.mxu1 %v6016_v46  ;;  %4581 = vmatpush2.bf16.msra.mxu0 %v6018_v47  ;;  %v6735_v46 = vld [vmem:[#allocation13 + $0x1b4] ss:$8 sps:$4 sm:$0xff]   ;;  %v6730_v47 = vld [vmem:[#allocation13 + $0xb0] ss:$8 sps:$4 sm:$0xff]  }
 0x815   : > { %4541 = vmatprep.subr.bf16.mxu1 %v6009_v4  ;;  %4582 = vmatprep.subr.bf16.mxu0 %v6011_v48  ;;  %v6733_v4 = vld [vmem:[#allocation13 + $0x1b0] ss:$8 sps:$4 sm:$0xff]   ;;  %v6738_v48 = vld [vmem:[#allocation13 + $0xa4] ss:$8 sps:$4 sm:$0xff]  }
 0x818   : > { %4542 = vmatpush2.bf16.msra.mxu1 %v6008_v50  ;;  %4583 = vmatpush2.bf16.msra.mxu0 %v6010_v33  ;;  %v6741_v50 = vld [vmem:[#allocation13 + $0x1a4] ss:$8 sps:$4 sm:$0xff]   ;;  %v6736_v33 = vld [vmem:[#allocation13 + $0xa0] ss:$8 sps:$4 sm:$0xff]  }
 0x819   : > { %5389 = vmatprep.subr.bf16.mxu1 %v6660_v51  ;;  %5430 = vmatprep.subr.bf16.mxu0 %v6663_v27  ;;  %v6739_v51 = vld [vmem:[#allocation13 + $0x1a0] ss:$8 sps:$4 sm:$0xff]   ;;  %v6744_v27 = vld [vmem:[#allocation13 + $0x94] ss:$8 sps:$4 sm:$0xff]  }
 0x81b   : > { %4544 = vmatmul.mubr.bf16.vlgmr.msra.gmra.mxu1 %v7889_v30  ;;  %4585 = vmatmul.mubr.bf16.vlgmr.msra.gmra.mxu0 %v7889_v30  ;;  %v6679_v30 = vld [vmem:[#allocation13 + $0x140] ss:$8 sps:$4 sm:$0xff]  }
 0x81c   : > { %5390 = vmatpush1.bf16.msra.mxu1 %v6658_v26  ;;  %5431 = vmatpush1.bf16.msra.mxu0 %v6661_v53  ;;  %v6747_v26 = vld [vmem:[#allocation13 + $0x194] ss:$8 sps:$4 sm:$0xff]   ;;  %v6742_v53 = vld [vmem:[#allocation13 + $0x90] ss:$8 sps:$4 sm:$0xff]  }
 0x81d   : > { %5391 = vmatprep.subr.bf16.mxu1 %v6666_v55  ;;  %5432 = vmatprep.subr.bf16.mxu0 %v6669_v56  ;;  %v6745_v55 = vld [vmem:[#allocation13 + $0x190] ss:$8 sps:$4 sm:$0xff]   ;;  %v6750_v56 = vld [vmem:[#allocation13 + $0x84] ss:$8 sps:$4 sm:$0xff]  }
 0x820   : > { %5392 = vmatpush1.bf16.msra.mxu1 %v6664_v57  ;;  %5433 = vmatpush1.bf16.msra.mxu0 %v6667_v59  ;;  %v6753_v57 = vld [vmem:[#allocation13 + $0x184] ss:$8 sps:$4 sm:$0xff]   ;;  %v6748_v59 = vld [vmem:[#allocation13 + $0x80] ss:$8 sps:$4 sm:$0xff]  }
 0x821   : > { %5393 = vmatprep.subr.bf16.mxu1 %v6672_v1  ;;  %5434 = vmatprep.subr.bf16.mxu0 %v6675_v58  ;;  %v6751_v1 = vld [vmem:[#allocation13 + $0x180] ss:$8 sps:$4 sm:$0xff]   ;;  %v6756_v58 = vld [vmem:[#allocation13 + $0x274] ss:$8 sps:$4 sm:$0xff]  }
 0x824   : > { %5394 = vmatpush1.bf16.msra.mxu1 %v6670_v9  ;;  %5435 = vmatpush1.bf16.msra.mxu0 %v6673_v18  ;;  %v6759_v9 = vld [vmem:[#allocation13 + $0x374] ss:$8 sps:$4 sm:$0xff]  }
 0x825   : > { %5395 = vmatprep.subr.bf16.mxu1 %v6678_v20  ;;  %5436 = vmatprep.subr.bf16.mxu0 %v6681_v21  ;;  %v7898_v18 = vld [vmem:[%s7987_s10] sm:$0xff] }
 0x826   : > { %v3752_v20 = vrot.slane %v7898_v18, %v7445_v8  ;;  %v3760_v21 = vrot.slane %v7898_v18, %v653_v6 }
 0x828   : > { %5396 = vmatpush1.bf16.msra.mxu1 %v6676_v22  ;;  %5437 = vmatpush1.bf16.msra.mxu0 %v6679_v30  ;;  %v3756_v22 = vrot.slane %v7898_v18, %v7469_v23  ;;  %v3764_v30 = vrot.slane %v7898_v18, %v657_v19  ;;  %v6757_v19 = vld [vmem:[#allocation13 + $0x370] ss:$8 sps:$4 sm:$0xff]  }
 0x829   : > { %5397 = vmatprep.subr.bf16.mxu1 %v6684_v25  ;;  %5438 = vmatprep.subr.bf16.mxu0 %v6687_v63 }
 0x82c   : > { %5398 = vmatpush1.bf16.msra.mxu1 %v6682_v0  ;;  %5439 = vmatpush1.bf16.msra.mxu0 %v6685_v12 }
 0x82d   : > { %5399 = vmatprep.subr.bf16.mxu1 %v6690_v7  ;;  %5440 = vmatprep.subr.bf16.mxu0 %v6693_v54 }
 0x830   : > { %5400 = vmatpush1.bf16.msra.mxu1 %v6688_v13  ;;  %5441 = vmatpush1.bf16.msra.mxu0 %v6691_v28 }
 0x831   : > { %5401 = vmatprep.subr.bf16.mxu1 %v6696_v32  ;;  %5442 = vmatprep.subr.bf16.mxu0 %v6699_v11 }
 0x834   : > { %5402 = vmatpush1.bf16.msra.mxu1 %v6694_v34  ;;  %5443 = vmatpush1.bf16.msra.mxu0 %v6697_v15 }
 0x835   : > { %5403 = vmatprep.subr.bf16.mxu1 %v6702_v45  ;;  %5444 = vmatprep.subr.bf16.mxu0 %v6705_v35 }
 0x838   : > { %5404 = vmatpush1.bf16.msra.mxu1 %v6700_v52  ;;  %5445 = vmatpush1.bf16.msra.mxu0 %v6703_v2 }
 0x839   : > { %5405 = vmatprep.subr.bf16.mxu1 %v6708_v17  ;;  %5446 = vmatprep.subr.bf16.mxu0 %v6711_v24  ;;  %v6754_v24 = vld [vmem:[#allocation13 + $0x270] ss:$8 sps:$4 sm:$0xff]  }
 0x83c   : > { %5406 = vmatpush2.bf16.msra.mxu1 %v6706_v43  ;;  %5447 = vmatpush2.bf16.msra.mxu0 %v6709_v36 }
 0x83d   : > { %5407 = vmatprep.subr.bf16.mxu1 %v6714_v10  ;;  %5448 = vmatprep.subr.bf16.mxu0 %v6717_v41  ;;  %v6762_v10 = vld [vmem:[#allocation13 + $0x264] ss:$8 sps:$4 sm:$0xff]  }
 0x83e   : > { %v6765_v41 = vld [vmem:[#allocation13 + $0x364] ss:$8 sps:$4 sm:$0xff]  }
 0x840   : > { %5408 = vmatpush2.bf16.msra.mxu1 %v6712_v37  ;;  %5449 = vmatpush2.bf16.msra.mxu0 %v6715_v16  ;;  %v6760_v37 = vld [vmem:[#allocation13 + $0x260] ss:$8 sps:$4 sm:$0xff]  }
 0x841   : > { %5409 = vmatprep.subr.bf16.mxu1 %v6720_v3  ;;  %5450 = vmatprep.subr.bf16.mxu0 %v6723_v62  ;;  %v6763_v16 = vld [vmem:[#allocation13 + $0x360] ss:$8 sps:$4 sm:$0xff]   ;;  %v6768_v3 = vld [vmem:[#allocation13 + $0x254] ss:$8 sps:$4 sm:$0xff]  }
 0x842   : > { %v6771_v62 = vld [vmem:[#allocation13 + $0x354] ss:$8 sps:$4 sm:$0xff]  }
 0x844   : > { %5410 = vmatpush2.bf16.msra.mxu1 %v6718_v60  ;;  %5451 = vmatpush2.bf16.msra.mxu0 %v6721_v49  ;;  %v6766_v60 = vld [vmem:[#allocation13 + $0x250] ss:$8 sps:$4 sm:$0xff]  }
 0x845   : > { %5411 = vmatprep.subr.bf16.mxu1 %v6726_v40  ;;  %5452 = vmatprep.subr.bf16.mxu0 %v6729_v42  ;;  %v6769_v49 = vld [vmem:[#allocation13 + $0x350] ss:$8 sps:$4 sm:$0xff]   ;;  %v6774_v40 = vld [vmem:[#allocation13 + $0x244] ss:$8 sps:$4 sm:$0xff]  }
 0x846   : > { %v6777_v42 = vld [vmem:[#allocation13 + $0x344] ss:$8 sps:$4 sm:$0xff]  }
 0x848   : > { %5412 = vmatpush2.bf16.msra.mxu1 %v6724_v38  ;;  %5453 = vmatpush2.bf16.msra.mxu0 %v6727_v29  ;;  %v6772_v38 = vld [vmem:[#allocation13 + $0x240] ss:$8 sps:$4 sm:$0xff]  }
 0x849   : > { %5413 = vmatprep.subr.bf16.mxu1 %v6732_v44  ;;  %5454 = vmatprep.subr.bf16.mxu0 %v6735_v46  ;;  %v6775_v29 = vld [vmem:[#allocation13 + $0x340] ss:$8 sps:$4 sm:$0xff]   ;;  %v6780_v44 = vld [vmem:[#allocation13 + $0x234] ss:$8 sps:$4 sm:$0xff]  }
 0x84a   : > { %v6783_v46 = vld [vmem:[#allocation13 + $0x334] ss:$8 sps:$4 sm:$0xff]  }
 0x84c   : > { %5414 = vmatpush2.bf16.msra.mxu1 %v6730_v47  ;;  %5455 = vmatpush2.bf16.msra.mxu0 %v6733_v4  ;;  %v6778_v47 = vld [vmem:[#allocation13 + $0x230] ss:$8 sps:$4 sm:$0xff]  }
 0x84d   : > { %5415 = vmatprep.subr.bf16.mxu1 %v6738_v48  ;;  %5456 = vmatprep.subr.bf16.mxu0 %v6741_v50  ;;  %v6781_v4 = vld [vmem:[#allocation13 + $0x330] ss:$8 sps:$4 sm:$0xff]   ;;  %v6786_v48 = vld [vmem:[#allocation13 + $0x224] ss:$8 sps:$4 sm:$0xff]  }
 0x84e   : > { %v6789_v50 = vld [vmem:[#allocation13 + $0x324] ss:$8 sps:$4 sm:$0xff]  }
 0x850   : > { %5416 = vmatpush2.bf16.msra.mxu1 %v6736_v33  ;;  %5457 = vmatpush2.bf16.msra.mxu0 %v6739_v51  ;;  %v6784_v33 = vld [vmem:[#allocation13 + $0x220] ss:$8 sps:$4 sm:$0xff]  }
 0x851   : > { %5417 = vmatprep.subr.bf16.mxu1 %v6744_v27  ;;  %5458 = vmatprep.subr.bf16.mxu0 %v6747_v26  ;;  %v6787_v51 = vld [vmem:[#allocation13 + $0x320] ss:$8 sps:$4 sm:$0xff]   ;;  %v6792_v27 = vld [vmem:[#allocation13 + $0x214] ss:$8 sps:$4 sm:$0xff]  }
 0x852   : > { %v6795_v26 = vld [vmem:[#allocation13 + $0x314] ss:$8 sps:$4 sm:$0xff]  }
 0x854   : > { %5418 = vmatpush2.bf16.msra.mxu1 %v6742_v53  ;;  %5459 = vmatpush2.bf16.msra.mxu0 %v6745_v55  ;;  %v6790_v53 = vld [vmem:[#allocation13 + $0x210] ss:$8 sps:$4 sm:$0xff]  }
 0x855   : > { %5419 = vmatprep.subr.bf16.mxu1 %v6750_v56  ;;  %5460 = vmatprep.subr.bf16.mxu0 %v6753_v57  ;;  %v6793_v55 = vld [vmem:[#allocation13 + $0x310] ss:$8 sps:$4 sm:$0xff]   ;;  %v6798_v56 = vld [vmem:[#allocation13 + $0x204] ss:$8 sps:$4 sm:$0xff]  }
 0x856   : > { %v6801_v57 = vld [vmem:[#allocation13 + $0x304] ss:$8 sps:$4 sm:$0xff]  }
 0x858   : > { %5420 = vmatpush2.bf16.msra.mxu1 %v6748_v59  ;;  %5461 = vmatpush2.bf16.msra.mxu0 %v6751_v1  ;;  %v6796_v59 = vld [vmem:[#allocation13 + $0x200] ss:$8 sps:$4 sm:$0xff]  }
 0x859   : > { %5471 = vmatprep.subr.bf16.mxu1 %v6756_v58  ;;  %5512 = vmatprep.subr.bf16.mxu0 %v6759_v9  ;;  %v6799_v1 = vld [vmem:[#allocation13 + $0x300] ss:$8 sps:$4 sm:$0xff]   ;;  %v6804_v58 = vld [vmem:[#allocation13 + $0x2f4] ss:$8 sps:$4 sm:$0xff]  }
 0x85a   : > { %v6807_v9 = vld [vmem:[#allocation13 + $0x3f4] ss:$8 sps:$4 sm:$0xff]  }
 0x89b   : > { %v4463_v25 = vpop.f32.mrf.mxu1  ;;  %v4504_v63 = vpop.f32.mrf.mxu0 }
 0x89c   : > { %v4464_v0 = vadd.f32 %v4463_v25, %v3752_v20  ;;  %v4505_v12 = vadd.f32 %v4504_v63, %v3760_v21  ;;  %v6802_v20 = vld [vmem:[#allocation13 + $0x2f0] ss:$8 sps:$4 sm:$0xff]   ;;  %v6808_v25 = vld [vmem:[#allocation13 + $0x2e0] ss:$8 sps:$4 sm:$0xff]  }
 0x89d   : > { %v4465_v7 = vpop.f32.mrf.mxu1  ;;  %v4506_v54 = vpop.f32.mrf.mxu0  ;;  %v6805_v21 = vld [vmem:[#allocation13 + $0x3f0] ss:$8 sps:$4 sm:$0xff]   ;;  %v6811_v63 = vld [vmem:[#allocation13 + $0x3e0] ss:$8 sps:$4 sm:$0xff]  }
 0x89e   : > { %v4466_v13 = vadd.f32 %v4465_v7, %v3756_v22  ;;  %v4507_v28 = vadd.f32 %v4506_v54, %v3764_v30  ;;  %v4593_v32 = vmax.f32 %v4464_v0, 0.0  ;;  %v4595_v11 = vmax.f32 %v4505_v12, 0.0  ;;  %v6810_v22 = vld [vmem:[#allocation13 + $0x2e4] ss:$8 sps:$4 sm:$0xff]   ;;  %v6816_v0 = vld [vmem:[#allocation13 + $0x2d4] ss:$8 sps:$4 sm:$0xff]  }
 0x89f   : > { %v4467_v34 = vpop.f32.mrf.mxu1  ;;  %v4508_v15 = vpop.f32.mrf.mxu0  ;;  %v6813_v30 = vld [vmem:[#allocation13 + $0x3e4] ss:$8 sps:$4 sm:$0xff]   ;;  %v6819_v12 = vld [vmem:[#allocation13 + $0x3d4] ss:$8 sps:$4 sm:$0xff]   ;;  %v6814_v7 = vld [vmem:[#allocation13 + $0x2d0] ss:$8 sps:$4 sm:$0xff]  }
 0x8a0   : > { %v4594_v6 = vmax.f32 %v4466_v13, 0.0  ;;  %v4596_v45 = vmax.f32 %v4507_v28, 0.0  ;;  %v4601_v43 = vpack.c.bf16 %v4593_v32, %v4593_v32  ;;  %v4603_v36 = vpack.c.bf16 %v4595_v11, %v4595_v11  ;;  %v6817_v54 = vld [vmem:[#allocation13 + $0x3d0] ss:$8 sps:$4 sm:$0xff]   ;;  %v6822_v13 = vld [vmem:[#allocation13 + $0x2c4] ss:$8 sps:$4 sm:$0xff]  }
 0x8a1   : > { %v4468_v35 = vpop.f32.mrf.mxu1  ;;  %v4509_v52 = vpop.f32.mrf.mxu0  ;;  %v6825_v28 = vld [vmem:[#allocation13 + $0x3c4] ss:$8 sps:$4 sm:$0xff]   ;;  %v6820_v32 = vld [vmem:[#allocation13 + $0x2c0] ss:$8 sps:$4 sm:$0xff]   ;;  %v6828_v34 = vld [vmem:[#allocation13 + $0x2b4] ss:$8 sps:$4 sm:$0xff]  }
 0x8a2   : > { %v4602_v2 = vpack.c.bf16 %v4594_v6, %v4594_v6  ;;  %v4604_v17 = vpack.c.bf16 %v4596_v45, %v4596_v45  ;;  %v6823_v11 = vld [vmem:[#allocation13 + $0x3c0] ss:$8 sps:$4 sm:$0xff]   ;;  %v6831_v15 = vld [vmem:[#allocation13 + $0x3b4] ss:$8 sps:$4 sm:$0xff]   ;;  %v6826_v6 = vld [vmem:[#allocation13 + $0x2b0] ss:$8 sps:$4 sm:$0xff]  }
 0x8a3   : > { %v6829_v45 = vld [vmem:[#allocation13 + $0x3b0] ss:$8 sps:$4 sm:$0xff]   ;;  %v6834_v35 = vld [vmem:[#allocation13 + $0x2a4] ss:$8 sps:$4 sm:$0xff]  }
 0x8a4   : > { %5421 = vmatprep.mubr.bf16.mxu1 %v4602_v2  ;;  %5462 = vmatprep.mubr.bf16.mxu0 %v4604_v17  ;;  %v6837_v52 = vld [vmem:[#allocation13 + $0x3a4] ss:$8 sps:$4 sm:$0xff]   ;;  %v3775_v2 = vsub.s32 6, %v7439_v5  ;;  %v6832_v17 = vld [vmem:[#allocation13 + $0x2a0] ss:$8 sps:$4 sm:$0xff]  }
 0x8a5   : > { %5422 = vmatmul.mubr.bf16.vlgmr.msra.gmra.mxu1 %v4601_v43  ;;  %5463 = vmatmul.mubr.bf16.vlgmr.msra.gmra.mxu0 %v4603_v36  ;;  %v6840_v43 = vld [vmem:[#allocation13 + $0x294] ss:$8 sps:$4 sm:$0xff]  }
 0x8a6   : > { %5472 = vmatpush1.bf16.msra.mxu1 %v6754_v24  ;;  %5513 = vmatpush1.bf16.msra.mxu0 %v6757_v19  ;;  %v6835_v24 = vld [vmem:[#allocation13 + $0x3a0] ss:$8 sps:$4 sm:$0xff]   ;;  %v3779_v19 = vsub.s32 7, %v7439_v5  ;;  %v6843_v36 = vld [vmem:[#allocation13 + $0x394] ss:$8 sps:$4 sm:$0xff]  }
 0x8a7   : > { %5473 = vmatprep.subr.bf16.mxu1 %v6762_v10  ;;  %5514 = vmatprep.subr.bf16.mxu0 %v6765_v41  ;;  %v3768_v10 = vrot.slane %v7898_v18, %v661_v61  ;;  %v3776_v41 = vrot.slane %v7898_v18, %v3775_v2  ;;  %v6844_v5 = vld [vmem:[#allocation13 + $0x280] ss:$8 sps:$4 sm:$0xff]  }
 0x8aa   : > { %5474 = vmatpush1.bf16.msra.mxu1 %v6760_v37  ;;  %5515 = vmatpush1.bf16.msra.mxu0 %v6763_v16  ;;  %v3772_v37 = vrot.slane %v7898_v18, %v665_v31  ;;  %v3780_v16 = vrot.slane %v7898_v18, %v3779_v19  ;;  %v6847_v31 = vld [vmem:[#allocation13 + $0x380] ss:$8 sps:$4 sm:$0xff]  }
 0x8ab   : > { %5475 = vmatprep.subr.bf16.mxu1 %v6768_v3  ;;  %5516 = vmatprep.subr.bf16.mxu0 %v6771_v62  ;;  %v6838_v3 = vld [vmem:[#allocation13 + $0x290] ss:$8 sps:$4 sm:$0xff]  }
 0x8ac   : > { %v6841_v62 = vld [vmem:[#allocation13 + $0x390] ss:$8 sps:$4 sm:$0xff]  }
 0x8ae   : > { %5476 = vmatpush1.bf16.msra.mxu1 %v6766_v60  ;;  %5517 = vmatpush1.bf16.msra.mxu0 %v6769_v49 }
 0x8af   : > { %5477 = vmatprep.subr.bf16.mxu1 %v6774_v40  ;;  %5518 = vmatprep.subr.bf16.mxu0 %v6777_v42  ;;  %v6846_v40 = vld [vmem:[#allocation13 + $0x284] ss:$8 sps:$4 sm:$0xff]  }
 0x8b0   : > { %v6849_v42 = vld [vmem:[#allocation13 + $0x384] ss:$8 sps:$4 sm:$0xff]  }
 0x8b2   : > { %5478 = vmatpush1.bf16.msra.mxu1 %v6772_v38  ;;  %5519 = vmatpush1.bf16.msra.mxu0 %v6775_v29 }
 0x8b3   : > { %5479 = vmatprep.subr.bf16.mxu1 %v6780_v44  ;;  %5520 = vmatprep.subr.bf16.mxu0 %v6783_v46 }
 0x8b6   : > { %5480 = vmatpush1.bf16.msra.mxu1 %v6778_v47  ;;  %5521 = vmatpush1.bf16.msra.mxu0 %v6781_v4 }
 0x8b7   : > { %5481 = vmatprep.subr.bf16.mxu1 %v6786_v48  ;;  %5522 = vmatprep.subr.bf16.mxu0 %v6789_v50 }
 0x8ba   : > { %5482 = vmatpush1.bf16.msra.mxu1 %v6784_v33  ;;  %5523 = vmatpush1.bf16.msra.mxu0 %v6787_v51 }
 0x8bb   : > { %5483 = vmatprep.subr.bf16.mxu1 %v6792_v27  ;;  %5524 = vmatprep.subr.bf16.mxu0 %v6795_v26 }
 0x8be   : > { %5484 = vmatpush1.bf16.msra.mxu1 %v6790_v53  ;;  %5525 = vmatpush1.bf16.msra.mxu0 %v6793_v55 }
 0x8bf   : > { %5485 = vmatprep.subr.bf16.mxu1 %v6798_v56  ;;  %5526 = vmatprep.subr.bf16.mxu0 %v6801_v57 }
 0x8c2   : > { %5486 = vmatpush1.bf16.msra.mxu1 %v6796_v59  ;;  %5527 = vmatpush1.bf16.msra.mxu0 %v6799_v1 }
 0x8c3   : > { %5487 = vmatprep.subr.bf16.mxu1 %v6804_v58  ;;  %5528 = vmatprep.subr.bf16.mxu0 %v6807_v9 }
 0x8c6   : > { %5488 = vmatpush2.bf16.msra.mxu1 %v6802_v20  ;;  %5529 = vmatpush2.bf16.msra.mxu0 %v6805_v21 }
 0x8c7   : > { %5489 = vmatprep.subr.bf16.mxu1 %v6810_v22  ;;  %5530 = vmatprep.subr.bf16.mxu0 %v6813_v30 }
 0x8ca   : > { %5490 = vmatpush2.bf16.msra.mxu1 %v6808_v25  ;;  %5531 = vmatpush2.bf16.msra.mxu0 %v6811_v63  ;;  %v4737_v25 = vld [vmem:[%s7989_s12] sm:$0x3] }
 0x8cb   : > { %5491 = vmatprep.subr.bf16.mxu1 %v6816_v0  ;;  %5532 = vmatprep.subr.bf16.mxu0 %v6819_v12  ;;  %v4742_v63 = vrot.slane %v4737_v25, %v7445_v8  ;;  %v4746_v0 = vrot.slane %v4737_v25, %v7469_v23 }
 0x8ce   : > { %5492 = vmatpush2.bf16.msra.mxu1 %v6814_v7  ;;  %5533 = vmatpush2.bf16.msra.mxu0 %v6817_v54 }
 0x8cf   : > { %5493 = vmatprep.subr.bf16.mxu1 %v6822_v13  ;;  %5534 = vmatprep.subr.bf16.mxu0 %v6825_v28 }
 0x8d2   : > { %5494 = vmatpush2.bf16.msra.mxu1 %v6820_v32  ;;  %5535 = vmatpush2.bf16.msra.mxu0 %v6823_v11 }
 0x8d3   : > { %5495 = vmatprep.subr.bf16.mxu1 %v6828_v34  ;;  %5536 = vmatprep.subr.bf16.mxu0 %v6831_v15 }
 0x8d6   : > { %5496 = vmatpush2.bf16.msra.mxu1 %v6826_v6  ;;  %5537 = vmatpush2.bf16.msra.mxu0 %v6829_v45 }
 0x8d7   : > { %5497 = vmatprep.subr.bf16.mxu1 %v6834_v35  ;;  %5538 = vmatprep.subr.bf16.mxu0 %v6837_v52 }
 0x8da   : > { %5498 = vmatpush2.bf16.msra.mxu1 %v6832_v17  ;;  %5539 = vmatpush2.bf16.msra.mxu0 %v6835_v24 }
 0x8db   : > { %v4545_v60 = vpop.f32.mrf.mxu1  ;;  %v4586_v49 = vpop.f32.mrf.mxu0  ;;  %5499 = vmatprep.subr.bf16.mxu1 %v6840_v43  ;;  %5540 = vmatprep.subr.bf16.mxu0 %v6843_v36 }
 0x8dc   : > { %v4546_v38 = vadd.f32 %v4545_v60, %v3768_v10  ;;  %v4587_v61 = vadd.f32 %v4586_v49, %v3776_v41 }
 0x8dd   : > { %v4547_v29 = vpop.f32.mrf.mxu1  ;;  %v4588_v44 = vpop.f32.mrf.mxu0 }
 0x8de   : > { %v4548_v46 = vadd.f32 %v4547_v29, %v3772_v37  ;;  %v4589_v47 = vadd.f32 %v4588_v44, %v3780_v16  ;;  %5500 = vmatpush2.bf16.msra.mxu1 %v6838_v3  ;;  %5541 = vmatpush2.bf16.msra.mxu0 %v6841_v62  ;;  %v4597_v4 = vmax.f32 %v4546_v38, 0.0  ;;  %v4599_v18 = vmax.f32 %v4587_v61, 0.0 }
 0x8df   : > { %v4549_v48 = vpop.f32.mrf.mxu1  ;;  %v4590_v50 = vpop.f32.mrf.mxu0  ;;  %5501 = vmatprep.subr.bf16.mxu1 %v6846_v40  ;;  %5542 = vmatprep.subr.bf16.mxu0 %v6849_v42 }
 0x8e0   : > { %v4598_v33 = vmax.f32 %v4548_v46, 0.0  ;;  %v4600_v51 = vmax.f32 %v4589_v47, 0.0  ;;  %v4605_v56 = vpack.c.bf16 %v4597_v4, %v4597_v4  ;;  %v4607_v57 = vpack.c.bf16 %v4599_v18, %v4599_v18 }
 0x8e1   : > { %v4550_v27 = vpop.f32.mrf.mxu1  ;;  %v4591_v26 = vpop.f32.mrf.mxu0 }
 0x8e2   : > { %v4606_v53 = vpack.c.bf16 %v4598_v33, %v4598_v33  ;;  %v4608_v55 = vpack.c.bf16 %v4600_v51, %v4600_v51  ;;  %5502 = vmatpush2.bf16.msra.mxu1 %v6844_v5  ;;  %5543 = vmatpush2.bf16.msra.mxu0 %v6847_v31 }
 0x8e4   : > { %5503 = vmatprep.mubr.bf16.mxu1 %v4606_v53  ;;  %5544 = vmatprep.mubr.bf16.mxu0 %v4608_v55 }
 0x8e5   : > { %5504 = vmatmul.mubr.bf16.vlgmr.msra.gmra.mxu1 %v4605_v56  ;;  %5545 = vmatmul.mubr.bf16.vlgmr.msra.gmra.mxu0 %v4607_v57 }
 0x965   : > { %v5423_v59 = vpop.f32.mrf.mxu1  ;;  %v5464_v1 = vpop.f32.mrf.mxu0 }
 0x966   : > { %v5424_v12 = vadd.f32 %v5423_v59, %v4742_v63 }
 0x967   : > { %v5425_v58 = vpop.f32.mrf.mxu1  ;;  %v5466_v9 = vpop.f32.mrf.mxu0 }
 0x968   : > { %v5426_v7 = vadd.f32 %v5425_v58, %v4746_v0  ;;  %v5465_v54 = vadd.f32 %v5464_v1, %v5424_v12 }
 0x969   : > { %v5427_v20 = vpop.f32.mrf.mxu1  ;;  %v5468_v21 = vpop.f32.mrf.mxu0 }
 0x96a   : > { %v5467_v32 = vadd.f32 %v5466_v9, %v5426_v7 }
 0x96b   : > { %v5428_v22 = vpop.f32.mrf.mxu1  ;;  %v5469_v30 = vpop.f32.mrf.mxu0 }
 0x9a5   : > { %v5505_v13 = vpop.f32.mrf.mxu1  ;;  %v5546_v28 = vpop.f32.mrf.mxu0 }
 0x9a6   : > { %v5506_v11 = vadd.f32 %v5505_v13, %v5465_v54 }
 0x9a7   : > { %v5507_v34 = vpop.f32.mrf.mxu1  ;;  %v5548_v15 = vpop.f32.mrf.mxu0 }
 0x9a8   : > { %v5547_v6 = vadd.f32 %v5546_v28, %v5506_v11  ;;  %v5508_v45 = vadd.f32 %v5507_v34, %v5467_v32 }
 0x9a9   : > { %v5509_v35 = vpop.f32.mrf.mxu1  ;;  %v5550_v52 = vpop.f32.mrf.mxu0 }
 0x9aa   : > { %v5549_v2 = vadd.f32 %v5548_v15, %v5508_v45  ;;  %v5553_v19 = vadd.f32 %v5547_v6, %v7883_v39  ;;  %v5556_v39 = vld [vmem:[#allocation10] sm:$0x3] }
 0x9ab   : > { %v5510_v17 = vpop.f32.mrf.mxu1  ;;  %v5551_v24 = vpop.f32.mrf.mxu0  ;;  %v5590_v47 = vrot.slane %v5556_v39, %v7445_v8  ;;  %v5594_v5 = vrot.slane %v5556_v39, %v7469_v23 }
 0x9ac   : > { %v5554_v43 = vadd.f32 %v5549_v2, %v7881_v14  ;;  %v5555_v14 = vld [vmem:[%s7984_s7] sm:$0x3] }
 0x9ad   : > { %v5577_v38 = vrot.slane %v5555_v14, %v7445_v8  ;;  %v5581_v61 = vrot.slane %v5555_v14, %v7469_v23 }
 0x9ae   : > { %v5557_v36 = vadd.f32 %v5554_v43, %v5553_v19 }
 0x9b0   : > { %5558 = vadd.xlane.f32.xlu0 %v5557_v36 }
 0xa39   : > { %v5559_v10 = vpop.xlane.xlu0 %5558 }
 0xa3a   : > { %v5560_v41 = vmul.f32 0.00390625, %v5559_v10 }
 0xa3c   : > { %v5561_v37 = vsub.f32 %v5553_v19, %v5560_v41  ;;  %v5562_v16 = vsub.f32 %v5554_v43, %v5560_v41 }
 0xa3e   : > { %v5563_v3 = vmul.f32 %v5561_v37, %v5561_v37  ;;  %v5564_v62 = vmul.f32 %v5562_v16, %v5562_v16 }
 0xa40   : > { %v5565_v60 = vadd.f32 %v5564_v62, %v5563_v3 }
 0xa42   : > { %5566 = vadd.xlane.f32.xlu1 %v5565_v60 }
 0xacb   : > { %v5567_v49 = vpop.xlane.xlu1 %5566 }
 0xacc   : > { %v5568_v40 = vmul.f32 0.00390625, %v5567_v49 }
 0xace   : > { %v5569_v42 = vadd.f32 1e-05, %v5568_v40 }
 0xad0   : > { %6884 = vrsqrt.f32 %v5569_v42 }
 0xadd   : > { %v6885_v29 = vpop.eup %6884 }
 0xade   : > { %v5571_v44 = vmul.f32 %v6885_v29, %v5561_v37  ;;  %v5572_v46 = vmul.f32 %v6885_v29, %v5562_v16 }
 0xae0   : > { %v5584_v31 = vmul.f32 %v5577_v38, %v5571_v44  ;;  %v5585_v4 = vmul.f32 %v5581_v61, %v5572_v46 }
 0xae2   : > { %v5597_v18 = vadd.f32 %v5590_v47, %v5584_v31  ;;  %v5598_v48 = vadd.f32 %v5594_v5, %v5585_v4 }
 0xae4   : > { %5599 = vst [vmem:[%s539_s8] sm:$0xff] %v5597_v18  ;;  %5600 = vst [vmem:[%s539_s8 + $0x8] sm:$0xff] %v5598_v48 }
 0xae5   : > { %7085 = shalt.err (!%p7082_p6)
}
 0xae6   : > { %s7086_s19 = scalar_lea.hbm %s7940_s1, 256  ;;  %s7090_s13 = scalar_lea.hbm %s8031_s22, 512 }
 0xae7   : > { %p7087_p5 = scmp.ne.s32.totalorder %s7940_s1, %s7086_s19  ;;  %p7091_p3 = scmp.lt.s32.totalorder %s7940_s1, %s8031_s22 }
 0xae8   : > { %p7092_p10 = scmp.lt.s32.totalorder %s7090_s13, %s7086_s19 }
 0xae9   : > { %p7088_p8 = pnand %p7087_p5, %p8032_p13 }
 0xaea   : > { %p7093_p11 = por %p7092_p10, %p7091_p3 }
 0xaeb   : > { %p7089_p9 = pneg %p7088_p8 }
 0xaed   : > { %p7094_p12 = pnand %p7093_p11, %p7089_p9 }
 0xaef   : > { %7097 = shalt.err (!%p7094_p12)
}
 0xaf0   : > { %6357 = dma.vmem_to_hbm [thread:$0]  (%p8032_p13), %s5617_s15, 256, %s7940_s1, %s5602_s23  }
 0xaf1 PF: > { %s5628_s8 = sand.u32 1, %s7136_s25   ;;  %p8033_p0 = scmp.ne.s32.totalorder %s8021_s30, 0 }
 0xaf2   : > { %p8034_p2 = scmp.ge.s32.totalorder %s7148_s28, 2  ;;  %s5629_s16 = scalar_lea.sflag [#allocation4], %s5628_s8 }
 0xaf4   : > { %p6383_p1 = pnand %p8034_p2, %p8033_p0 }
 0xaf6   : > { %p6384_p4 = pneg %p6383_p1 }
 0xaf8   : > { %7131 = dma.done.wait (%p6384_p4), %s5629_s16, 256  }
 0xaf9   : > { %7133 = vsyncadd (%p6384_p4), %s5629_s16, 4294967040  ;;  %s8035_s20 = sld [smem:[#allocation20_spill]]  ;;  %p29_p7 = scmp.ge.s32.totalorder %s7346_s21, 4  }
 0xafa   : > { %s8036_s25 = smov %s7140_s26  ;;  %s8037_s26 = smov %s7144_s27 }
 0xafb   : > { %s8039_s28 = smov %s7346_s21  ;;  %31 = sbr.rel (!%p29_p7) target bundleno = 16 (0x10), region = 141 }
 0xaff   : > { %s8038_s27 = smov %s8035_s20 }
 0xb00   :  { %5634 = vsyncpa [#allocation3], 1 }
 0xb01   :  { %5636 = vsyncpa [#allocation3 + $0x1], 1 }
 0xb02   :  { %5637 = vsyncpa [#allocation6], 1 }
 0xb03   :  { %5638 = vsyncpa [#allocation9], 1 }
 0xb04   :  { %5639 = vsyncpa [#allocation12], 1 }
 0xb05   :  { %5640 = vsyncpa [#allocation4], 1 }
 0xb06   :  { %5642 = vsyncpa [#allocation4 + $0x1], 1 }

</bundles_post_ra>
